<compile_context>
chip_gen: v7x
topology: tpu7x:2x2x1
jax: 0.10.0
libtpu: 0.0.40
codegen_flags: <defaults>
</compile_context>

<pallas_src>
import functools

import jax
import jax.numpy as jnp
from jax.experimental import pallas as pl
from jax.experimental.pallas import tpu as pltpu

KERNEL_SIZE = 7
PAD = (KERNEL_SIZE - 1) // 2
K2 = KERNEL_SIZE * KERNEL_SIZE


# --------------------------------------------------------------------------
# Kernel A: channel mean/max reduction + 7x7 conv (2->1) + sigmoid
# --------------------------------------------------------------------------
def _attn_map_kernel(x_ref, w_ref, attn_ref, sum_ref, max_ref, *, num_channels):
    # x_ref:    (CT, H, W)  one channel tile of one batch element (VMEM)
    # w_ref:    (2*49,)     conv weights, flattened c-major (SMEM scalars)
    # attn_ref: (H, W)      sigmoid attention map (written on last c step)
    # sum_ref/max_ref: (H, W) f32 VMEM accumulators across channel tiles
    ct, H, W = x_ref.shape
    c_idx = pl.program_id(1)

    # Partial reduce over this channel tile, one plane at a time to keep
    # vreg pressure bounded (scales to large C*H*W).
    def body(c, carry):
        s, m = carry
        plane = x_ref[c].astype(jnp.float32)
        return s + plane, jnp.maximum(m, plane)

    first = x_ref[0].astype(jnp.float32)
    s, m = jax.lax.fori_loop(1, ct, body, (first, first))

    @pl.when(c_idx == 0)
    def _init():
        sum_ref[...] = s
        max_ref[...] = m

    @pl.when(c_idx > 0)
    def _accumulate():
        sum_ref[...] = sum_ref[...] + s
        max_ref[...] = jnp.maximum(max_ref[...], m)

    @pl.when(c_idx == pl.num_programs(1) - 1)
    def _finalize():
        avg = sum_ref[...] * (1.0 / float(num_channels))
        mx = max_ref[...]

        def pad_plane(p):  # (H, W) -> zero-padded (H+6, W+6), via concatenate
            zr = jnp.zeros((PAD, W), jnp.float32)
            p = jnp.concatenate([zr, p, zr], axis=0)
            zc = jnp.zeros((H + 2 * PAD, PAD), jnp.float32)
            return jnp.concatenate([zc, p, zc], axis=1)

        planes = (pad_plane(avg), pad_plane(mx))
        acc = jnp.zeros((H, W), jnp.float32)
        for cin in range(2):
            pc = planes[cin]
            for i in range(KERNEL_SIZE):
                for j in range(KERNEL_SIZE):
                    wgt = w_ref[cin * K2 + i * KERNEL_SIZE + j]  # SMEM scalar
                    acc = acc + wgt * pc[i:i + H, j:j + W]
        attn_ref[...] = 1.0 / (1.0 + jnp.exp(-acc))


def _pick_channel_tile(c, max_tile=64):
    t = min(c, max_tile)
    while c % t:
        t -= 1
    return t


def _attention_map(x, w_flat):
    B, C, H, W = x.shape
    ct = _pick_channel_tile(C)
    kern = functools.partial(_attn_map_kernel, num_channels=C)
    return pl.pallas_call(
        kern,
        out_shape=jax.ShapeDtypeStruct((B, H, W), jnp.float32),
        grid=(B, C // ct),
        in_specs=[
            pl.BlockSpec((None, ct, H, W), lambda b, c: (b, c, 0, 0)),
            pl.BlockSpec(memory_space=pltpu.MemorySpace.SMEM),
        ],
        out_specs=pl.BlockSpec((None, H, W), lambda b, c: (b, 0, 0)),
        scratch_shapes=[
            pltpu.VMEM((H, W), jnp.float32),
            pltpu.VMEM((H, W), jnp.float32),
        ],
        compiler_params=pltpu.CompilerParams(
            dimension_semantics=("parallel", "arbitrary")),
    )(x, w_flat)


# --------------------------------------------------------------------------
# Kernel B: lane-dense broadcast multiply  out[b,c,hw] = x[b,c,hw] * attn[b,hw]
# --------------------------------------------------------------------------
def _apply_kernel(x_ref, a_ref, o_ref):
    # x_ref: (C, T), a_ref: (1, T) -> o_ref: (C, T)   (T lane-dense)
    o_ref[...] = (x_ref[...] * a_ref[...]).astype(o_ref.dtype)


def _pick_hw_tile(hw, max_tile=512):
    t = max_tile
    while t >= 128:
        if hw % t == 0:
            return t
        t //= 2
    return hw  # small / non-128-multiple spatial maps: take the full extent


def _apply_attention(x, attn):
    B, C, H, W = x.shape
    HW = H * W
    T = _pick_hw_tile(HW)
    x3 = x.reshape(B, C, HW)          # free (contiguous) reshapes: no HBM copy
    a3 = attn.reshape(B, 1, HW)
    out = pl.pallas_call(
        _apply_kernel,
        out_shape=jax.ShapeDtypeStruct((B, C, HW), x.dtype),
        grid=(B, HW // T),
        in_specs=[
            pl.BlockSpec((None, C, T), lambda b, t: (b, 0, t)),
            pl.BlockSpec((None, 1, T), lambda b, t: (b, 0, t)),
        ],
        out_specs=pl.BlockSpec((None, C, T), lambda b, t: (b, 0, t)),
        compiler_params=pltpu.CompilerParams(
            dimension_semantics=("parallel", "parallel")),
    )(x3, a3)
    return out.reshape(B, C, H, W)


# --------------------------------------------------------------------------
# Forward pass + pure-JAX reference
# --------------------------------------------------------------------------
@jax.jit
def spatial_attention(x, w):
    """x: (B, C, H, W); w: (1, 2, 7, 7) conv weight (no bias)."""
    w_flat = w.astype(jnp.float32).reshape(-1)   # (98,) scalars for SMEM
    attn = _attention_map(x, w_flat)             # (B, H, W)
    return _apply_attention(x, attn)             # (B, C, H, W)


def spatial_attention_ref(x, w):
    avg = jnp.mean(x, axis=1, keepdims=True)
    mx = jnp.max(x, axis=1, keepdims=True)
    cat = jnp.concatenate([avg, mx], axis=1)     # (B, 2, H, W)
    conv = jax.lax.conv_general_dilated(
        cat, w, window_strides=(1, 1), padding=((PAD, PAD), (PAD, PAD)),
        dimension_numbers=("NCHW", "OIHW", "NCHW"))
    return jax.nn.sigmoid(conv) * x


if __name__ == "__main__":
    key = jax.random.PRNGKey(0)
    kx, kw = jax.random.split(key)
    B, C, H, W = 2, 96, 32, 32   # exercises multi-step channel & HW tiling
    x = jax.random.normal(kx, (B, C, H, W), jnp.float32)
    w = 0.1 * jax.random.normal(kw, (1, 2, KERNEL_SIZE, KERNEL_SIZE), jnp.float32)

    out = jax.block_until_ready(spatial_attention(x, w))
    assert out.shape == (B, C, H, W), out.shape
    assert bool(jnp.all(jnp.isfinite(out)))

    ref = jax.block_until_ready(spatial_attention_ref(x, w))
    err = float(jnp.max(jnp.abs(out - ref)))
    assert err < 1e-3, f"max abs error vs reference: {err}"
    print("KERNEL_OK")
</pallas_src>

<mosaic_0001>
module attributes {stable_mosaic.version = 11 : i64} {
  func.func @_attn_map_kernel(%arg0: i32, %arg1: i32, %arg2: memref<1x48x32x32xf32, #tpu.memory_space<vmem>>, %arg3: memref<98xf32, #tpu.memory_space<smem>>, %arg4: memref<1x32x32xf32, #tpu.memory_space<vmem>>, %arg5: memref<32x32xf32, #tpu.memory_space<vmem>>, %arg6: memref<32x32xf32, #tpu.memory_space<vmem>>) attributes {dimension_semantics = [#tpu.dimension_semantics<parallel>, #tpu.dimension_semantics<arbitrary>], iteration_bounds = array<i64: 2, 2>, scalar_prefetch = 0 : i64, scratch_operands = 2 : i64, tpu.core_type = #tpu.core_type<tc>, window_params = [{transform_indices = @transform_0, window_bounds = array<i64: 1, 48, 32, 32>}, {transform_indices = @transform_1, window_bounds = array<i64: 98>}, {transform_indices = @transform_2, window_bounds = array<i64: 1, 32, 32>}]} {
    %c0 = arith.constant 0 : index
    %c0_0 = arith.constant 0 : index
    %c0_1 = arith.constant 0 : index
    %c0_2 = arith.constant 0 : index
    %0 = vector.load %arg2[%c0, %c0_0, %c0_1, %c0_2] : memref<1x48x32x32xf32, #tpu.memory_space<vmem>>, vector<1x1x32x32xf32>
    %1 = vector.shape_cast %0 : vector<1x1x32x32xf32> to vector<32x32xf32>
    %c1_i32 = arith.constant 1 : i32
    %c47_i32 = arith.constant 47 : i32
    %2 = arith.addi %c1_i32, %c47_i32 : i32
    %c1_i32_3 = arith.constant 1 : i32
    %3:2 = scf.for %arg7 = %c1_i32 to %2 step %c1_i32_3 iter_args(%arg8 = %1, %arg9 = %1) -> (vector<32x32xf32>, vector<32x32xf32>)  : i32 {
      %c0_10 = arith.constant 0 : index
      %13 = arith.index_cast %arg7 : i32 to index
      %c0_11 = arith.constant 0 : index
      %c0_12 = arith.constant 0 : index
      %14 = vector.load %arg2[%c0_10, %13, %c0_11, %c0_12] : memref<1x48x32x32xf32, #tpu.memory_space<vmem>>, vector<1x1x32x32xf32>
      %15 = vector.shape_cast %14 : vector<1x1x32x32xf32> to vector<32x32xf32>
      %16 = arith.addf %arg8, %15 : vector<32x32xf32>
      %17 = arith.maximumf %arg9, %15 : vector<32x32xf32>
      scf.yield %16, %17 : vector<32x32xf32>, vector<32x32xf32>
    }
    %c47_i32_4 = arith.constant 47 : i32
    %c0_i32 = arith.constant 0 : i32
    %4 = arith.cmpi eq, %arg1, %c0_i32 : i32
    %5 = arith.extui %4 : i1 to i32
    %c0_i32_5 = arith.constant 0 : i32
    %6 = arith.cmpi ne, %5, %c0_i32_5 : i32
    scf.if %6 {
      %c0_10 = arith.constant 0 : index
      %c0_11 = arith.constant 0 : index
      %13 = vector.load %arg5[%c0_10, %c0_11] : memref<32x32xf32, #tpu.memory_space<vmem>>, vector<32x32xf32>
      tpu.vector_store %arg5[%c0_10, %c0_11], %3#0 {strides = array<i32>} : memref<32x32xf32, #tpu.memory_space<vmem>>, vector<32x32xf32>,
      %c0_12 = arith.constant 0 : index
      %c0_13 = arith.constant 0 : index
      %14 = vector.load %arg6[%c0_12, %c0_13] : memref<32x32xf32, #tpu.memory_space<vmem>>, vector<32x32xf32>
      tpu.vector_store %arg6[%c0_12, %c0_13], %3#1 {strides = array<i32>} : memref<32x32xf32, #tpu.memory_space<vmem>>, vector<32x32xf32>,
    } else {
    }
    %c0_i32_6 = arith.constant 0 : i32
    %7 = arith.cmpi sgt, %arg1, %c0_i32_6 : i32
    %8 = arith.extui %7 : i1 to i32
    %c0_i32_7 = arith.constant 0 : i32
    %9 = arith.cmpi ne, %8, %c0_i32_7 : i32
    scf.if %9 {
      %c0_10 = arith.constant 0 : index
      %c0_11 = arith.constant 0 : index
      %13 = vector.load %arg5[%c0_10, %c0_11] : memref<32x32xf32, #tpu.memory_space<vmem>>, vector<32x32xf32>
      %14 = arith.addf %13, %3#0 : vector<32x32xf32>
      %c0_12 = arith.constant 0 : index
      %c0_13 = arith.constant 0 : index
      %15 = vector.load %arg5[%c0_12, %c0_13] : memref<32x32xf32, #tpu.memory_space<vmem>>, vector<32x32xf32>
      tpu.vector_store %arg5[%c0_12, %c0_13], %14 {strides = array<i32>} : memref<32x32xf32, #tpu.memory_space<vmem>>, vector<32x32xf32>,
      %c0_14 = arith.constant 0 : index
      %c0_15 = arith.constant 0 : index
      %16 = vector.load %arg6[%c0_14, %c0_15] : memref<32x32xf32, #tpu.memory_space<vmem>>, vector<32x32xf32>
      %17 = arith.maximumf %16, %3#1 : vector<32x32xf32>
      %c0_16 = arith.constant 0 : index
      %c0_17 = arith.constant 0 : index
      %18 = vector.load %arg6[%c0_16, %c0_17] : memref<32x32xf32, #tpu.memory_space<vmem>>, vector<32x32xf32>
      tpu.vector_store %arg6[%c0_16, %c0_17], %17 {strides = array<i32>} : memref<32x32xf32, #tpu.memory_space<vmem>>, vector<32x32xf32>,
    } else {
    }
    %c1_i32_8 = arith.constant 1 : i32
    %10 = arith.cmpi eq, %arg1, %c1_i32_8 : i32
    %11 = arith.extui %10 : i1 to i32
    %c0_i32_9 = arith.constant 0 : i32
    %12 = arith.cmpi ne, %11, %c0_i32_9 : i32
    scf.if %12 {
      %c0_10 = arith.constant 0 : index
      %c0_11 = arith.constant 0 : index
      %13 = vector.load %arg5[%c0_10, %c0_11] : memref<32x32xf32, #tpu.memory_space<vmem>>, vector<32x32xf32>
      %cst = arith.constant 0.010416667 : f32
      %14 = vector.broadcast %cst : f32 to vector<32x32xf32>
      %15 = arith.mulf %13, %14 : vector<32x32xf32>
      %c0_12 = arith.constant 0 : index
      %c0_13 = arith.constant 0 : index
      %16 = vector.load %arg6[%c0_12, %c0_13] : memref<32x32xf32, #tpu.memory_space<vmem>>, vector<32x32xf32>
      %cst_14 = arith.constant 0.000000e+00 : f32
      %17 = vector.broadcast %cst_14 : f32 to vector<3x32xf32>
      %18 = tpu.concatenate %17, %15, %17 in 0 : vector<3x32xf32>, vector<32x32xf32>, vector<3x32xf32> -> vector<38x32xf32>
      %cst_15 = arith.constant 0.000000e+00 : f32
      %19 = vector.broadcast %cst_15 : f32 to vector<38x3xf32>
      %20 = tpu.concatenate %19, %18, %19 in 1 : vector<38x3xf32>, vector<38x32xf32>, vector<38x3xf32> -> vector<38x38xf32>
      %cst_16 = arith.constant 0.000000e+00 : f32
      %21 = vector.broadcast %cst_16 : f32 to vector<3x32xf32>
      %22 = tpu.concatenate %21, %16, %21 in 0 : vector<3x32xf32>, vector<32x32xf32>, vector<3x32xf32> -> vector<38x32xf32>
      %cst_17 = arith.constant 0.000000e+00 : f32
      %23 = vector.broadcast %cst_17 : f32 to vector<38x3xf32>
      %24 = tpu.concatenate %23, %22, %23 in 1 : vector<38x3xf32>, vector<38x32xf32>, vector<38x3xf32> -> vector<38x38xf32>
      %cst_18 = arith.constant 0.000000e+00 : f32
      %25 = vector.broadcast %cst_18 : f32 to vector<32x32xf32>
      %c0_19 = arith.constant 0 : index
      %26 = memref.load %arg3[%c0_19] : memref<98xf32, #tpu.memory_space<smem>>
      %27 = vector.extract_strided_slice %20 {offsets = [0, 0], sizes = [32, 32], strides = [1, 1]} : vector<38x38xf32> to vector<32x32xf32>
      %28 = vector.broadcast %26 : f32 to vector<32x32xf32>
      %29 = arith.mulf %28, %27 : vector<32x32xf32>
      %30 = arith.addf %25, %29 : vector<32x32xf32>
      %c1 = arith.constant 1 : index
      %31 = memref.load %arg3[%c1] : memref<98xf32, #tpu.memory_space<smem>>
      %32 = vector.extract_strided_slice %20 {offsets = [0, 1], sizes = [32, 32], strides = [1, 1]} : vector<38x38xf32> to vector<32x32xf32>
      %33 = vector.broadcast %31 : f32 to vector<32x32xf32>
      %34 = arith.mulf %33, %32 : vector<32x32xf32>
      %35 = arith.addf %30, %34 : vector<32x32xf32>
      %c2 = arith.constant 2 : index
      %36 = memref.load %arg3[%c2] : memref<98xf32, #tpu.memory_space<smem>>
      %37 = vector.extract_strided_slice %20 {offsets = [0, 2], sizes = [32, 32], strides = [1, 1]} : vector<38x38xf32> to vector<32x32xf32>
      %38 = vector.broadcast %36 : f32 to vector<32x32xf32>
      %39 = arith.mulf %38, %37 : vector<32x32xf32>
      %40 = arith.addf %35, %39 : vector<32x32xf32>
      %c3 = arith.constant 3 : index
      %41 = memref.load %arg3[%c3] : memref<98xf32, #tpu.memory_space<smem>>
      %42 = vector.extract_strided_slice %20 {offsets = [0, 3], sizes = [32, 32], strides = [1, 1]} : vector<38x38xf32> to vector<32x32xf32>
      %43 = vector.broadcast %41 : f32 to vector<32x32xf32>
      %44 = arith.mulf %43, %42 : vector<32x32xf32>
      %45 = arith.addf %40, %44 : vector<32x32xf32>
      %c4 = arith.constant 4 : index
      %46 = memref.load %arg3[%c4] : memref<98xf32, #tpu.memory_space<smem>>
      %47 = vector.extract_strided_slice %20 {offsets = [0, 4], sizes = [32, 32], strides = [1, 1]} : vector<38x38xf32> to vector<32x32xf32>
      %48 = vector.broadcast %46 : f32 to vector<32x32xf32>
      %49 = arith.mulf %48, %47 : vector<32x32xf32>
      %50 = arith.addf %45, %49 : vector<32x32xf32>
      %c5 = arith.constant 5 : index
      %51 = memref.load %arg3[%c5] : memref<98xf32, #tpu.memory_space<smem>>
      %52 = vector.extract_strided_slice %20 {offsets = [0, 5], sizes = [32, 32], strides = [1, 1]} : vector<38x38xf32> to vector<32x32xf32>
      %53 = vector.broadcast %51 : f32 to vector<32x32xf32>
      %54 = arith.mulf %53, %52 : vector<32x32xf32>
      %55 = arith.addf %50, %54 : vector<32x32xf32>
      %c6 = arith.constant 6 : index
      %56 = memref.load %arg3[%c6] : memref<98xf32, #tpu.memory_space<smem>>
      %57 = vector.extract_strided_slice %20 {offsets = [0, 6], sizes = [32, 32], strides = [1, 1]} : vector<38x38xf32> to vector<32x32xf32>
      %58 = vector.broadcast %56 : f32 to vector<32x32xf32>
      %59 = arith.mulf %58, %57 : vector<32x32xf32>
      %60 = arith.addf %55, %59 : vector<32x32xf32>
      %c7 = arith.constant 7 : index
      %61 = memref.load %arg3[%c7] : memref<98xf32, #tpu.memory_space<smem>>
      %62 = vector.extract_strided_slice %20 {offsets = [1, 0], sizes = [32, 32], strides = [1, 1]} : vector<38x38xf32> to vector<32x32xf32>
      %63 = vector.broadcast %61 : f32 to vector<32x32xf32>
      %64 = arith.mulf %63, %62 : vector<32x32xf32>
      %65 = arith.addf %60, %64 : vector<32x32xf32>
      %c8 = arith.constant 8 : index
      %66 = memref.load %arg3[%c8] : memref<98xf32, #tpu.memory_space<smem>>
      %67 = vector.extract_strided_slice %20 {offsets = [1, 1], sizes = [32, 32], strides = [1, 1]} : vector<38x38xf32> to vector<32x32xf32>
      %68 = vector.broadcast %66 : f32 to vector<32x32xf32>
      %69 = arith.mulf %68, %67 : vector<32x32xf32>
      %70 = arith.addf %65, %69 : vector<32x32xf32>
      %c9 = arith.constant 9 : index
      %71 = memref.load %arg3[%c9] : memref<98xf32, #tpu.memory_space<smem>>
      %72 = vector.extract_strided_slice %20 {offsets = [1, 2], sizes = [32, 32], strides = [1, 1]} : vector<38x38xf32> to vector<32x32xf32>
      %73 = vector.broadcast %71 : f32 to vector<32x32xf32>
      %74 = arith.mulf %73, %72 : vector<32x32xf32>
      %75 = arith.addf %70, %74 : vector<32x32xf32>
      %c10 = arith.constant 10 : index
      %76 = memref.load %arg3[%c10] : memref<98xf32, #tpu.memory_space<smem>>
      %77 = vector.extract_strided_slice %20 {offsets = [1, 3], sizes = [32, 32], strides = [1, 1]} : vector<38x38xf32> to vector<32x32xf32>
      %78 = vector.broadcast %76 : f32 to vector<32x32xf32>
      %79 = arith.mulf %78, %77 : vector<32x32xf32>
      %80 = arith.addf %75, %79 : vector<32x32xf32>
      %c11 = arith.constant 11 : index
      %81 = memref.load %arg3[%c11] : memref<98xf32, #tpu.memory_space<smem>>
      %82 = vector.extract_strided_slice %20 {offsets = [1, 4], sizes = [32, 32], strides = [1, 1]} : vector<38x38xf32> to vector<32x32xf32>
      %83 = vector.broadcast %81 : f32 to vector<32x32xf32>
      %84 = arith.mulf %83, %82 : vector<32x32xf32>
      %85 = arith.addf %80, %84 : vector<32x32xf32>
      %c12 = arith.constant 12 : index
      %86 = memref.load %arg3[%c12] : memref<98xf32, #tpu.memory_space<smem>>
      %87 = vector.extract_strided_slice %20 {offsets = [1, 5], sizes = [32, 32], strides = [1, 1]} : vector<38x38xf32> to vector<32x32xf32>
      %88 = vector.broadcast %86 : f32 to vector<32x32xf32>
      %89 = arith.mulf %88, %87 : vector<32x32xf32>
      %90 = arith.addf %85, %89 : vector<32x32xf32>
      %c13 = arith.constant 13 : index
      %91 = memref.load %arg3[%c13] : memref<98xf32, #tpu.memory_space<smem>>
      %92 = vector.extract_strided_slice %20 {offsets = [1, 6], sizes = [32, 32], strides = [1, 1]} : vector<38x38xf32> to vector<32x32xf32>
      %93 = vector.broadcast %91 : f32 to vector<32x32xf32>
      %94 = arith.mulf %93, %92 : vector<32x32xf32>
      %95 = arith.addf %90, %94 : vector<32x32xf32>
      %c14 = arith.constant 14 : index
      %96 = memref.load %arg3[%c14] : memref<98xf32, #tpu.memory_space<smem>>
      %97 = vector.extract_strided_slice %20 {offsets = [2, 0], sizes = [32, 32], strides = [1, 1]} : vector<38x38xf32> to vector<32x32xf32>
      %98 = vector.broadcast %96 : f32 to vector<32x32xf32>
      %99 = arith.mulf %98, %97 : vector<32x32xf32>
      %100 = arith.addf %95, %99 : vector<32x32xf32>
      %c15 = arith.constant 15 : index
      %101 = memref.load %arg3[%c15] : memref<98xf32, #tpu.memory_space<smem>>
      %102 = vector.extract_strided_slice %20 {offsets = [2, 1], sizes = [32, 32], strides = [1, 1]} : vector<38x38xf32> to vector<32x32xf32>
      %103 = vector.broadcast %101 : f32 to vector<32x32xf32>
      %104 = arith.mulf %103, %102 : vector<32x32xf32>
      %105 = arith.addf %100, %104 : vector<32x32xf32>
      %c16 = arith.constant 16 : index
      %106 = memref.load %arg3[%c16] : memref<98xf32, #tpu.memory_space<smem>>
      %107 = vector.extract_strided_slice %20 {offsets = [2, 2], sizes = [32, 32], strides = [1, 1]} : vector<38x38xf32> to vector<32x32xf32>
      %108 = vector.broadcast %106 : f32 to vector<32x32xf32>
      %109 = arith.mulf %108, %107 : vector<32x32xf32>
      %110 = arith.addf %105, %109 : vector<32x32xf32>
      %c17 = arith.constant 17 : index
      %111 = memref.load %arg3[%c17] : memref<98xf32, #tpu.memory_space<smem>>
      %112 = vector.extract_strided_slice %20 {offsets = [2, 3], sizes = [32, 32], strides = [1, 1]} : vector<38x38xf32> to vector<32x32xf32>
      %113 = vector.broadcast %111 : f32 to vector<32x32xf32>
      %114 = arith.mulf %113, %112 : vector<32x32xf32>
      %115 = arith.addf %110, %114 : vector<32x32xf32>
      %c18 = arith.constant 18 : index
      %116 = memref.load %arg3[%c18] : memref<98xf32, #tpu.memory_space<smem>>
      %117 = vector.extract_strided_slice %20 {offsets = [2, 4], sizes = [32, 32], strides = [1, 1]} : vector<38x38xf32> to vector<32x32xf32>
      %118 = vector.broadcast %116 : f32 to vector<32x32xf32>
      %119 = arith.mulf %118, %117 : vector<32x32xf32>
      %120 = arith.addf %115, %119 : vector<32x32xf32>
      %c19 = arith.constant 19 : index
      %121 = memref.load %arg3[%c19] : memref<98xf32, #tpu.memory_space<smem>>
      %122 = vector.extract_strided_slice %20 {offsets = [2, 5], sizes = [32, 32], strides = [1, 1]} : vector<38x38xf32> to vector<32x32xf32>
      %123 = vector.broadcast %121 : f32 to vector<32x32xf32>
      %124 = arith.mulf %123, %122 : vector<32x32xf32>
      %125 = arith.addf %120, %124 : vector<32x32xf32>
      %c20 = arith.constant 20 : index
      %126 = memref.load %arg3[%c20] : memref<98xf32, #tpu.memory_space<smem>>
      %127 = vector.extract_strided_slice %20 {offsets = [2, 6], sizes = [32, 32], strides = [1, 1]} : vector<38x38xf32> to vector<32x32xf32>
      %128 = vector.broadcast %126 : f32 to vector<32x32xf32>
      %129 = arith.mulf %128, %127 : vector<32x32xf32>
      %130 = arith.addf %125, %129 : vector<32x32xf32>
      %c21 = arith.constant 21 : index
      %131 = memref.load %arg3[%c21] : memref<98xf32, #tpu.memory_space<smem>>
      %132 = vector.extract_strided_slice %20 {offsets = [3, 0], sizes = [32, 32], strides = [1, 1]} : vector<38x38xf32> to vector<32x32xf32>
      %133 = vector.broadcast %131 : f32 to vector<32x32xf32>
      %134 = arith.mulf %133, %132 : vector<32x32xf32>
      %135 = arith.addf %130, %134 : vector<32x32xf32>
      %c22 = arith.constant 22 : index
      %136 = memref.load %arg3[%c22] : memref<98xf32, #tpu.memory_space<smem>>
      %137 = vector.extract_strided_slice %20 {offsets = [3, 1], sizes = [32, 32], strides = [1, 1]} : vector<38x38xf32> to vector<32x32xf32>
      %138 = vector.broadcast %136 : f32 to vector<32x32xf32>
      %139 = arith.mulf %138, %137 : vector<32x32xf32>
      %140 = arith.addf %135, %139 : vector<32x32xf32>
      %c23 = arith.constant 23 : index
      %141 = memref.load %arg3[%c23] : memref<98xf32, #tpu.memory_space<smem>>
      %142 = vector.extract_strided_slice %20 {offsets = [3, 2], sizes = [32, 32], strides = [1, 1]} : vector<38x38xf32> to vector<32x32xf32>
      %143 = vector.broadcast %141 : f32 to vector<32x32xf32>
      %144 = arith.mulf %143, %142 : vector<32x32xf32>
      %145 = arith.addf %140, %144 : vector<32x32xf32>
      %c24 = arith.constant 24 : index
      %146 = memref.load %arg3[%c24] : memref<98xf32, #tpu.memory_space<smem>>
      %147 = vector.extract_strided_slice %20 {offsets = [3, 3], sizes = [32, 32], strides = [1, 1]} : vector<38x38xf32> to vector<32x32xf32>
      %148 = vector.broadcast %146 : f32 to vector<32x32xf32>
      %149 = arith.mulf %148, %147 : vector<32x32xf32>
      %150 = arith.addf %145, %149 : vector<32x32xf32>
      %c25 = arith.constant 25 : index
      %151 = memref.load %arg3[%c25] : memref<98xf32, #tpu.memory_space<smem>>
      %152 = vector.extract_strided_slice %20 {offsets = [3, 4], sizes = [32, 32], strides = [1, 1]} : vector<38x38xf32> to vector<32x32xf32>
      %153 = vector.broadcast %151 : f32 to vector<32x32xf32>
      %154 = arith.mulf %153, %152 : vector<32x32xf32>
      %155 = arith.addf %150, %154 : vector<32x32xf32>
      %c26 = arith.constant 26 : index
      %156 = memref.load %arg3[%c26] : memref<98xf32, #tpu.memory_space<smem>>
      %157 = vector.extract_strided_slice %20 {offsets = [3, 5], sizes = [32, 32], strides = [1, 1]} : vector<38x38xf32> to vector<32x32xf32>
      %158 = vector.broadcast %156 : f32 to vector<32x32xf32>
      %159 = arith.mulf %158, %157 : vector<32x32xf32>
      %160 = arith.addf %155, %159 : vector<32x32xf32>
      %c27 = arith.constant 27 : index
      %161 = memref.load %arg3[%c27] : memref<98xf32, #tpu.memory_space<smem>>
      %162 = vector.extract_strided_slice %20 {offsets = [3, 6], sizes = [32, 32], strides = [1, 1]} : vector<38x38xf32> to vector<32x32xf32>
      %163 = vector.broadcast %161 : f32 to vector<32x32xf32>
      %164 = arith.mulf %163, %162 : vector<32x32xf32>
      %165 = arith.addf %160, %164 : vector<32x32xf32>
      %c28 = arith.constant 28 : index
      %166 = memref.load %arg3[%c28] : memref<98xf32, #tpu.memory_space<smem>>
      %167 = vector.extract_strided_slice %20 {offsets = [4, 0], sizes = [32, 32], strides = [1, 1]} : vector<38x38xf32> to vector<32x32xf32>
      %168 = vector.broadcast %166 : f32 to vector<32x32xf32>
      %169 = arith.mulf %168, %167 : vector<32x32xf32>
      %170 = arith.addf %165, %169 : vector<32x32xf32>
      %c29 = arith.constant 29 : index
      %171 = memref.load %arg3[%c29] : memref<98xf32, #tpu.memory_space<smem>>
      %172 = vector.extract_strided_slice %20 {offsets = [4, 1], sizes = [32, 32], strides = [1, 1]} : vector<38x38xf32> to vector<32x32xf32>
      %173 = vector.broadcast %171 : f32 to vector<32x32xf32>
      %174 = arith.mulf %173, %172 : vector<32x32xf32>
      %175 = arith.addf %170, %174 : vector<32x32xf32>
      %c30 = arith.constant 30 : index
      %176 = memref.load %arg3[%c30] : memref<98xf32, #tpu.memory_space<smem>>
      %177 = vector.extract_strided_slice %20 {offsets = [4, 2], sizes = [32, 32], strides = [1, 1]} : vector<38x38xf32> to vector<32x32xf32>
      %178 = vector.broadcast %176 : f32 to vector<32x32xf32>
      %179 = arith.mulf %178, %177 : vector<32x32xf32>
      %180 = arith.addf %175, %179 : vector<32x32xf32>
      %c31 = arith.constant 31 : index
      %181 = memref.load %arg3[%c31] : memref<98xf32, #tpu.memory_space<smem>>
      %182 = vector.extract_strided_slice %20 {offsets = [4, 3], sizes = [32, 32], strides = [1, 1]} : vector<38x38xf32> to vector<32x32xf32>
      %183 = vector.broadcast %181 : f32 to vector<32x32xf32>
      %184 = arith.mulf %183, %182 : vector<32x32xf32>
      %185 = arith.addf %180, %184 : vector<32x32xf32>
      %c32 = arith.constant 32 : index
      %186 = memref.load %arg3[%c32] : memref<98xf32, #tpu.memory_space<smem>>
      %187 = vector.extract_strided_slice %20 {offsets = [4, 4], sizes = [32, 32], strides = [1, 1]} : vector<38x38xf32> to vector<32x32xf32>
      %188 = vector.broadcast %186 : f32 to vector<32x32xf32>
      %189 = arith.mulf %188, %187 : vector<32x32xf32>
      %190 = arith.addf %185, %189 : vector<32x32xf32>
      %c33 = arith.constant 33 : index
      %191 = memref.load %arg3[%c33] : memref<98xf32, #tpu.memory_space<smem>>
      %192 = vector.extract_strided_slice %20 {offsets = [4, 5], sizes = [32, 32], strides = [1, 1]} : vector<38x38xf32> to vector<32x32xf32>
      %193 = vector.broadcast %191 : f32 to vector<32x32xf32>
      %194 = arith.mulf %193, %192 : vector<32x32xf32>
      %195 = arith.addf %190, %194 : vector<32x32xf32>
      %c34 = arith.constant 34 : index
      %196 = memref.load %arg3[%c34] : memref<98xf32, #tpu.memory_space<smem>>
      %197 = vector.extract_strided_slice %20 {offsets = [4, 6], sizes = [32, 32], strides = [1, 1]} : vector<38x38xf32> to vector<32x32xf32>
      %198 = vector.broadcast %196 : f32 to vector<32x32xf32>
      %199 = arith.mulf %198, %197 : vector<32x32xf32>
      %200 = arith.addf %195, %199 : vector<32x32xf32>
      %c35 = arith.constant 35 : index
      %201 = memref.load %arg3[%c35] : memref<98xf32, #tpu.memory_space<smem>>
      %202 = vector.extract_strided_slice %20 {offsets = [5, 0], sizes = [32, 32], strides = [1, 1]} : vector<38x38xf32> to vector<32x32xf32>
      %203 = vector.broadcast %201 : f32 to vector<32x32xf32>
      %204 = arith.mulf %203, %202 : vector<32x32xf32>
      %205 = arith.addf %200, %204 : vector<32x32xf32>
      %c36 = arith.constant 36 : index
      %206 = memref.load %arg3[%c36] : memref<98xf32, #tpu.memory_space<smem>>
      %207 = vector.extract_strided_slice %20 {offsets = [5, 1], sizes = [32, 32], strides = [1, 1]} : vector<38x38xf32> to vector<32x32xf32>
      %208 = vector.broadcast %206 : f32 to vector<32x32xf32>
      %209 = arith.mulf %208, %207 : vector<32x32xf32>
      %210 = arith.addf %205, %209 : vector<32x32xf32>
      %c37 = arith.constant 37 : index
      %211 = memref.load %arg3[%c37] : memref<98xf32, #tpu.memory_space<smem>>
      %212 = vector.extract_strided_slice %20 {offsets = [5, 2], sizes = [32, 32], strides = [1, 1]} : vector<38x38xf32> to vector<32x32xf32>
      %213 = vector.broadcast %211 : f32 to vector<32x32xf32>
      %214 = arith.mulf %213, %212 : vector<32x32xf32>
      %215 = arith.addf %210, %214 : vector<32x32xf32>
      %c38 = arith.constant 38 : index
      %216 = memref.load %arg3[%c38] : memref<98xf32, #tpu.memory_space<smem>>
      %217 = vector.extract_strided_slice %20 {offsets = [5, 3], sizes = [32, 32], strides = [1, 1]} : vector<38x38xf32> to vector<32x32xf32>
      %218 = vector.broadcast %216 : f32 to vector<32x32xf32>
      %219 = arith.mulf %218, %217 : vector<32x32xf32>
      %220 = arith.addf %215, %219 : vector<32x32xf32>
      %c39 = arith.constant 39 : index
      %221 = memref.load %arg3[%c39] : memref<98xf32, #tpu.memory_space<smem>>
      %222 = vector.extract_strided_slice %20 {offsets = [5, 4], sizes = [32, 32], strides = [1, 1]} : vector<38x38xf32> to vector<32x32xf32>
      %223 = vector.broadcast %221 : f32 to vector<32x32xf32>
      %224 = arith.mulf %223, %222 : vector<32x32xf32>
      %225 = arith.addf %220, %224 : vector<32x32xf32>
      %c40 = arith.constant 40 : index
      %226 = memref.load %arg3[%c40] : memref<98xf32, #tpu.memory_space<smem>>
      %227 = vector.extract_strided_slice %20 {offsets = [5, 5], sizes = [32, 32], strides = [1, 1]} : vector<38x38xf32> to vector<32x32xf32>
      %228 = vector.broadcast %226 : f32 to vector<32x32xf32>
      %229 = arith.mulf %228, %227 : vector<32x32xf32>
      %230 = arith.addf %225, %229 : vector<32x32xf32>
      %c41 = arith.constant 41 : index
      %231 = memref.load %arg3[%c41] : memref<98xf32, #tpu.memory_space<smem>>
      %232 = vector.extract_strided_slice %20 {offsets = [5, 6], sizes = [32, 32], strides = [1, 1]} : vector<38x38xf32> to vector<32x32xf32>
      %233 = vector.broadcast %231 : f32 to vector<32x32xf32>
      %234 = arith.mulf %233, %232 : vector<32x32xf32>
      %235 = arith.addf %230, %234 : vector<32x32xf32>
      %c42 = arith.constant 42 : index
      %236 = memref.load %arg3[%c42] : memref<98xf32, #tpu.memory_space<smem>>
      %237 = vector.extract_strided_slice %20 {offsets = [6, 0], sizes = [32, 32], strides = [1, 1]} : vector<38x38xf32> to vector<32x32xf32>
      %238 = vector.broadcast %236 : f32 to vector<32x32xf32>
      %239 = arith.mulf %238, %237 : vector<32x32xf32>
      %240 = arith.addf %235, %239 : vector<32x32xf32>
      %c43 = arith.constant 43 : index
      %241 = memref.load %arg3[%c43] : memref<98xf32, #tpu.memory_space<smem>>
      %242 = vector.extract_strided_slice %20 {offsets = [6, 1], sizes = [32, 32], strides = [1, 1]} : vector<38x38xf32> to vector<32x32xf32>
      %243 = vector.broadcast %241 : f32 to vector<32x32xf32>
      %244 = arith.mulf %243, %242 : vector<32x32xf32>
      %245 = arith.addf %240, %244 : vector<32x32xf32>
      %c44 = arith.constant 44 : index
      %246 = memref.load %arg3[%c44] : memref<98xf32, #tpu.memory_space<smem>>
      %247 = vector.extract_strided_slice %20 {offsets = [6, 2], sizes = [32, 32], strides = [1, 1]} : vector<38x38xf32> to vector<32x32xf32>
      %248 = vector.broadcast %246 : f32 to vector<32x32xf32>
      %249 = arith.mulf %248, %247 : vector<32x32xf32>
      %250 = arith.addf %245, %249 : vector<32x32xf32>
      %c45 = arith.constant 45 : index
      %251 = memref.load %arg3[%c45] : memref<98xf32, #tpu.memory_space<smem>>
      %252 = vector.extract_strided_slice %20 {offsets = [6, 3], sizes = [32, 32], strides = [1, 1]} : vector<38x38xf32> to vector<32x32xf32>
      %253 = vector.broadcast %251 : f32 to vector<32x32xf32>
      %254 = arith.mulf %253, %252 : vector<32x32xf32>
      %255 = arith.addf %250, %254 : vector<32x32xf32>
      %c46 = arith.constant 46 : index
      %256 = memref.load %arg3[%c46] : memref<98xf32, #tpu.memory_space<smem>>
      %257 = vector.extract_strided_slice %20 {offsets = [6, 4], sizes = [32, 32], strides = [1, 1]} : vector<38x38xf32> to vector<32x32xf32>
      %258 = vector.broadcast %256 : f32 to vector<32x32xf32>
      %259 = arith.mulf %258, %257 : vector<32x32xf32>
      %260 = arith.addf %255, %259 : vector<32x32xf32>
      %c47 = arith.constant 47 : index
      %261 = memref.load %arg3[%c47] : memref<98xf32, #tpu.memory_space<smem>>
      %262 = vector.extract_strided_slice %20 {offsets = [6, 5], sizes = [32, 32], strides = [1, 1]} : vector<38x38xf32> to vector<32x32xf32>
      %263 = vector.broadcast %261 : f32 to vector<32x32xf32>
      %264 = arith.mulf %263, %262 : vector<32x32xf32>
      %265 = arith.addf %260, %264 : vector<32x32xf32>
      %c48 = arith.constant 48 : index
      %266 = memref.load %arg3[%c48] : memref<98xf32, #tpu.memory_space<smem>>
      %267 = vector.extract_strided_slice %20 {offsets = [6, 6], sizes = [32, 32], strides = [1, 1]} : vector<38x38xf32> to vector<32x32xf32>
      %268 = vector.broadcast %266 : f32 to vector<32x32xf32>
      %269 = arith.mulf %268, %267 : vector<32x32xf32>
      %270 = arith.addf %265, %269 : vector<32x32xf32>
      %c49 = arith.constant 49 : index
      %271 = memref.load %arg3[%c49] : memref<98xf32, #tpu.memory_space<smem>>
      %272 = vector.extract_strided_slice %24 {offsets = [0, 0], sizes = [32, 32], strides = [1, 1]} : vector<38x38xf32> to vector<32x32xf32>
      %273 = vector.broadcast %271 : f32 to vector<32x32xf32>
      %274 = arith.mulf %273, %272 : vector<32x32xf32>
      %275 = arith.addf %270, %274 : vector<32x32xf32>
      %c50 = arith.constant 50 : index
      %276 = memref.load %arg3[%c50] : memref<98xf32, #tpu.memory_space<smem>>
      %277 = vector.extract_strided_slice %24 {offsets = [0, 1], sizes = [32, 32], strides = [1, 1]} : vector<38x38xf32> to vector<32x32xf32>
      %278 = vector.broadcast %276 : f32 to vector<32x32xf32>
      %279 = arith.mulf %278, %277 : vector<32x32xf32>
      %280 = arith.addf %275, %279 : vector<32x32xf32>
      %c51 = arith.constant 51 : index
      %281 = memref.load %arg3[%c51] : memref<98xf32, #tpu.memory_space<smem>>
      %282 = vector.extract_strided_slice %24 {offsets = [0, 2], sizes = [32, 32], strides = [1, 1]} : vector<38x38xf32> to vector<32x32xf32>
      %283 = vector.broadcast %281 : f32 to vector<32x32xf32>
      %284 = arith.mulf %283, %282 : vector<32x32xf32>
      %285 = arith.addf %280, %284 : vector<32x32xf32>
      %c52 = arith.constant 52 : index
      %286 = memref.load %arg3[%c52] : memref<98xf32, #tpu.memory_space<smem>>
      %287 = vector.extract_strided_slice %24 {offsets = [0, 3], sizes = [32, 32], strides = [1, 1]} : vector<38x38xf32> to vector<32x32xf32>
      %288 = vector.broadcast %286 : f32 to vector<32x32xf32>
      %289 = arith.mulf %288, %287 : vector<32x32xf32>
      %290 = arith.addf %285, %289 : vector<32x32xf32>
      %c53 = arith.constant 53 : index
      %291 = memref.load %arg3[%c53] : memref<98xf32, #tpu.memory_space<smem>>
      %292 = vector.extract_strided_slice %24 {offsets = [0, 4], sizes = [32, 32], strides = [1, 1]} : vector<38x38xf32> to vector<32x32xf32>
      %293 = vector.broadcast %291 : f32 to vector<32x32xf32>
      %294 = arith.mulf %293, %292 : vector<32x32xf32>
      %295 = arith.addf %290, %294 : vector<32x32xf32>
      %c54 = arith.constant 54 : index
      %296 = memref.load %arg3[%c54] : memref<98xf32, #tpu.memory_space<smem>>
      %297 = vector.extract_strided_slice %24 {offsets = [0, 5], sizes = [32, 32], strides = [1, 1]} : vector<38x38xf32> to vector<32x32xf32>
      %298 = vector.broadcast %296 : f32 to vector<32x32xf32>
      %299 = arith.mulf %298, %297 : vector<32x32xf32>
      %300 = arith.addf %295, %299 : vector<32x32xf32>
      %c55 = arith.constant 55 : index
      %301 = memref.load %arg3[%c55] : memref<98xf32, #tpu.memory_space<smem>>
      %302 = vector.extract_strided_slice %24 {offsets = [0, 6], sizes = [32, 32], strides = [1, 1]} : vector<38x38xf32> to vector<32x32xf32>
      %303 = vector.broadcast %301 : f32 to vector<32x32xf32>
      %304 = arith.mulf %303, %302 : vector<32x32xf32>
      %305 = arith.addf %300, %304 : vector<32x32xf32>
      %c56 = arith.constant 56 : index
      %306 = memref.load %arg3[%c56] : memref<98xf32, #tpu.memory_space<smem>>
      %307 = vector.extract_strided_slice %24 {offsets = [1, 0], sizes = [32, 32], strides = [1, 1]} : vector<38x38xf32> to vector<32x32xf32>
      %308 = vector.broadcast %306 : f32 to vector<32x32xf32>
      %309 = arith.mulf %308, %307 : vector<32x32xf32>
      %310 = arith.addf %305, %309 : vector<32x32xf32>
      %c57 = arith.constant 57 : index
      %311 = memref.load %arg3[%c57] : memref<98xf32, #tpu.memory_space<smem>>
      %312 = vector.extract_strided_slice %24 {offsets = [1, 1], sizes = [32, 32], strides = [1, 1]} : vector<38x38xf32> to vector<32x32xf32>
      %313 = vector.broadcast %311 : f32 to vector<32x32xf32>
      %314 = arith.mulf %313, %312 : vector<32x32xf32>
      %315 = arith.addf %310, %314 : vector<32x32xf32>
      %c58 = arith.constant 58 : index
      %316 = memref.load %arg3[%c58] : memref<98xf32, #tpu.memory_space<smem>>
      %317 = vector.extract_strided_slice %24 {offsets = [1, 2], sizes = [32, 32], strides = [1, 1]} : vector<38x38xf32> to vector<32x32xf32>
      %318 = vector.broadcast %316 : f32 to vector<32x32xf32>
      %319 = arith.mulf %318, %317 : vector<32x32xf32>
      %320 = arith.addf %315, %319 : vector<32x32xf32>
      %c59 = arith.constant 59 : index
      %321 = memref.load %arg3[%c59] : memref<98xf32, #tpu.memory_space<smem>>
      %322 = vector.extract_strided_slice %24 {offsets = [1, 3], sizes = [32, 32], strides = [1, 1]} : vector<38x38xf32> to vector<32x32xf32>
      %323 = vector.broadcast %321 : f32 to vector<32x32xf32>
      %324 = arith.mulf %323, %322 : vector<32x32xf32>
      %325 = arith.addf %320, %324 : vector<32x32xf32>
      %c60 = arith.constant 60 : index
      %326 = memref.load %arg3[%c60] : memref<98xf32, #tpu.memory_space<smem>>
      %327 = vector.extract_strided_slice %24 {offsets = [1, 4], sizes = [32, 32], strides = [1, 1]} : vector<38x38xf32> to vector<32x32xf32>
      %328 = vector.broadcast %326 : f32 to vector<32x32xf32>
      %329 = arith.mulf %328, %327 : vector<32x32xf32>
      %330 = arith.addf %325, %329 : vector<32x32xf32>
      %c61 = arith.constant 61 : index
      %331 = memref.load %arg3[%c61] : memref<98xf32, #tpu.memory_space<smem>>
      %332 = vector.extract_strided_slice %24 {offsets = [1, 5], sizes = [32, 32], strides = [1, 1]} : vector<38x38xf32> to vector<32x32xf32>
      %333 = vector.broadcast %331 : f32 to vector<32x32xf32>
      %334 = arith.mulf %333, %332 : vector<32x32xf32>
      %335 = arith.addf %330, %334 : vector<32x32xf32>
      %c62 = arith.constant 62 : index
      %336 = memref.load %arg3[%c62] : memref<98xf32, #tpu.memory_space<smem>>
      %337 = vector.extract_strided_slice %24 {offsets = [1, 6], sizes = [32, 32], strides = [1, 1]} : vector<38x38xf32> to vector<32x32xf32>
      %338 = vector.broadcast %336 : f32 to vector<32x32xf32>
      %339 = arith.mulf %338, %337 : vector<32x32xf32>
      %340 = arith.addf %335, %339 : vector<32x32xf32>
      %c63 = arith.constant 63 : index
      %341 = memref.load %arg3[%c63] : memref<98xf32, #tpu.memory_space<smem>>
      %342 = vector.extract_strided_slice %24 {offsets = [2, 0], sizes = [32, 32], strides = [1, 1]} : vector<38x38xf32> to vector<32x32xf32>
      %343 = vector.broadcast %341 : f32 to vector<32x32xf32>
      %344 = arith.mulf %343, %342 : vector<32x32xf32>
      %345 = arith.addf %340, %344 : vector<32x32xf32>
      %c64 = arith.constant 64 : index
      %346 = memref.load %arg3[%c64] : memref<98xf32, #tpu.memory_space<smem>>
      %347 = vector.extract_strided_slice %24 {offsets = [2, 1], sizes = [32, 32], strides = [1, 1]} : vector<38x38xf32> to vector<32x32xf32>
      %348 = vector.broadcast %346 : f32 to vector<32x32xf32>
      %349 = arith.mulf %348, %347 : vector<32x32xf32>
      %350 = arith.addf %345, %349 : vector<32x32xf32>
      %c65 = arith.constant 65 : index
      %351 = memref.load %arg3[%c65] : memref<98xf32, #tpu.memory_space<smem>>
      %352 = vector.extract_strided_slice %24 {offsets = [2, 2], sizes = [32, 32], strides = [1, 1]} : vector<38x38xf32> to vector<32x32xf32>
      %353 = vector.broadcast %351 : f32 to vector<32x32xf32>
      %354 = arith.mulf %353, %352 : vector<32x32xf32>
      %355 = arith.addf %350, %354 : vector<32x32xf32>
      %c66 = arith.constant 66 : index
      %356 = memref.load %arg3[%c66] : memref<98xf32, #tpu.memory_space<smem>>
      %357 = vector.extract_strided_slice %24 {offsets = [2, 3], sizes = [32, 32], strides = [1, 1]} : vector<38x38xf32> to vector<32x32xf32>
      %358 = vector.broadcast %356 : f32 to vector<32x32xf32>
      %359 = arith.mulf %358, %357 : vector<32x32xf32>
      %360 = arith.addf %355, %359 : vector<32x32xf32>
      %c67 = arith.constant 67 : index
      %361 = memref.load %arg3[%c67] : memref<98xf32, #tpu.memory_space<smem>>
      %362 = vector.extract_strided_slice %24 {offsets = [2, 4], sizes = [32, 32], strides = [1, 1]} : vector<38x38xf32> to vector<32x32xf32>
      %363 = vector.broadcast %361 : f32 to vector<32x32xf32>
      %364 = arith.mulf %363, %362 : vector<32x32xf32>
      %365 = arith.addf %360, %364 : vector<32x32xf32>
      %c68 = arith.constant 68 : index
      %366 = memref.load %arg3[%c68] : memref<98xf32, #tpu.memory_space<smem>>
      %367 = vector.extract_strided_slice %24 {offsets = [2, 5], sizes = [32, 32], strides = [1, 1]} : vector<38x38xf32> to vector<32x32xf32>
      %368 = vector.broadcast %366 : f32 to vector<32x32xf32>
      %369 = arith.mulf %368, %367 : vector<32x32xf32>
      %370 = arith.addf %365, %369 : vector<32x32xf32>
      %c69 = arith.constant 69 : index
      %371 = memref.load %arg3[%c69] : memref<98xf32, #tpu.memory_space<smem>>
      %372 = vector.extract_strided_slice %24 {offsets = [2, 6], sizes = [32, 32], strides = [1, 1]} : vector<38x38xf32> to vector<32x32xf32>
      %373 = vector.broadcast %371 : f32 to vector<32x32xf32>
      %374 = arith.mulf %373, %372 : vector<32x32xf32>
      %375 = arith.addf %370, %374 : vector<32x32xf32>
      %c70 = arith.constant 70 : index
      %376 = memref.load %arg3[%c70] : memref<98xf32, #tpu.memory_space<smem>>
      %377 = vector.extract_strided_slice %24 {offsets = [3, 0], sizes = [32, 32], strides = [1, 1]} : vector<38x38xf32> to vector<32x32xf32>
      %378 = vector.broadcast %376 : f32 to vector<32x32xf32>
      %379 = arith.mulf %378, %377 : vector<32x32xf32>
      %380 = arith.addf %375, %379 : vector<32x32xf32>
      %c71 = arith.constant 71 : index
      %381 = memref.load %arg3[%c71] : memref<98xf32, #tpu.memory_space<smem>>
      %382 = vector.extract_strided_slice %24 {offsets = [3, 1], sizes = [32, 32], strides = [1, 1]} : vector<38x38xf32> to vector<32x32xf32>
      %383 = vector.broadcast %381 : f32 to vector<32x32xf32>
      %384 = arith.mulf %383, %382 : vector<32x32xf32>
      %385 = arith.addf %380, %384 : vector<32x32xf32>
      %c72 = arith.constant 72 : index
      %386 = memref.load %arg3[%c72] : memref<98xf32, #tpu.memory_space<smem>>
      %387 = vector.extract_strided_slice %24 {offsets = [3, 2], sizes = [32, 32], strides = [1, 1]} : vector<38x38xf32> to vector<32x32xf32>
      %388 = vector.broadcast %386 : f32 to vector<32x32xf32>
      %389 = arith.mulf %388, %387 : vector<32x32xf32>
      %390 = arith.addf %385, %389 : vector<32x32xf32>
      %c73 = arith.constant 73 : index
      %391 = memref.load %arg3[%c73] : memref<98xf32, #tpu.memory_space<smem>>
      %392 = vector.extract_strided_slice %24 {offsets = [3, 3], sizes = [32, 32], strides = [1, 1]} : vector<38x38xf32> to vector<32x32xf32>
      %393 = vector.broadcast %391 : f32 to vector<32x32xf32>
      %394 = arith.mulf %393, %392 : vector<32x32xf32>
      %395 = arith.addf %390, %394 : vector<32x32xf32>
      %c74 = arith.constant 74 : index
      %396 = memref.load %arg3[%c74] : memref<98xf32, #tpu.memory_space<smem>>
      %397 = vector.extract_strided_slice %24 {offsets = [3, 4], sizes = [32, 32], strides = [1, 1]} : vector<38x38xf32> to vector<32x32xf32>
      %398 = vector.broadcast %396 : f32 to vector<32x32xf32>
      %399 = arith.mulf %398, %397 : vector<32x32xf32>
      %400 = arith.addf %395, %399 : vector<32x32xf32>
      %c75 = arith.constant 75 : index
      %401 = memref.load %arg3[%c75] : memref<98xf32, #tpu.memory_space<smem>>
      %402 = vector.extract_strided_slice %24 {offsets = [3, 5], sizes = [32, 32], strides = [1, 1]} : vector<38x38xf32> to vector<32x32xf32>
      %403 = vector.broadcast %401 : f32 to vector<32x32xf32>
      %404 = arith.mulf %403, %402 : vector<32x32xf32>
      %405 = arith.addf %400, %404 : vector<32x32xf32>
      %c76 = arith.constant 76 : index
      %406 = memref.load %arg3[%c76] : memref<98xf32, #tpu.memory_space<smem>>
      %407 = vector.extract_strided_slice %24 {offsets = [3, 6], sizes = [32, 32], strides = [1, 1]} : vector<38x38xf32> to vector<32x32xf32>
      %408 = vector.broadcast %406 : f32 to vector<32x32xf32>
      %409 = arith.mulf %408, %407 : vector<32x32xf32>
      %410 = arith.addf %405, %409 : vector<32x32xf32>
      %c77 = arith.constant 77 : index
      %411 = memref.load %arg3[%c77] : memref<98xf32, #tpu.memory_space<smem>>
      %412 = vector.extract_strided_slice %24 {offsets = [4, 0], sizes = [32, 32], strides = [1, 1]} : vector<38x38xf32> to vector<32x32xf32>
      %413 = vector.broadcast %411 : f32 to vector<32x32xf32>
      %414 = arith.mulf %413, %412 : vector<32x32xf32>
      %415 = arith.addf %410, %414 : vector<32x32xf32>
      %c78 = arith.constant 78 : index
      %416 = memref.load %arg3[%c78] : memref<98xf32, #tpu.memory_space<smem>>
      %417 = vector.extract_strided_slice %24 {offsets = [4, 1], sizes = [32, 32], strides = [1, 1]} : vector<38x38xf32> to vector<32x32xf32>
      %418 = vector.broadcast %416 : f32 to vector<32x32xf32>
      %419 = arith.mulf %418, %417 : vector<32x32xf32>
      %420 = arith.addf %415, %419 : vector<32x32xf32>
      %c79 = arith.constant 79 : index
      %421 = memref.load %arg3[%c79] : memref<98xf32, #tpu.memory_space<smem>>
      %422 = vector.extract_strided_slice %24 {offsets = [4, 2], sizes = [32, 32], strides = [1, 1]} : vector<38x38xf32> to vector<32x32xf32>
      %423 = vector.broadcast %421 : f32 to vector<32x32xf32>
      %424 = arith.mulf %423, %422 : vector<32x32xf32>
      %425 = arith.addf %420, %424 : vector<32x32xf32>
      %c80 = arith.constant 80 : index
      %426 = memref.load %arg3[%c80] : memref<98xf32, #tpu.memory_space<smem>>
      %427 = vector.extract_strided_slice %24 {offsets = [4, 3], sizes = [32, 32], strides = [1, 1]} : vector<38x38xf32> to vector<32x32xf32>
      %428 = vector.broadcast %426 : f32 to vector<32x32xf32>
      %429 = arith.mulf %428, %427 : vector<32x32xf32>
      %430 = arith.addf %425, %429 : vector<32x32xf32>
      %c81 = arith.constant 81 : index
      %431 = memref.load %arg3[%c81] : memref<98xf32, #tpu.memory_space<smem>>
      %432 = vector.extract_strided_slice %24 {offsets = [4, 4], sizes = [32, 32], strides = [1, 1]} : vector<38x38xf32> to vector<32x32xf32>
      %433 = vector.broadcast %431 : f32 to vector<32x32xf32>
      %434 = arith.mulf %433, %432 : vector<32x32xf32>
      %435 = arith.addf %430, %434 : vector<32x32xf32>
      %c82 = arith.constant 82 : index
      %436 = memref.load %arg3[%c82] : memref<98xf32, #tpu.memory_space<smem>>
      %437 = vector.extract_strided_slice %24 {offsets = [4, 5], sizes = [32, 32], strides = [1, 1]} : vector<38x38xf32> to vector<32x32xf32>
      %438 = vector.broadcast %436 : f32 to vector<32x32xf32>
      %439 = arith.mulf %438, %437 : vector<32x32xf32>
      %440 = arith.addf %435, %439 : vector<32x32xf32>
      %c83 = arith.constant 83 : index
      %441 = memref.load %arg3[%c83] : memref<98xf32, #tpu.memory_space<smem>>
      %442 = vector.extract_strided_slice %24 {offsets = [4, 6], sizes = [32, 32], strides = [1, 1]} : vector<38x38xf32> to vector<32x32xf32>
      %443 = vector.broadcast %441 : f32 to vector<32x32xf32>
      %444 = arith.mulf %443, %442 : vector<32x32xf32>
      %445 = arith.addf %440, %444 : vector<32x32xf32>
      %c84 = arith.constant 84 : index
      %446 = memref.load %arg3[%c84] : memref<98xf32, #tpu.memory_space<smem>>
      %447 = vector.extract_strided_slice %24 {offsets = [5, 0], sizes = [32, 32], strides = [1, 1]} : vector<38x38xf32> to vector<32x32xf32>
      %448 = vector.broadcast %446 : f32 to vector<32x32xf32>
      %449 = arith.mulf %448, %447 : vector<32x32xf32>
      %450 = arith.addf %445, %449 : vector<32x32xf32>
      %c85 = arith.constant 85 : index
      %451 = memref.load %arg3[%c85] : memref<98xf32, #tpu.memory_space<smem>>
      %452 = vector.extract_strided_slice %24 {offsets = [5, 1], sizes = [32, 32], strides = [1, 1]} : vector<38x38xf32> to vector<32x32xf32>
      %453 = vector.broadcast %451 : f32 to vector<32x32xf32>
      %454 = arith.mulf %453, %452 : vector<32x32xf32>
      %455 = arith.addf %450, %454 : vector<32x32xf32>
      %c86 = arith.constant 86 : index
      %456 = memref.load %arg3[%c86] : memref<98xf32, #tpu.memory_space<smem>>
      %457 = vector.extract_strided_slice %24 {offsets = [5, 2], sizes = [32, 32], strides = [1, 1]} : vector<38x38xf32> to vector<32x32xf32>
      %458 = vector.broadcast %456 : f32 to vector<32x32xf32>
      %459 = arith.mulf %458, %457 : vector<32x32xf32>
      %460 = arith.addf %455, %459 : vector<32x32xf32>
      %c87 = arith.constant 87 : index
      %461 = memref.load %arg3[%c87] : memref<98xf32, #tpu.memory_space<smem>>
      %462 = vector.extract_strided_slice %24 {offsets = [5, 3], sizes = [32, 32], strides = [1, 1]} : vector<38x38xf32> to vector<32x32xf32>
      %463 = vector.broadcast %461 : f32 to vector<32x32xf32>
      %464 = arith.mulf %463, %462 : vector<32x32xf32>
      %465 = arith.addf %460, %464 : vector<32x32xf32>
      %c88 = arith.constant 88 : index
      %466 = memref.load %arg3[%c88] : memref<98xf32, #tpu.memory_space<smem>>
      %467 = vector.extract_strided_slice %24 {offsets = [5, 4], sizes = [32, 32], strides = [1, 1]} : vector<38x38xf32> to vector<32x32xf32>
      %468 = vector.broadcast %466 : f32 to vector<32x32xf32>
      %469 = arith.mulf %468, %467 : vector<32x32xf32>
      %470 = arith.addf %465, %469 : vector<32x32xf32>
      %c89 = arith.constant 89 : index
      %471 = memref.load %arg3[%c89] : memref<98xf32, #tpu.memory_space<smem>>
      %472 = vector.extract_strided_slice %24 {offsets = [5, 5], sizes = [32, 32], strides = [1, 1]} : vector<38x38xf32> to vector<32x32xf32>
      %473 = vector.broadcast %471 : f32 to vector<32x32xf32>
      %474 = arith.mulf %473, %472 : vector<32x32xf32>
      %475 = arith.addf %470, %474 : vector<32x32xf32>
      %c90 = arith.constant 90 : index
      %476 = memref.load %arg3[%c90] : memref<98xf32, #tpu.memory_space<smem>>
      %477 = vector.extract_strided_slice %24 {offsets = [5, 6], sizes = [32, 32], strides = [1, 1]} : vector<38x38xf32> to vector<32x32xf32>
      %478 = vector.broadcast %476 : f32 to vector<32x32xf32>
      %479 = arith.mulf %478, %477 : vector<32x32xf32>
      %480 = arith.addf %475, %479 : vector<32x32xf32>
      %c91 = arith.constant 91 : index
      %481 = memref.load %arg3[%c91] : memref<98xf32, #tpu.memory_space<smem>>
      %482 = vector.extract_strided_slice %24 {offsets = [6, 0], sizes = [32, 32], strides = [1, 1]} : vector<38x38xf32> to vector<32x32xf32>
      %483 = vector.broadcast %481 : f32 to vector<32x32xf32>
      %484 = arith.mulf %483, %482 : vector<32x32xf32>
      %485 = arith.addf %480, %484 : vector<32x32xf32>
      %c92 = arith.constant 92 : index
      %486 = memref.load %arg3[%c92] : memref<98xf32, #tpu.memory_space<smem>>
      %487 = vector.extract_strided_slice %24 {offsets = [6, 1], sizes = [32, 32], strides = [1, 1]} : vector<38x38xf32> to vector<32x32xf32>
      %488 = vector.broadcast %486 : f32 to vector<32x32xf32>
      %489 = arith.mulf %488, %487 : vector<32x32xf32>
      %490 = arith.addf %485, %489 : vector<32x32xf32>
      %c93 = arith.constant 93 : index
      %491 = memref.load %arg3[%c93] : memref<98xf32, #tpu.memory_space<smem>>
      %492 = vector.extract_strided_slice %24 {offsets = [6, 2], sizes = [32, 32], strides = [1, 1]} : vector<38x38xf32> to vector<32x32xf32>
      %493 = vector.broadcast %491 : f32 to vector<32x32xf32>
      %494 = arith.mulf %493, %492 : vector<32x32xf32>
      %495 = arith.addf %490, %494 : vector<32x32xf32>
      %c94 = arith.constant 94 : index
      %496 = memref.load %arg3[%c94] : memref<98xf32, #tpu.memory_space<smem>>
      %497 = vector.extract_strided_slice %24 {offsets = [6, 3], sizes = [32, 32], strides = [1, 1]} : vector<38x38xf32> to vector<32x32xf32>
      %498 = vector.broadcast %496 : f32 to vector<32x32xf32>
      %499 = arith.mulf %498, %497 : vector<32x32xf32>
      %500 = arith.addf %495, %499 : vector<32x32xf32>
      %c95 = arith.constant 95 : index
      %501 = memref.load %arg3[%c95] : memref<98xf32, #tpu.memory_space<smem>>
      %502 = vector.extract_strided_slice %24 {offsets = [6, 4], sizes = [32, 32], strides = [1, 1]} : vector<38x38xf32> to vector<32x32xf32>
      %503 = vector.broadcast %501 : f32 to vector<32x32xf32>
      %504 = arith.mulf %503, %502 : vector<32x32xf32>
      %505 = arith.addf %500, %504 : vector<32x32xf32>
      %c96 = arith.constant 96 : index
      %506 = memref.load %arg3[%c96] : memref<98xf32, #tpu.memory_space<smem>>
      %507 = vector.extract_strided_slice %24 {offsets = [6, 5], sizes = [32, 32], strides = [1, 1]} : vector<38x38xf32> to vector<32x32xf32>
      %508 = vector.broadcast %506 : f32 to vector<32x32xf32>
      %509 = arith.mulf %508, %507 : vector<32x32xf32>
      %510 = arith.addf %505, %509 : vector<32x32xf32>
      %c97 = arith.constant 97 : index
      %511 = memref.load %arg3[%c97] : memref<98xf32, #tpu.memory_space<smem>>
      %512 = vector.extract_strided_slice %24 {offsets = [6, 6], sizes = [32, 32], strides = [1, 1]} : vector<38x38xf32> to vector<32x32xf32>
      %513 = vector.broadcast %511 : f32 to vector<32x32xf32>
      %514 = arith.mulf %513, %512 : vector<32x32xf32>
      %515 = arith.addf %510, %514 : vector<32x32xf32>
      %cst_20 = arith.constant 0.000000e+00 : f32
      %516 = vector.broadcast %cst_20 : f32 to vector<32x32xf32>
      %517 = arith.subf %516, %515 : vector<32x32xf32>
      %518 = math.exp %517 : vector<32x32xf32>
      %cst_21 = arith.constant 1.000000e+00 : f32
      %519 = vector.broadcast %cst_21 : f32 to vector<32x32xf32>
      %520 = arith.addf %519, %518 : vector<32x32xf32>
      %cst_22 = arith.constant 1.000000e+00 : f32
      %521 = vector.broadcast %cst_22 : f32 to vector<32x32xf32>
      %522 = arith.divf %521, %520 : vector<32x32xf32>
      %c0_23 = arith.constant 0 : index
      %c0_24 = arith.constant 0 : index
      %c0_25 = arith.constant 0 : index
      %523 = vector.load %arg4[%c0_23, %c0_24, %c0_25] : memref<1x32x32xf32, #tpu.memory_space<vmem>>, vector<1x32x32xf32>
      %524 = vector.shape_cast %523 : vector<1x32x32xf32> to vector<32x32xf32>
      %525 = vector.shape_cast %522 : vector<32x32xf32> to vector<1x32x32xf32>
      tpu.vector_store %arg4[%c0_23, %c0_24, %c0_25], %525 {strides = array<i32>} : memref<1x32x32xf32, #tpu.memory_space<vmem>>, vector<1x32x32xf32>,
    } else {
    }
    return
  }
  func.func @transform_0(%arg0: i32, %arg1: i32) -> (i32, i32, i32, i32) {
    %c0_i32 = arith.constant 0 : i32
    %c0_i32_0 = arith.constant 0 : i32
    %c0_i32_1 = arith.constant 0 : i32
    return %arg0, %arg1, %c0_i32, %c0_i32_0 : i32, i32, i32, i32
  }
  func.func @transform_1(%arg0: i32, %arg1: i32) -> i32 {
    %c0_i32 = arith.constant 0 : i32
    %c0_i32_0 = arith.constant 0 : i32
    return %c0_i32 : i32
  }
  func.func @transform_2(%arg0: i32, %arg1: i32) -> (i32, i32, i32) {
    %c0_i32 = arith.constant 0 : i32
    %c0_i32_0 = arith.constant 0 : i32
    %c0_i32_1 = arith.constant 0 : i32
    return %arg0, %c0_i32, %c0_i32_0 : i32, i32, i32
  }
}

module attributes {stable_mosaic.version = 11 : i64} {
  func.func @_apply_kernel(%arg0: i32, %arg1: i32, %arg2: memref<1x96x512xf32, #tpu.memory_space<vmem>>, %arg3: memref<1x1x512xf32, #tpu.memory_space<vmem>>, %arg4: memref<1x96x512xf32, #tpu.memory_space<vmem>>) attributes {dimension_semantics = [#tpu.dimension_semantics<parallel>, #tpu.dimension_semantics<parallel>], iteration_bounds = array<i64: 2, 2>, scalar_prefetch = 0 : i64, scratch_operands = 0 : i64, tpu.core_type = #tpu.core_type<tc>, window_params = [{transform_indices = @transform_0, window_bounds = array<i64: 1, 96, 512>}, {transform_indices = @transform_1, window_bounds = array<i64: 1, 1, 512>}, {transform_indices = @transform_2, window_bounds = array<i64: 1, 96, 512>}]} {
    %c0 = arith.constant 0 : index
    %c0_0 = arith.constant 0 : index
    %c0_1 = arith.constant 0 : index
    %0 = vector.load %arg2[%c0, %c0_0, %c0_1] : memref<1x96x512xf32, #tpu.memory_space<vmem>>, vector<1x96x512xf32>
    %1 = vector.shape_cast %0 : vector<1x96x512xf32> to vector<96x512xf32>
    %c0_2 = arith.constant 0 : index
    %c0_3 = arith.constant 0 : index
    %c0_4 = arith.constant 0 : index
    %2 = vector.load %arg3[%c0_2, %c0_3, %c0_4] : memref<1x1x512xf32, #tpu.memory_space<vmem>>, vector<1x1x512xf32>
    %3 = vector.shape_cast %2 : vector<1x1x512xf32> to vector<1x512xf32>
    %4 = vector.broadcast %3 : vector<1x512xf32> to vector<96x512xf32>
    %5 = arith.mulf %1, %4 : vector<96x512xf32>
    %c0_5 = arith.constant 0 : index
    %c0_6 = arith.constant 0 : index
    %c0_7 = arith.constant 0 : index
    %6 = vector.load %arg4[%c0_5, %c0_6, %c0_7] : memref<1x96x512xf32, #tpu.memory_space<vmem>>, vector<1x96x512xf32>
    %7 = vector.shape_cast %6 : vector<1x96x512xf32> to vector<96x512xf32>
    %8 = vector.shape_cast %5 : vector<96x512xf32> to vector<1x96x512xf32>
    tpu.vector_store %arg4[%c0_5, %c0_6, %c0_7], %8 {strides = array<i32>} : memref<1x96x512xf32, #tpu.memory_space<vmem>>, vector<1x96x512xf32>,
    return
  }
  func.func @transform_0(%arg0: i32, %arg1: i32) -> (i32, i32, i32) {
    %c0_i32 = arith.constant 0 : i32
    %c0_i32_0 = arith.constant 0 : i32
    return %arg0, %c0_i32, %arg1 : i32, i32, i32
  }
  func.func @transform_1(%arg0: i32, %arg1: i32) -> (i32, i32, i32) {
    %c0_i32 = arith.constant 0 : i32
    %c0_i32_0 = arith.constant 0 : i32
    return %arg0, %c0_i32, %arg1 : i32, i32, i32
  }
  func.func @transform_2(%arg0: i32, %arg1: i32) -> (i32, i32, i32) {
    %c0_i32 = arith.constant 0 : i32
    %c0_i32_0 = arith.constant 0 : i32
    return %arg0, %c0_i32, %arg1 : i32, i32, i32
  }
}

</mosaic_0001>

<bundles_post_ra>
// kernel: spatial_attention.3
= control target key start
LH: loop header
LB: loop body
LE: loop exit
PB: predicated region body
PF: predicated region fallthrough
CT: control target
= control target key end

     0   :  { %s827_s9 = smov 0   ;;  %s829_s10 = smov 0   ;;  %s1291_s0 = inlined_call_operand.vmem [shape: f32[2,96,1024], index: 0, kind: input, shape index: {}]   ;;  %s1292_s1 = inlined_call_operand.vmem [shape: f32[2,1,1024], index: 1, kind: input, shape index: {}]   ;;  %s1293_s2 = inlined_call_operand.vmem [shape: f32[2,96,1024], index: 2, kind: output, shape index: {}]  }
   0x1   :  { %s831_s11 = smov 0   ;;  %s833_s12 = smov 0  }
   0x2   :  { %s835_s13 = smov 0   ;;  %s837_s14 = smov 0  }
   0x3   :  { %s839_s15 = smov 0  }
   0x4 LB: > { %s21_s16 = sadd.s32 1, %s802_s13  ;;  %s24_s17 = sadd.s32 1, %s806_s14  ;;  %s810_s15 = sphi %s839_s15, %s12_s15   ;;  %s806_s14 = sphi %s837_s14, %s1300_s14   ;;  %s802_s13 = sphi %s835_s13, %s1299_s13   ;;  %s798_s12 = sphi %s833_s12, %s1298_s12   ;;  %s794_s11 = sphi %s831_s11, %s1297_s11   ;;  %s790_s10 = sphi %s829_s10, %s1296_s10   ;;  %s786_s9 = sphi %s827_s9, %s1295_s9  }
   0x5   : > { %p22_p0 = scmp.ge.s32.totalorder %s21_s16, 2  ;;  %s683_s18 = sadd.s32 4294967295, %s810_s15  }
   0x6   : > { %p40_p1 = scmp.ne.s32.totalorder %s790_s10, %s786_s9  ;;  %p41_p2 = scmp.eq.s32.totalorder %s810_s15, 0 }
   0x7   : > { %s1302_s16 = smov (%p22_p0, %s21_s16), 0  ;;  %s1304_s17 = smov (!%p22_p0, %s24_s17), %s806_s14 }
   0x8   : > { %p26_p3 = scmp.ge.s32.totalorder %s1304_s17, 2  ;;  %p100_p4 = scmp.eq.s32.totalorder %s683_s18, 3 }
   0x9   : > { %s29_s19 = ssub.s32 %s802_s13, %s1302_s16  ;;  %p42_p5 = por %p41_p2, %p40_p1 }
   0xa   : > { %s1306_s17 = smov (%p26_p3, %s1304_s17), 0  ;;  %p875_p6 = por %p100_p4, %p40_p1 }
   0xb   : > { %s28_s21 = ssub.s32 %s806_s14, %s1306_s17  ;;  %s33_s23 = sadd.s32 1, %s790_s10 }
   0xc   : > { %s30_s22 = sor.u32 %s29_s19, %s28_s21  ;;  %p686_p8 = scmp.ge.s32.totalorder %s810_s15, 4 }
   0xd   : > { %p31_p7 = scmp.eq.s32.totalorder %s30_s22, 0 }
   0xe   : > { %122 = sbr.rel (%p686_p8) target bundleno = 53 (0x35), region = 16 }
   0xf   : > { %s883_s24 = scalar_select %p31_p7, %s790_s10, %s33_s23  }
  0x15   : > { %125 = sbr.rel (!%p42_p5) target bundleno = 53 (0x35), region = 20  ;;  %s127_s25 = sand.u32 (%p42_p5), 1, %s790_s10  }
  0x16   : > { %s696_s26 = smul.u32 (%p42_p5), 384, %s127_s25  ;;  %s687_s27 = sshll.u32 (%p42_p5), %s802_s13, 2 }
  0x17   : > { %s697_s28 = smul.u32 (%p42_p5), 96, %s806_s14 }
  0x18   : > { %s897_s6 = scalar_lea.vmem (%p42_p5), [#allocation2], %s696_s26 }
  0x19   : > { %s132_s29 = sadd.s32 (%p42_p5), %s697_s28, %s687_s27 }
  0x1a   : > { %s688_s30 = sshll.u32 (%p42_p5), %s132_s29, 3 }
  0x1b   : > { %s892_s5 = scalar_lea.vmem (%p42_p5), %s1291_s0, %s688_s30 }
  0x1c   : > { %v147_v0 = vld [vmem:[%s892_s5] sm:$0xff]  ;;  %v149_v1 = vld [vmem:[%s892_s5 + $0x8] sm:$0xff]  ;;  %v151_v2 = vld [vmem:[%s892_s5 + $0x10] sm:$0xff] }
  0x1d   : > { %148 = vst [vmem:[%s897_s6] sm:$0xff] %v147_v0  ;;  %150 = vst [vmem:[%s897_s6 + $0x8] sm:$0xff] %v149_v1  ;;  %v153_v3 = vld [vmem:[%s892_s5 + $0x18] sm:$0xff]  ;;  %v155_v4 = vld [vmem:[%s892_s5 + $0x40] sm:$0xff] }
  0x1e   : > { %152 = vst [vmem:[%s897_s6 + $0x10] sm:$0xff] %v151_v2  ;;  %v157_v5 = vld [vmem:[%s892_s5 + $0x48] sm:$0xff]  ;;  %154 = vst [vmem:[%s897_s6 + $0x18] sm:$0xff] %v153_v3  ;;  %v159_v6 = vld [vmem:[%s892_s5 + $0x50] sm:$0xff] }
  0x1f   : > { %156 = vst [vmem:[%s897_s6 + $0x20] sm:$0xff] %v155_v4  ;;  %158 = vst [vmem:[%s897_s6 + $0x28] sm:$0xff] %v157_v5  ;;  %v161_v7 = vld [vmem:[%s892_s5 + $0x58] sm:$0xff]  ;;  %v163_v8 = vld [vmem:[%s892_s5 + $0x80] sm:$0xff] }
  0x20   : > { %160 = vst [vmem:[%s897_s6 + $0x30] sm:$0xff] %v159_v6  ;;  %162 = vst [vmem:[%s897_s6 + $0x38] sm:$0xff] %v161_v7  ;;  %v165_v9 = vld [vmem:[%s892_s5 + $0x88] sm:$0xff]  ;;  %v167_v10 = vld [vmem:[%s892_s5 + $0x90] sm:$0xff] }
  0x21   : > { %164 = vst [vmem:[%s897_s6 + $0x40] sm:$0xff] %v163_v8  ;;  %v169_v11 = vld [vmem:[%s892_s5 + $0x98] sm:$0xff]  ;;  %166 = vst [vmem:[%s897_s6 + $0x48] sm:$0xff] %v165_v9  ;;  %v171_v12 = vld [vmem:[%s892_s5 + $0xc0] sm:$0xff] }
  0x22   : > { %168 = vst [vmem:[%s897_s6 + $0x50] sm:$0xff] %v167_v10  ;;  %170 = vst [vmem:[%s897_s6 + $0x58] sm:$0xff] %v169_v11  ;;  %v173_v13 = vld [vmem:[%s892_s5 + $0xc8] sm:$0xff]  ;;  %v175_v14 = vld [vmem:[%s892_s5 + $0xd0] sm:$0xff] }
  0x23   : > { %172 = vst [vmem:[%s897_s6 + $0x60] sm:$0xff] %v171_v12  ;;  %174 = vst [vmem:[%s897_s6 + $0x68] sm:$0xff] %v173_v13  ;;  %v177_v15 = vld [vmem:[%s892_s5 + $0xd8] sm:$0xff]  ;;  %v179_v16 = vld [vmem:[%s892_s5 + $0x100] sm:$0xff] }
  0x24   : > { %176 = vst [vmem:[%s897_s6 + $0x70] sm:$0xff] %v175_v14  ;;  %v181_v17 = vld [vmem:[%s892_s5 + $0x108] sm:$0xff]  ;;  %178 = vst [vmem:[%s897_s6 + $0x78] sm:$0xff] %v177_v15  ;;  %v183_v18 = vld [vmem:[%s892_s5 + $0x110] sm:$0xff] }
  0x25   : > { %180 = vst [vmem:[%s897_s6 + $0x80] sm:$0xff] %v179_v16  ;;  %182 = vst [vmem:[%s897_s6 + $0x88] sm:$0xff] %v181_v17  ;;  %v185_v19 = vld [vmem:[%s892_s5 + $0x118] sm:$0xff]  ;;  %v187_v20 = vld [vmem:[%s892_s5 + $0x140] sm:$0xff] }
  0x26   : > { %184 = vst [vmem:[%s897_s6 + $0x90] sm:$0xff] %v183_v18  ;;  %186 = vst [vmem:[%s897_s6 + $0x98] sm:$0xff] %v185_v19  ;;  %v189_v21 = vld [vmem:[%s892_s5 + $0x148] sm:$0xff]  ;;  %v191_v22 = vld [vmem:[%s892_s5 + $0x150] sm:$0xff] }
  0x27   : > { %188 = vst [vmem:[%s897_s6 + $0xa0] sm:$0xff] %v187_v20  ;;  %v193_v23 = vld [vmem:[%s892_s5 + $0x158] sm:$0xff]  ;;  %190 = vst [vmem:[%s897_s6 + $0xa8] sm:$0xff] %v189_v21  ;;  %v195_v24 = vld [vmem:[%s892_s5 + $0x180] sm:$0xff] }
  0x28   : > { %192 = vst [vmem:[%s897_s6 + $0xb0] sm:$0xff] %v191_v22  ;;  %194 = vst [vmem:[%s897_s6 + $0xb8] sm:$0xff] %v193_v23  ;;  %v197_v25 = vld [vmem:[%s892_s5 + $0x188] sm:$0xff]  ;;  %v199_v26 = vld [vmem:[%s892_s5 + $0x190] sm:$0xff] }
  0x29   : > { %196 = vst [vmem:[%s897_s6 + $0xc0] sm:$0xff] %v195_v24  ;;  %198 = vst [vmem:[%s897_s6 + $0xc8] sm:$0xff] %v197_v25  ;;  %v201_v27 = vld [vmem:[%s892_s5 + $0x198] sm:$0xff]  ;;  %v203_v28 = vld [vmem:[%s892_s5 + $0x1c0] sm:$0xff] }
  0x2a   : > { %200 = vst [vmem:[%s897_s6 + $0xd0] sm:$0xff] %v199_v26  ;;  %v205_v29 = vld [vmem:[%s892_s5 + $0x1c8] sm:$0xff]  ;;  %202 = vst [vmem:[%s897_s6 + $0xd8] sm:$0xff] %v201_v27  ;;  %v207_v30 = vld [vmem:[%s892_s5 + $0x1d0] sm:$0xff] }
  0x2b   : > { %204 = vst [vmem:[%s897_s6 + $0xe0] sm:$0xff] %v203_v28  ;;  %206 = vst [vmem:[%s897_s6 + $0xe8] sm:$0xff] %v205_v29  ;;  %v209_v31 = vld [vmem:[%s892_s5 + $0x1d8] sm:$0xff]  ;;  %v211_v32 = vld [vmem:[%s892_s5 + $0x200] sm:$0xff] }
  0x2c   : > { %208 = vst [vmem:[%s897_s6 + $0xf0] sm:$0xff] %v207_v30  ;;  %210 = vst [vmem:[%s897_s6 + $0xf8] sm:$0xff] %v209_v31  ;;  %v213_v33 = vld [vmem:[%s892_s5 + $0x208] sm:$0xff]  ;;  %v215_v34 = vld [vmem:[%s892_s5 + $0x210] sm:$0xff] }
  0x2d   : > { %212 = vst [vmem:[%s897_s6 + $0x100] sm:$0xff] %v211_v32  ;;  %v217_v35 = vld [vmem:[%s892_s5 + $0x218] sm:$0xff]  ;;  %214 = vst [vmem:[%s897_s6 + $0x108] sm:$0xff] %v213_v33  ;;  %v219_v36 = vld [vmem:[%s892_s5 + $0x240] sm:$0xff] }
  0x2e   : > { %216 = vst [vmem:[%s897_s6 + $0x110] sm:$0xff] %v215_v34  ;;  %218 = vst [vmem:[%s897_s6 + $0x118] sm:$0xff] %v217_v35  ;;  %v221_v37 = vld [vmem:[%s892_s5 + $0x248] sm:$0xff]  ;;  %v223_v38 = vld [vmem:[%s892_s5 + $0x250] sm:$0xff] }
  0x2f   : > { %220 = vst [vmem:[%s897_s6 + $0x120] sm:$0xff] %v219_v36  ;;  %222 = vst [vmem:[%s897_s6 + $0x128] sm:$0xff] %v221_v37  ;;  %v225_v39 = vld [vmem:[%s892_s5 + $0x258] sm:$0xff]  ;;  %v227_v40 = vld [vmem:[%s892_s5 + $0x280] sm:$0xff] }
  0x30   : > { %224 = vst [vmem:[%s897_s6 + $0x130] sm:$0xff] %v223_v38  ;;  %v229_v41 = vld [vmem:[%s892_s5 + $0x288] sm:$0xff]  ;;  %226 = vst [vmem:[%s897_s6 + $0x138] sm:$0xff] %v225_v39  ;;  %v231_v42 = vld [vmem:[%s892_s5 + $0x290] sm:$0xff] }
  0x31   : > { %228 = vst [vmem:[%s897_s6 + $0x140] sm:$0xff] %v227_v40  ;;  %230 = vst [vmem:[%s897_s6 + $0x148] sm:$0xff] %v229_v41  ;;  %v233_v43 = vld [vmem:[%s892_s5 + $0x298] sm:$0xff]  ;;  %v235_v44 = vld [vmem:[%s892_s5 + $0x2c0] sm:$0xff] }
  0x32   : > { %232 = vst [vmem:[%s897_s6 + $0x150] sm:$0xff] %v231_v42  ;;  %234 = vst [vmem:[%s897_s6 + $0x158] sm:$0xff] %v233_v43  ;;  %v237_v45 = vld [vmem:[%s892_s5 + $0x2c8] sm:$0xff]  ;;  %v239_v46 = vld [vmem:[%s892_s5 + $0x2d0] sm:$0xff] }
  0x33   : > { %236 = vst [vmem:[%s897_s6 + $0x160] sm:$0xff] %v235_v44  ;;  %v241_v47 = vld [vmem:[%s892_s5 + $0x2d8] sm:$0xff]  ;;  %238 = vst [vmem:[%s897_s6 + $0x168] sm:$0xff] %v237_v45 }
  0x34   : > { %240 = vst [vmem:[%s897_s6 + $0x170] sm:$0xff] %v239_v46  ;;  %242 = vst [vmem:[%s897_s6 + $0x178] sm:$0xff] %v241_v47 }
  0x35 PF: > { %p689_p9 = scmp.ge.s32.totalorder %s810_s15, 1  ;;  %p259_p10 = scmp.lt.s32.totalorder %s810_s15, 5 }
  0x37   : > { %p260_p11 = pnand %p689_p9, %p259_p10 }
  0x38   : > { %s266_s7 = sand.u32 (!%p260_p11), 1, %s786_s9   ;;  %s996_s8 = sshll.u32 (!%p260_p11), %s794_s11, 2  ;;  %v355_v48 = vlaneseq (!%p260_p11) }
  0x39   : > { %263 = sbr.rel (%p260_p11) target bundleno = 122 (0x7a), region = 47  ;;  %p296_p12 = scmp.lt.s32.totalorder (!%p260_p11), %s798_s12, 1 }
  0x3a   : > { %s998_s18 = smul.u32 (!%p260_p11), 384, %s266_s7  ;;  %p298_p13 = scmp.lt.s32.totalorder (!%p260_p11), %s996_s8, 7  ;;  %v356_v49 = vshrl.u32 (!%p260_p11), %v355_v48, 7 }
  0x3c   : > { %v357_v50 = vsub.s32 (!%p260_p11), 0, %v356_v49  ;;  %v361_v51 = vsub.s32 (!%p260_p11), 1, %v356_v49  ;;  %v365_v52 = vsub.s32 (!%p260_p11), 2, %v356_v49  ;;  %v369_v53 = vsub.s32 (!%p260_p11), 3, %v356_v49  ;;  %s1005_s9 = scalar_lea.vmem (!%p260_p11), [#allocation2], %s998_s18  ;;  %s1054_s27 = scalar_lea.vmem (!%p260_p11), [#allocation3], %s998_s18 }
  0x3d   : > { %v305_v54 = vld [vmem:[%s1005_s9] sm:$0xff] (!%p260_p11)  ;;  %v306_v55 = vld [vmem:[%s1005_s9 + $0x8] sm:$0xff] (!%p260_p11)  ;;  %v307_v56 = vld [vmem:[%s1005_s9 + $0x10] sm:$0xff] (!%p260_p11) }
  0x3e   : > { %v308_v57 = vld [vmem:[%s1005_s9 + $0x18] sm:$0xff] (!%p260_p11)  ;;  %v309_v58 = vld [vmem:[%s1005_s9 + $0x20] sm:$0xff] (!%p260_p11)  ;;  %v310_v59 = vld [vmem:[%s1005_s9 + $0x28] sm:$0xff] (!%p260_p11) }
  0x3f   : > { %v311_v60 = vld [vmem:[%s1005_s9 + $0x30] sm:$0xff] (!%p260_p11)  ;;  %v312_v61 = vld [vmem:[%s1005_s9 + $0x38] sm:$0xff] (!%p260_p11)  ;;  %v313_v63 = vld [vmem:[%s1005_s9 + $0x40] sm:$0xff] (!%p260_p11) }
  0x40   : > { %s297_s19 = scalar_select %p296_p12, %s798_s12, 1  ;;  %v314_v0 = vld [vmem:[%s1005_s9 + $0x48] sm:$0xff]  ;;  %v315_v1 = vld [vmem:[%s1005_s9 + $0x50] sm:$0xff]  ;;  %v316_v2 = vld [vmem:[%s1005_s9 + $0x58] sm:$0xff] }
  0x41   : > { %s299_s21 = scalar_select %p298_p13, %s996_s8, 7  ;;  %v317_v7 = vld [vmem:[%s1005_s9 + $0x60] sm:$0xff]  ;;  %v318_v8 = vld [vmem:[%s1005_s9 + $0x68] sm:$0xff]  ;;  %v319_v9 = vld [vmem:[%s1005_s9 + $0x70] sm:$0xff] }
  0x42   : > { %s691_s22 = sshll.u32 %s297_s19, 3  ;;  %v320_v10 = vld [vmem:[%s1005_s9 + $0x78] sm:$0xff]  ;;  %v321_v11 = vld [vmem:[%s1005_s9 + $0x80] sm:$0xff]  ;;  %v322_v12 = vld [vmem:[%s1005_s9 + $0x88] sm:$0xff]  ;;  %s699_s28 = smul.u32 (%p875_p6), 96, %s798_s12 }
  0x43   : > { %s301_s23 = sadd.s32 %s691_s22, %s299_s21  ;;  %v323_v13 = vld [vmem:[%s1005_s9 + $0x90] sm:$0xff]  ;;  %v324_v14 = vld [vmem:[%s1005_s9 + $0x98] sm:$0xff]  ;;  %v325_v19 = vld [vmem:[%s1005_s9 + $0xa0] sm:$0xff] }
  0x44   : > { %s302_s26 = scalar_lea.vmem %s1292_s1, %s301_s23  ;;  %v326_v20 = vld [vmem:[%s1005_s9 + $0xa8] sm:$0xff]  ;;  %v327_v21 = vld [vmem:[%s1005_s9 + $0xb0] sm:$0xff]  ;;  %v328_v22 = vld [vmem:[%s1005_s9 + $0xb8] sm:$0xff]  ;;  %s480_s20 = sadd.s32 (%p875_p6), %s699_s28, %s996_s8 }
  0x45   : > { %v353_v62 = vld [vmem:[%s302_s26] sm:$0xf]  ;;  %v330_v28 = vld [vmem:[%s1005_s9 + $0xc8] sm:$0xff]  ;;  %v331_v29 = vld [vmem:[%s1005_s9 + $0xd0] sm:$0xff]  ;;  %s693_s29 = sshll.u32 (%p875_p6), %s480_s20, 3 }
  0x46   : > { %v1022_v3 = vrot.slane %v353_v62, %v357_v50  ;;  %v1024_v4 = vrot.slane %v353_v62, %v361_v51  ;;  %v1026_v5 = vrot.slane %v353_v62, %v365_v52  ;;  %v1028_v6 = vrot.slane %v353_v62, %v369_v53  ;;  %v329_v27 = vld [vmem:[%s1005_s9 + $0xc0] sm:$0xff]  ;;  %v332_v34 = vld [vmem:[%s1005_s9 + $0xd8] sm:$0xff]  ;;  %v334_v36 = vld [vmem:[%s1005_s9 + $0xe8] sm:$0xff]  ;;  %s1184_s12 = scalar_lea.vmem (%p875_p6), %s1293_s2, %s693_s29 }
  0x47   : > { %v333_v35 = vld [vmem:[%s1005_s9 + $0xe0] sm:$0xff]  ;;  %v335_v41 = vld [vmem:[%s1005_s9 + $0xf0] sm:$0xff]  ;;  %v336_v42 = vld [vmem:[%s1005_s9 + $0xf8] sm:$0xff] }
  0x48   : > { %v375_v15 = vmul.f32 %v1022_v3, %v305_v54  ;;  %v376_v16 = vmul.f32 %v1024_v4, %v306_v55  ;;  %v377_v17 = vmul.f32 %v1026_v5, %v307_v56  ;;  %v378_v18 = vmul.f32 %v1028_v6, %v308_v57  ;;  %v337_v43 = vld [vmem:[%s1005_s9 + $0x100] sm:$0xff]  ;;  %v338_v48 = vld [vmem:[%s1005_s9 + $0x108] sm:$0xff]  ;;  %v339_v49 = vld [vmem:[%s1005_s9 + $0x110] sm:$0xff] }
  0x49   : > { %v379_v23 = vmul.f32 %v1022_v3, %v309_v58  ;;  %v380_v24 = vmul.f32 %v1024_v4, %v310_v59  ;;  %v381_v25 = vmul.f32 %v1026_v5, %v311_v60  ;;  %v382_v26 = vmul.f32 %v1028_v6, %v312_v61  ;;  %v340_v50 = vld [vmem:[%s1005_s9 + $0x118] sm:$0xff]  ;;  %v341_v55 = vld [vmem:[%s1005_s9 + $0x120] sm:$0xff]  ;;  %v342_v56 = vld [vmem:[%s1005_s9 + $0x128] sm:$0xff] }
  0x4a   : > { %423 = vst [vmem:[%s1054_s27] sm:$0xff] %v375_v15  ;;  %424 = vst [vmem:[%s1054_s27 + $0x8] sm:$0xff] %v376_v16  ;;  %v383_v30 = vmul.f32 %v1022_v3, %v313_v63  ;;  %v384_v31 = vmul.f32 %v1024_v4, %v314_v0  ;;  %v385_v32 = vmul.f32 %v1026_v5, %v315_v1  ;;  %v343_v57 = vld [vmem:[%s1005_s9 + $0x130] sm:$0xff]  ;;  %v344_v62 = vld [vmem:[%s1005_s9 + $0x138] sm:$0xff] }
  0x4b   : > { %425 = vst [vmem:[%s1054_s27 + $0x10] sm:$0xff] %v377_v17  ;;  %426 = vst [vmem:[%s1054_s27 + $0x18] sm:$0xff] %v378_v18  ;;  %v386_v33 = vmul.f32 %v1028_v6, %v316_v2  ;;  %v387_v37 = vmul.f32 %v1022_v3, %v317_v7  ;;  %v388_v38 = vmul.f32 %v1024_v4, %v318_v8  ;;  %v345_v63 = vld [vmem:[%s1005_s9 + $0x140] sm:$0xff]  ;;  %v346_v0 = vld [vmem:[%s1005_s9 + $0x148] sm:$0xff] }
  0x4c   : > { %427 = vst [vmem:[%s1054_s27 + $0x20] sm:$0xff] %v379_v23  ;;  %428 = vst [vmem:[%s1054_s27 + $0x28] sm:$0xff] %v380_v24  ;;  %v389_v39 = vmul.f32 %v1026_v5, %v319_v9  ;;  %v390_v40 = vmul.f32 %v1028_v6, %v320_v10  ;;  %v391_v44 = vmul.f32 %v1022_v3, %v321_v11  ;;  %v347_v9 = vld [vmem:[%s1005_s9 + $0x150] sm:$0xff]  ;;  %v348_v10 = vld [vmem:[%s1005_s9 + $0x158] sm:$0xff] }
  0x4d   : > { %429 = vst [vmem:[%s1054_s27 + $0x30] sm:$0xff] %v381_v25  ;;  %430 = vst [vmem:[%s1054_s27 + $0x38] sm:$0xff] %v382_v26  ;;  %v392_v45 = vmul.f32 %v1024_v4, %v322_v12  ;;  %v393_v46 = vmul.f32 %v1026_v5, %v323_v13  ;;  %v394_v47 = vmul.f32 %v1028_v6, %v324_v14  ;;  %v349_v11 = vld [vmem:[%s1005_s9 + $0x160] sm:$0xff]  ;;  %v350_v16 = vld [vmem:[%s1005_s9 + $0x168] sm:$0xff] }
  0x4e   : > { %431 = vst [vmem:[%s1054_s27 + $0x40] sm:$0xff] %v383_v30  ;;  %432 = vst [vmem:[%s1054_s27 + $0x48] sm:$0xff] %v384_v31  ;;  %v395_v51 = vmul.f32 %v1022_v3, %v325_v19  ;;  %v396_v52 = vmul.f32 %v1024_v4, %v326_v20  ;;  %v397_v53 = vmul.f32 %v1026_v5, %v327_v21  ;;  %v351_v17 = vld [vmem:[%s1005_s9 + $0x170] sm:$0xff]  ;;  %v352_v18 = vld [vmem:[%s1005_s9 + $0x178] sm:$0xff] }
  0x4f   : > { %433 = vst [vmem:[%s1054_s27 + $0x50] sm:$0xff] %v385_v32  ;;  %434 = vst [vmem:[%s1054_s27 + $0x58] sm:$0xff] %v386_v33  ;;  %v398_v54 = vmul.f32 %v1028_v6, %v328_v22  ;;  %v399_v58 = vmul.f32 %v1022_v3, %v329_v27  ;;  %v400_v59 = vmul.f32 %v1024_v4, %v330_v28 }
  0x50   : > { %435 = vst [vmem:[%s1054_s27 + $0x60] sm:$0xff] %v387_v37  ;;  %436 = vst [vmem:[%s1054_s27 + $0x68] sm:$0xff] %v388_v38  ;;  %v401_v60 = vmul.f32 %v1026_v5, %v331_v29  ;;  %v402_v61 = vmul.f32 %v1028_v6, %v332_v34  ;;  %v403_v1 = vmul.f32 %v1022_v3, %v333_v35 }
  0x51   : > { %437 = vst [vmem:[%s1054_s27 + $0x70] sm:$0xff] %v389_v39  ;;  %438 = vst [vmem:[%s1054_s27 + $0x78] sm:$0xff] %v390_v40  ;;  %v404_v2 = vmul.f32 %v1024_v4, %v334_v36  ;;  %v405_v7 = vmul.f32 %v1026_v5, %v335_v41  ;;  %v406_v8 = vmul.f32 %v1028_v6, %v336_v42 }
  0x52   : > { %439 = vst [vmem:[%s1054_s27 + $0x80] sm:$0xff] %v391_v44  ;;  %440 = vst [vmem:[%s1054_s27 + $0x88] sm:$0xff] %v392_v45  ;;  %v407_v12 = vmul.f32 %v1022_v3, %v337_v43  ;;  %v408_v13 = vmul.f32 %v1024_v4, %v338_v48  ;;  %v409_v14 = vmul.f32 %v1026_v5, %v339_v49 }
  0x53   : > { %441 = vst [vmem:[%s1054_s27 + $0x90] sm:$0xff] %v393_v46  ;;  %442 = vst [vmem:[%s1054_s27 + $0x98] sm:$0xff] %v394_v47  ;;  %v410_v15 = vmul.f32 %v1028_v6, %v340_v50  ;;  %v411_v19 = vmul.f32 %v1022_v3, %v341_v55  ;;  %v412_v20 = vmul.f32 %v1024_v4, %v342_v56  ;;  %v503_v31 = vld [vmem:[%s1054_s27 + $0x20] sm:$0xff] (%p875_p6)  ;;  %v505_v32 = vld [vmem:[%s1054_s27 + $0x28] sm:$0xff] (%p875_p6) }
  0x54   : > { %443 = vst [vmem:[%s1054_s27 + $0xa0] sm:$0xff] %v395_v51  ;;  %444 = vst [vmem:[%s1054_s27 + $0xa8] sm:$0xff] %v396_v52  ;;  %v413_v21 = vmul.f32 %v1026_v5, %v343_v57  ;;  %v414_v22 = vmul.f32 %v1028_v6, %v344_v62  ;;  %v415_v23 = vmul.f32 %v1022_v3, %v345_v63  ;;  %v507_v33 = vld [vmem:[%s1054_s27 + $0x30] sm:$0xff] (%p875_p6)  ;;  %v509_v34 = vld [vmem:[%s1054_s27 + $0x38] sm:$0xff] (%p875_p6) }
  0x55   : > { %445 = vst [vmem:[%s1054_s27 + $0xb0] sm:$0xff] %v397_v53  ;;  %446 = vst [vmem:[%s1054_s27 + $0xb8] sm:$0xff] %v398_v54  ;;  %v416_v24 = vmul.f32 %v1024_v4, %v346_v0  ;;  %v417_v25 = vmul.f32 %v1026_v5, %v347_v9  ;;  %v418_v26 = vmul.f32 %v1028_v6, %v348_v10  ;;  %v511_v35 = vld [vmem:[%s1054_s27 + $0x40] sm:$0xff] (%p875_p6)  ;;  %v513_v36 = vld [vmem:[%s1054_s27 + $0x48] sm:$0xff] (%p875_p6) }
  0x56   : > { %447 = vst [vmem:[%s1054_s27 + $0xc0] sm:$0xff] %v399_v58  ;;  %448 = vst [vmem:[%s1054_s27 + $0xc8] sm:$0xff] %v400_v59  ;;  %v419_v27 = vmul.f32 %v1022_v3, %v349_v11  ;;  %v420_v28 = vmul.f32 %v1024_v4, %v350_v16  ;;  %v421_v29 = vmul.f32 %v1026_v5, %v351_v17  ;;  %v495_v3 = vld [vmem:[%s1054_s27] sm:$0xff] (%p875_p6)  ;;  %v497_v4 = vld [vmem:[%s1054_s27 + $0x8] sm:$0xff] (%p875_p6) }
  0x57   : > { %449 = vst [vmem:[%s1054_s27 + $0xd0] sm:$0xff] %v401_v60  ;;  %450 = vst [vmem:[%s1054_s27 + $0xd8] sm:$0xff] %v402_v61  ;;  %v422_v30 = vmul.f32 %v1028_v6, %v352_v18  ;;  %v499_v5 = vld [vmem:[%s1054_s27 + $0x10] sm:$0xff] (%p875_p6)  ;;  %v501_v6 = vld [vmem:[%s1054_s27 + $0x18] sm:$0xff] (%p875_p6) }
  0x58   : > { %451 = vst [vmem:[%s1054_s27 + $0xe0] sm:$0xff] %v403_v1  ;;  %452 = vst [vmem:[%s1054_s27 + $0xe8] sm:$0xff] %v404_v2  ;;  %v515_v37 = vld [vmem:[%s1054_s27 + $0x50] sm:$0xff] (%p875_p6)  ;;  %v517_v38 = vld [vmem:[%s1054_s27 + $0x58] sm:$0xff] (%p875_p6) }
  0x59   : > { %453 = vst [vmem:[%s1054_s27 + $0xf0] sm:$0xff] %v405_v7  ;;  %454 = vst [vmem:[%s1054_s27 + $0xf8] sm:$0xff] %v406_v8  ;;  %v519_v39 = vld [vmem:[%s1054_s27 + $0x60] sm:$0xff] (%p875_p6)  ;;  %v521_v40 = vld [vmem:[%s1054_s27 + $0x68] sm:$0xff] (%p875_p6) }
  0x5a   : > { %455 = vst [vmem:[%s1054_s27 + $0x100] sm:$0xff] %v407_v12  ;;  %456 = vst [vmem:[%s1054_s27 + $0x108] sm:$0xff] %v408_v13  ;;  %v523_v41 = vld [vmem:[%s1054_s27 + $0x70] sm:$0xff] (%p875_p6)  ;;  %v525_v42 = vld [vmem:[%s1054_s27 + $0x78] sm:$0xff] (%p875_p6) }
  0x5b   : > { %457 = vst [vmem:[%s1054_s27 + $0x110] sm:$0xff] %v409_v14  ;;  %458 = vst [vmem:[%s1054_s27 + $0x118] sm:$0xff] %v410_v15  ;;  %477 = sbr.rel (!%p875_p6) target bundleno = 122 (0x7a), region = 55  ;;  %v527_v43 = vld [vmem:[%s1054_s27 + $0x80] sm:$0xff] (%p875_p6)  ;;  %v529_v44 = vld [vmem:[%s1054_s27 + $0x88] sm:$0xff] (%p875_p6) }
  0x5c   : > { %459 = vst [vmem:[%s1054_s27 + $0x120] sm:$0xff] %v411_v19  ;;  %460 = vst [vmem:[%s1054_s27 + $0x128] sm:$0xff] %v412_v20  ;;  %v531_v45 = vld [vmem:[%s1054_s27 + $0x90] sm:$0xff] (%p875_p6)  ;;  %v533_v46 = vld [vmem:[%s1054_s27 + $0x98] sm:$0xff] (%p875_p6) }
  0x5d   : > { %461 = vst [vmem:[%s1054_s27 + $0x130] sm:$0xff] %v413_v21  ;;  %462 = vst [vmem:[%s1054_s27 + $0x138] sm:$0xff] %v414_v22  ;;  %v535_v47 = vld [vmem:[%s1054_s27 + $0xa0] sm:$0xff] (%p875_p6)  ;;  %v537_v48 = vld [vmem:[%s1054_s27 + $0xa8] sm:$0xff] (%p875_p6) }
  0x5e   : > { %463 = vst [vmem:[%s1054_s27 + $0x140] sm:$0xff] %v415_v23  ;;  %464 = vst [vmem:[%s1054_s27 + $0x148] sm:$0xff] %v416_v24  ;;  %v539_v49 = vld [vmem:[%s1054_s27 + $0xb0] sm:$0xff] (%p875_p6)  ;;  %v541_v50 = vld [vmem:[%s1054_s27 + $0xb8] sm:$0xff] (%p875_p6) }
  0x5f   : > { %465 = vst [vmem:[%s1054_s27 + $0x150] sm:$0xff] %v417_v25  ;;  %466 = vst [vmem:[%s1054_s27 + $0x158] sm:$0xff] %v418_v26  ;;  %v543_v51 = vld [vmem:[%s1054_s27 + $0xc0] sm:$0xff] (%p875_p6)  ;;  %v545_v52 = vld [vmem:[%s1054_s27 + $0xc8] sm:$0xff] (%p875_p6) }
  0x60   : > { %467 = vst [vmem:[%s1054_s27 + $0x160] sm:$0xff] %v419_v27  ;;  %468 = vst [vmem:[%s1054_s27 + $0x168] sm:$0xff] %v420_v28  ;;  %v547_v53 = vld [vmem:[%s1054_s27 + $0xd0] sm:$0xff] (%p875_p6)  ;;  %v549_v54 = vld [vmem:[%s1054_s27 + $0xd8] sm:$0xff] (%p875_p6) }
  0x61   : > { %469 = vst [vmem:[%s1054_s27 + $0x170] sm:$0xff] %v421_v29  ;;  %470 = vst [vmem:[%s1054_s27 + $0x178] sm:$0xff] %v422_v30  ;;  %v551_v55 = vld [vmem:[%s1054_s27 + $0xe0] sm:$0xff] (%p875_p6)  ;;  %v553_v56 = vld [vmem:[%s1054_s27 + $0xe8] sm:$0xff] (%p875_p6) }
  0x62   : > { %496 = vst [vmem:[%s1184_s12] sm:$0xff] %v495_v3  ;;  %498 = vst [vmem:[%s1184_s12 + $0x8] sm:$0xff] %v497_v4  ;;  %v555_v57 = vld [vmem:[%s1054_s27 + $0xf0] sm:$0xff]  ;;  %v557_v58 = vld [vmem:[%s1054_s27 + $0xf8] sm:$0xff] }
  0x63   : > { %500 = vst [vmem:[%s1184_s12 + $0x10] sm:$0xff] %v499_v5  ;;  %502 = vst [vmem:[%s1184_s12 + $0x18] sm:$0xff] %v501_v6  ;;  %v559_v59 = vld [vmem:[%s1054_s27 + $0x100] sm:$0xff]  ;;  %v561_v60 = vld [vmem:[%s1054_s27 + $0x108] sm:$0xff] }
  0x64   : > { %504 = vst [vmem:[%s1184_s12 + $0x40] sm:$0xff] %v503_v31  ;;  %506 = vst [vmem:[%s1184_s12 + $0x48] sm:$0xff] %v505_v32  ;;  %v563_v61 = vld [vmem:[%s1054_s27 + $0x110] sm:$0xff]  ;;  %v565_v62 = vld [vmem:[%s1054_s27 + $0x118] sm:$0xff] }
  0x65   : > { %508 = vst [vmem:[%s1184_s12 + $0x50] sm:$0xff] %v507_v33  ;;  %510 = vst [vmem:[%s1184_s12 + $0x58] sm:$0xff] %v509_v34  ;;  %v567_v63 = vld [vmem:[%s1054_s27 + $0x120] sm:$0xff]  ;;  %v569_v0 = vld [vmem:[%s1054_s27 + $0x128] sm:$0xff] }
  0x66   : > { %512 = vst [vmem:[%s1184_s12 + $0x80] sm:$0xff] %v511_v35  ;;  %514 = vst [vmem:[%s1184_s12 + $0x88] sm:$0xff] %v513_v36  ;;  %v571_v1 = vld [vmem:[%s1054_s27 + $0x130] sm:$0xff]  ;;  %v573_v2 = vld [vmem:[%s1054_s27 + $0x138] sm:$0xff] }
  0x67   : > { %516 = vst [vmem:[%s1184_s12 + $0x90] sm:$0xff] %v515_v37  ;;  %518 = vst [vmem:[%s1184_s12 + $0x98] sm:$0xff] %v517_v38  ;;  %v575_v7 = vld [vmem:[%s1054_s27 + $0x140] sm:$0xff]  ;;  %v577_v8 = vld [vmem:[%s1054_s27 + $0x148] sm:$0xff] }
  0x68   : > { %520 = vst [vmem:[%s1184_s12 + $0xc0] sm:$0xff] %v519_v39  ;;  %522 = vst [vmem:[%s1184_s12 + $0xc8] sm:$0xff] %v521_v40  ;;  %v579_v9 = vld [vmem:[%s1054_s27 + $0x150] sm:$0xff]  ;;  %v581_v10 = vld [vmem:[%s1054_s27 + $0x158] sm:$0xff] }
  0x69   : > { %524 = vst [vmem:[%s1184_s12 + $0xd0] sm:$0xff] %v523_v41  ;;  %526 = vst [vmem:[%s1184_s12 + $0xd8] sm:$0xff] %v525_v42  ;;  %v583_v11 = vld [vmem:[%s1054_s27 + $0x160] sm:$0xff]  ;;  %v585_v12 = vld [vmem:[%s1054_s27 + $0x168] sm:$0xff] }
  0x6a   : > { %528 = vst [vmem:[%s1184_s12 + $0x100] sm:$0xff] %v527_v43  ;;  %530 = vst [vmem:[%s1184_s12 + $0x108] sm:$0xff] %v529_v44  ;;  %v587_v13 = vld [vmem:[%s1054_s27 + $0x170] sm:$0xff]  ;;  %v589_v14 = vld [vmem:[%s1054_s27 + $0x178] sm:$0xff] }
  0x6b   : > { %532 = vst [vmem:[%s1184_s12 + $0x110] sm:$0xff] %v531_v45  ;;  %534 = vst [vmem:[%s1184_s12 + $0x118] sm:$0xff] %v533_v46 }
  0x6c   : > { %536 = vst [vmem:[%s1184_s12 + $0x140] sm:$0xff] %v535_v47  ;;  %538 = vst [vmem:[%s1184_s12 + $0x148] sm:$0xff] %v537_v48 }
  0x6d   : > { %540 = vst [vmem:[%s1184_s12 + $0x150] sm:$0xff] %v539_v49  ;;  %542 = vst [vmem:[%s1184_s12 + $0x158] sm:$0xff] %v541_v50 }
  0x6e   : > { %544 = vst [vmem:[%s1184_s12 + $0x180] sm:$0xff] %v543_v51  ;;  %546 = vst [vmem:[%s1184_s12 + $0x188] sm:$0xff] %v545_v52 }
  0x6f   : > { %548 = vst [vmem:[%s1184_s12 + $0x190] sm:$0xff] %v547_v53  ;;  %550 = vst [vmem:[%s1184_s12 + $0x198] sm:$0xff] %v549_v54 }
  0x70   : > { %552 = vst [vmem:[%s1184_s12 + $0x1c0] sm:$0xff] %v551_v55  ;;  %554 = vst [vmem:[%s1184_s12 + $0x1c8] sm:$0xff] %v553_v56 }
  0x71   : > { %556 = vst [vmem:[%s1184_s12 + $0x1d0] sm:$0xff] %v555_v57  ;;  %558 = vst [vmem:[%s1184_s12 + $0x1d8] sm:$0xff] %v557_v58 }
  0x72   : > { %560 = vst [vmem:[%s1184_s12 + $0x200] sm:$0xff] %v559_v59  ;;  %562 = vst [vmem:[%s1184_s12 + $0x208] sm:$0xff] %v561_v60 }
  0x73   : > { %564 = vst [vmem:[%s1184_s12 + $0x210] sm:$0xff] %v563_v61  ;;  %566 = vst [vmem:[%s1184_s12 + $0x218] sm:$0xff] %v565_v62 }
  0x74   : > { %568 = vst [vmem:[%s1184_s12 + $0x240] sm:$0xff] %v567_v63  ;;  %570 = vst [vmem:[%s1184_s12 + $0x248] sm:$0xff] %v569_v0 }
  0x75   : > { %572 = vst [vmem:[%s1184_s12 + $0x250] sm:$0xff] %v571_v1  ;;  %574 = vst [vmem:[%s1184_s12 + $0x258] sm:$0xff] %v573_v2 }
  0x76   : > { %576 = vst [vmem:[%s1184_s12 + $0x280] sm:$0xff] %v575_v7  ;;  %578 = vst [vmem:[%s1184_s12 + $0x288] sm:$0xff] %v577_v8 }
  0x77   : > { %580 = vst [vmem:[%s1184_s12 + $0x290] sm:$0xff] %v579_v9  ;;  %582 = vst [vmem:[%s1184_s12 + $0x298] sm:$0xff] %v581_v10 }
  0x78   : > { %584 = vst [vmem:[%s1184_s12 + $0x2c0] sm:$0xff] %v583_v11  ;;  %586 = vst [vmem:[%s1184_s12 + $0x2c8] sm:$0xff] %v585_v12 }
  0x79   : > { %588 = vst [vmem:[%s1184_s12 + $0x2d0] sm:$0xff] %v587_v13  ;;  %590 = vst [vmem:[%s1184_s12 + $0x2d8] sm:$0xff] %v589_v14 }
  0x7a PF: > { %s12_s15 = sadd.s32 1, %s810_s15   ;;  %s1295_s9 = smov %s790_s10 }
  0x7b   : > { %p9_p0 = scmp.ge.s32.totalorder %s12_s15, 6   ;;  %s1296_s10 = smov %s883_s24 }
  0x7c   : > { %s1297_s11 = smov %s802_s13  ;;  %s1298_s12 = smov %s806_s14 }
  0x7d   : > { %s1299_s13 = smov %s1302_s16  ;;  %s1300_s14 = smov %s1306_s17 }
  0x7e   :  { %11 = sbr.rel (!%p9_p0) target bundleno = 4 (0x4), region = 112 }

// kernel: spatial_attention.2
= control target key start
LH: loop header
LB: loop body
LE: loop exit
PB: predicated region body
PF: predicated region fallthrough
CT: control target
= control target key end

     0   :  { %7 = vsyncpa [#allocation5], 0  ;;  %s4279_s9 = smov 0   ;;  %s4281_s10 = smov 0   ;;  %s6664_s0 = inlined_call_operand.vmem [shape: f32[2,96,32,32], index: 0, kind: input, shape index: {}]   ;;  %s6665_s1 = inlined_call_operand.vmem [shape: f32[98], index: 1, kind: input, shape index: {}]   ;;  %s6666_s2 = inlined_call_operand.vmem [shape: f32[2,32,32], index: 2, kind: output, shape index: {}]  }
   0x1   :  { %s4283_s11 = smov 0   ;;  %s4285_s12 = smov 0  }
   0x2   :  { %s4287_s13 = smov 0  }
   0x3 LB: > { %s3863_s14 = sadd.s32 4294967295, %s4218_s13   ;;  %s22_s15 = sadd.s32 1, %s4210_s11  ;;  %s4218_s13 = sphi %s4287_s13, %s13_s13   ;;  %s4214_s12 = sphi %s4285_s12, %s7034_s12   ;;  %s4210_s11 = sphi %s4283_s11, %s7033_s11   ;;  %s4206_s10 = sphi %s4281_s10, %s7032_s10   ;;  %s4202_s9 = sphi %s4279_s9, %s7031_s9  }
   0x4   : > { %p23_p0 = scmp.ge.s32.totalorder %s22_s15, 2  ;;  %s25_s16 = sadd.s32 1, %s4214_s12 }
   0x5   : > { %p3865_p1 = scmp.ge.s32.totalorder %s4218_s13, 1  ;;  %p105_p2 = scmp.lt.s32.totalorder %s4218_s13, 5 }
   0x6   : > { %s7036_s15 = smov (%p23_p0, %s22_s15), 0  ;;  %s7038_s16 = smov (!%p23_p0, %s25_s16), %s4214_s12 }
   0x7   : > { %p4312_p3 = pnand %p3865_p1, %p105_p2  ;;  %p27_p4 = scmp.ge.s32.totalorder %s7038_s16, 2 }
   0x8   : > { %p4316_p5 = scmp.eq.s32.totalorder %s3863_s14, 0  ;;  %s118_s21 = sshll.u32 %s6665_s1, 4  ;;  %s119_s21 = int_to_ptr.vmem [resolvable:$true] %s118_s21 }
   0x9   : > { %p3983_p6 = pneg %p4312_p3  ;;  %s7040_s16 = smov (%p27_p4, %s7038_s16), 0 }
   0xa   : > { %s4125_s22 = scalar_lea.vmem %s119_s21, 16  ;;  %p4133_p12 = scmp.lt.s32.totalorder %s119_s21, %s119_s21 }
   0xb   : > { %p3984_p7 = pnand %p4316_p5, %p3983_p6  ;;  %p4126_p8 = scmp.ne.s32.totalorder %s119_s21, %s4125_s22 }
   0xc   : > { %p4134_p13 = scmp.lt.s32.totalorder %s4125_s22, %s4125_s22 }
   0xd   : > { %p4127_p9 = pneg %p3984_p7 }
   0xe   : > { %p4135_p0 = por %p4134_p13, %p4133_p12 }
   0xf   : > { %p4128_p10 = pnand %p4127_p9, %p4126_p8 }
  0x11   : > { %p4129_p11 = pneg %p4128_p10 }
  0x13   : > { %p4136_p1 = pnand %p4135_p0, %p4129_p11 }
  0x15   : > { %4139 = shalt.err (!%p4136_p1)
}
  0x16   : > { %s4256_s23 = smov [#allocation4]   ;;  %145 = sbr.rel (%p4312_p3) target bundleno = 1022 (0x3fe), region = 28 }
  0x17   : > { %3986 = dma.vmem_to_smem (!%p3984_p7), %s119_s21, 16, %s4256_s23, [#allocation5]  }
  0x1d   : > { %4197 = dma.done.wait (%p4316_p5), [#allocation5], 16  }
  0x1e   : > { %4199 = vsyncadd (%p4316_p5), [#allocation5], 4294967280 }
  0x1f   : > { %151 = sfence }
  0x20   : > { %s173_s24 = smul.u32 48, %s4202_s9  ;;  %p174_p2 = scmp.lt.s32.totalorder %s4206_s10, 1 }
  0x21   : > { %s4352_s8 = smov 1  }
  0x22   : > { %s7042_s10 = smov (!%p174_p2, %s4206_s10), 1  ;;  %p176_p4 = scmp.lt.s32.totalorder %s173_s24, 95 }
  0x23   : > { %s3978_s25 = smul.u32 384, %s7042_s10  ;;  %s3977_s26 = sshll.u32 %s7042_s10, 5 }
  0x24   : > { %s7044_s24 = smov (!%p176_p4, %s173_s24), 95  ;;  %s4341_s29 = scalar_lea.vmem %s6666_s2, %s3977_s26 }
  0x25   : > { %s3870_s30 = sshll.u32 %s7044_s24, 2 }
  0x26   : > { %s180_s3 = sadd.s32 %s3978_s25, %s3870_s30 }
  0x27   : > { %s3871_s4 = sshll.u32 %s180_s3, 3 }
  0x28   : > { %s4346_s7 = scalar_lea.vmem %s6664_s0, %s3871_s4 }
  0x29   : > { %v189_v0 = vld [vmem:[%s4346_s7] sm:$0xff]   ;;  %v190_v1 = vld [vmem:[%s4346_s7 + $0x8] sm:$0xff]   ;;  %v191_v2 = vld [vmem:[%s4346_s7 + $0x10] sm:$0xff]  }
  0x2a   : > { %v192_v3 = vld [vmem:[%s4346_s7 + $0x18] sm:$0xff]   ;;  %v4224_v5 = vmov %v191_v2   ;;  %v4228_v6 = vmov %v190_v1   ;;  %v4232_v7 = vmov %v189_v0   ;;  %v4240_v9 = vmov %v191_v2  }
  0x2b   : > { %v4220_v4 = vmov %v192_v3   ;;  %v4236_v8 = vmov %v192_v3   ;;  %v4244_v10 = vmov %v190_v1   ;;  %v4248_v11 = vmov %v189_v0  }
  0x2c LB: >> { %s3874_s10 = sshll.u32 %s4254_s8, 5  ;;  %s198_s8 = sadd.s32 1, %s4254_s8   ;;  %s4254_s8 = sphi %s4352_s8, %s198_s8   ;;  %v4250_v11 = vphi %v4248_v11, %v4249_v11   ;;  %v4246_v10 = vphi %v4244_v10, %v4245_v10   ;;  %v4242_v9 = vphi %v4240_v9, %v4241_v9   ;;  %v4238_v8 = vphi %v4236_v8, %v4237_v8   ;;  %v4234_v7 = vphi %v4232_v7, %v4233_v7   ;;  %v4230_v6 = vphi %v4228_v6, %v4229_v6   ;;  %v4226_v5 = vphi %v4224_v5, %v4225_v5   ;;  %v4222_v4 = vphi %v4220_v4, %v4221_v4  }
  0x2d   : >> { %s208_s14 = scalar_lea.vmem %s4346_s7, %s3874_s10  ;;  %p195_p3 = scmp.ge.s32.totalorder %s198_s8, 48  }
  0x2e   : >> { %v209_v12 = vld [vmem:[%s208_s14] sm:$0xff]  ;;  %v210_v13 = vld [vmem:[%s208_s14 + $0x8] sm:$0xff]  ;;  %v211_v14 = vld [vmem:[%s208_s14 + $0x10] sm:$0xff]  ;;  %p3875_p5 = scmp.ne.s32.totalorder (%p195_p3), %s4202_s9, 0 }
  0x2f   : >> { %v212_v15 = vld [vmem:[%s208_s14 + $0x18] sm:$0xff]  ;;  %v213_v16 = vadd.f32 %v4250_v11, %v209_v12   ;;  %v214_v17 = vadd.f32 %v4246_v10, %v210_v13   ;;  %v215_v18 = vadd.f32 %v4242_v9, %v211_v14   ;;  %v217_v19 = vmax.f32 %v4234_v7, %v209_v12   ;;  %197 = sbr.rel (!%p195_p3) target bundleno = 44 (0x2c), region = 83 }
  0x30   : >> { %v216_v20 = vadd.f32 %v4238_v8, %v212_v15   ;;  %v218_v21 = vmax.f32 %v4230_v6, %v210_v13   ;;  %v219_v22 = vmax.f32 %v4226_v5, %v211_v14   ;;  %v220_v23 = vmax.f32 %v4222_v4, %v212_v15  }
  0x31   : >> { %v4233_v7 = vmov %v217_v19   ;;  %v4241_v9 = vmov %v215_v18   ;;  %v4245_v10 = vmov %v214_v17   ;;  %v4249_v11 = vmov %v213_v16  }
  0x32   : >> { %v4221_v4 = vmov %v220_v23   ;;  %v4225_v5 = vmov %v219_v22   ;;  %v4229_v6 = vmov %v218_v21   ;;  %v4237_v8 = vmov %v216_v20  }
  0x36   : > { %224 = sbr.rel (%p3875_p5) target bundleno = 61 (0x3d), region = 43  ;;  %vm225_vm0 = vcmask (!%p3875_p5), 261120  }
  0x37   : > { %226 = vst.msk [vmem:[#allocation2] sm:$0xff] (!%p3875_p5), %vm225_vm0, %v213_v16  ;;  %227 = vst.msk [vmem:[#allocation2 + $0x8] sm:$0xff] (!%p3875_p5), %vm225_vm0, %v214_v17 }
  0x38   : > { %228 = vst.msk [vmem:[#allocation2 + $0x10] sm:$0xff] (!%p3875_p5), %vm225_vm0, %v215_v18  ;;  %229 = vst.msk [vmem:[#allocation2 + $0x18] sm:$0xff] (!%p3875_p5), %vm225_vm0, %v216_v20 }
  0x39   : > { %230 = vst.msk [vmem:[#allocation3] sm:$0xff] (!%p3875_p5), %vm225_vm0, %v217_v19  ;;  %231 = vst.msk [vmem:[#allocation3 + $0x8] sm:$0xff] (!%p3875_p5), %vm225_vm0, %v218_v21 }
  0x3a   : > { %232 = vst.msk [vmem:[#allocation3 + $0x10] sm:$0xff] (!%p3875_p5), %vm225_vm0, %v219_v22  ;;  %233 = vst.msk [vmem:[#allocation3 + $0x18] sm:$0xff] (!%p3875_p5), %vm225_vm0, %v220_v23 }
  0x3d PF: > { %p3876_p6 = scmp.le.s32.totalorder %s4202_s9, 0 }
  0x3e   : > { %v238_v24 = vld [vmem:[#allocation2] sm:$0xff] (!%p3876_p6)  ;;  %vm246_vm1 = vcmask (!%p3876_p6), 261120   ;;  %v239_v25 = vld [vmem:[#allocation2 + $0x8] sm:$0xff] (!%p3876_p6) }
  0x3f   : > { %237 = sbr.rel (%p3876_p6) target bundleno = 70 (0x46), region = 47  ;;  %v240_v26 = vld [vmem:[#allocation2 + $0x10] sm:$0xff] (!%p3876_p6)  ;;  %v242_v27 = vadd.f32 (!%p3876_p6), %v238_v24, %v213_v16  ;;  %v243_v28 = vadd.f32 (!%p3876_p6), %v239_v25, %v214_v17  ;;  %v241_v30 = vld [vmem:[#allocation2 + $0x18] sm:$0xff] (!%p3876_p6) }
  0x40   : > { %v244_v29 = vadd.f32 (!%p3876_p6), %v240_v26, %v215_v18  ;;  %v251_v31 = vld [vmem:[#allocation3] sm:$0xff] (!%p3876_p6)  ;;  %v252_v32 = vld [vmem:[#allocation3 + $0x8] sm:$0xff] (!%p3876_p6)  ;;  %v245_v33 = vadd.f32 (!%p3876_p6), %v241_v30, %v216_v20 }
  0x41   : > { %v255_v34 = vmax.f32 (!%p3876_p6), %v251_v31, %v217_v19  ;;  %v256_v35 = vmax.f32 (!%p3876_p6), %v252_v32, %v218_v21  ;;  %v253_v36 = vld [vmem:[#allocation3 + $0x10] sm:$0xff] (!%p3876_p6)  ;;  %v254_v37 = vld [vmem:[#allocation3 + $0x18] sm:$0xff] (!%p3876_p6)  ;;  %247 = vst.msk [vmem:[#allocation2] sm:$0xff] (!%p3876_p6), %vm246_vm1, %v242_v27  ;;  %248 = vst.msk [vmem:[#allocation2 + $0x8] sm:$0xff] (!%p3876_p6), %vm246_vm1, %v243_v28 }
  0x42   : > { %249 = vst.msk [vmem:[#allocation2 + $0x10] sm:$0xff] (!%p3876_p6), %vm246_vm1, %v244_v29  ;;  %v257_v38 = vmax.f32 (!%p3876_p6), %v253_v36, %v219_v22  ;;  %v258_v39 = vmax.f32 (!%p3876_p6), %v254_v37, %v220_v23  ;;  %250 = vst.msk [vmem:[#allocation2 + $0x18] sm:$0xff] (!%p3876_p6), %vm246_vm1, %v245_v33 }
  0x43   : > { %259 = vst.msk [vmem:[#allocation3] sm:$0xff] (!%p3876_p6), %vm246_vm1, %v255_v34  ;;  %260 = vst.msk [vmem:[#allocation3 + $0x8] sm:$0xff] (!%p3876_p6), %vm246_vm1, %v256_v35 }
  0x44   : > { %261 = vst.msk [vmem:[#allocation3 + $0x10] sm:$0xff] (!%p3876_p6), %vm246_vm1, %v257_v38  ;;  %262 = vst.msk [vmem:[#allocation3 + $0x18] sm:$0xff] (!%p3876_p6), %vm246_vm1, %v258_v39 }
  0x46 PF: > { %p3877_p7 = scmp.ne.s32.totalorder %s4202_s9, 1 }
  0x48   : > { %266 = sbr.rel (%p3877_p7) target bundleno = 1022 (0x3fe), region = 51 }
  0x4f   : > { %v268_v40 = vld [vmem:[#allocation2 + $0x8] sm:$0xff]  ;;  %v269_v41 = vld [vmem:[#allocation2 + $0x10] sm:$0xff]  ;;  %v267_v42 = vld [vmem:[#allocation2] sm:$0xff]  ;;  %vm283_vm2 = vcmask 1042432   ;;  %s4257_s9 = smov 3   ;;  %s3878_s17 = sld [smem:[#allocation4 + $0x1]] }
  0x50   : > { %v272_v43 = vmul.f32 0.010416667, %v268_v40  ;;  %v273_v44 = vmul.f32 0.010416667, %v269_v41  ;;  %v271_v45 = vmul.f32 0.010416667, %v267_v42 }
  0x51   : > { %v270_v46 = vld [vmem:[#allocation2 + $0x18] sm:$0xff]  ;;  %v275_v51 = vld [vmem:[#allocation3] sm:$0xff]  ;;  %v276_v58 = vld [vmem:[#allocation3 + $0x8] sm:$0xff]  ;;  %vm312_vm3 = vcmask 23552   ;;  %vm318_vm4 = vcmask 285696   ;;  %s3879_s18 = sld [smem:[#allocation4 + $0x2]] }
  0x52   : > { %v285_v47 = vrot.slane %v272_v43, 5  ;;  %v287_v48 = vrot.slane %v273_v44, 5  ;;  %v284_v49 = vrot.slane %v271_v45, 5  ;;  %v274_v50 = vmul.f32 0.010416667, %v270_v46  ;;  %v277_v59 = vld [vmem:[#allocation3 + $0x10] sm:$0xff] }
  0x53   : > { %v328_v57 = vrot.slane %v275_v51, 5  ;;  %v329_v62 = vrot.slane %v276_v58, 5  ;;  %v331_v63 = vrot.slane %v277_v59, 5  ;;  %v278_v0 = vld [vmem:[#allocation3 + $0x18] sm:$0xff]  ;;  %s4258_s19 = smov 127   ;;  %s3880_s20 = sld [smem:[#allocation4 + $0x3]] }
  0x54   : > { %v288_v52 = vsel %vm283_vm2, %v285_v47, %v287_v48  ;;  %v293_v53 = vsel %vm283_vm2, 0.0, %v284_v49  ;;  %v289_v54 = vrot.slane %v274_v50, 5  ;;  %v286_v56 = vsel %vm283_vm2, %v284_v49, %v285_v47  ;;  %s4259_s21 = smov 126   ;;  %s3881_s22 = sld [smem:[#allocation4 + $0x4]] }
  0x55   : > { %301 = vrot.lane.b32.xlu1 %v288_v52, %s4257_s9  ;;  %297 = vrot.lane.b32.xlu0 %v293_v53, %s4257_s9  ;;  %v337_v61 = vsel %vm283_vm2, 0.0, %v328_v57  ;;  %v330_v1 = vsel %vm283_vm2, %v328_v57, %v329_v62  ;;  %v332_v2 = vsel %vm283_vm2, %v329_v62, %v331_v63  ;;  %v333_v3 = vrot.slane %v278_v0, 5  ;;  %s4260_s23 = smov 125   ;;  %s3882_s24 = sld [smem:[#allocation4 + $0x5]] }
  0x56   : > { %v290_v55 = vsel %vm283_vm2, %v287_v48, %v289_v54  ;;  %v294_v60 = vsel %vm283_vm2, %v289_v54, 0.0  ;;  %v377_v8 = vstv %s3878_s17  ;;  %s4261_s25 = smov 124   ;;  %s3883_s26 = sld [smem:[#allocation4 + $0x6]]  ;;  %vm544_vm5 = vcmask 1046528  }
  0x57   : > { %v334_v4 = vsel %vm283_vm2, %v331_v63, %v333_v3  ;;  %v338_v5 = vsel %vm283_vm2, %v333_v3, 0.0  ;;  %v403_v22 = vstv %s3879_s18  ;;  %s3885_s27 = sld [smem:[#allocation4 + $0x8]]  ;;  %s4262_s28 = smov 123   ;;  %vm796_vm6 = vcmask 1045504  }
  0x58   : > { %s3886_s30 = sld [smem:[#allocation4 + $0x9]]  ;;  %s4263_s3 = smov 122   ;;  %vm1048_vm7 = vcmask 1044480   ;;  %vm1300_vm8 = vcmask 1043456   ;;  %vm1803_vm9 = vcmask 1041408   ;;  %vm3739_vm10 = vcmask 261120  }
  0x59   : > { %303 = vrot.lane.b32.xlu1 %v290_v55, %s4257_s9  ;;  %299 = vrot.lane.b32.xlu0 %v286_v56, %s4257_s9  ;;  %v429_v27 = vstv %s3880_s20  ;;  %s3887_s4 = sld [smem:[#allocation4 + $0xa]]  ;;  %s3888_s5 = sld [smem:[#allocation4 + $0xb]] }
  0x5a   : > { %v455_v33 = vstv %s3881_s22  ;;  %s3889_s6 = sld [smem:[#allocation4 + $0xc]]  ;;  %s3890_s7 = sld [smem:[#allocation4 + $0xd]] }
  0x5b   : > { %v481_v41 = vstv %s3882_s24  ;;  %s3892_s8 = sld [smem:[#allocation4 + $0xf]]  ;;  %s3893_s10 = sld [smem:[#allocation4 + $0x10]] }
  0x5c   : > { %v507_v56 = vstv %s3883_s26  ;;  %s3894_s14 = sld [smem:[#allocation4 + $0x11]]  ;;  %s3896_s17 = sld [smem:[#allocation4 + $0x13]] }
  0x5d   : > { %305 = vrot.lane.b32.xlu0 %v294_v60, %s4257_s9  ;;  %341 = vrot.lane.b32.xlu1 %v337_v61, %s4257_s9  ;;  %v563_v61 = vstv %s3885_s27  ;;  %s3897_s18 = sld [smem:[#allocation4 + $0x14]]  ;;  %s3899_s20 = sld [smem:[#allocation4 + $0x16]] }
  0x5e   : > { %s3900_s22 = sld [smem:[#allocation4 + $0x17]]  ;;  %s3901_s24 = sld [smem:[#allocation4 + $0x18]] }
  0x5f   : > { %s3902_s26 = sld [smem:[#allocation4 + $0x19]]  ;;  %s3903_s27 = sld [smem:[#allocation4 + $0x1a]] }
  0x61   : > { %343 = vrot.lane.b32.xlu0 %v330_v1, %s4257_s9  ;;  %345 = vrot.lane.b32.xlu1 %v332_v2, %s4257_s9 }
  0x65   : > { %347 = vrot.lane.b32.xlu0 %v334_v4, %s4257_s9  ;;  %349 = vrot.lane.b32.xlu1 %v338_v5, %s4257_s9  ;;  %s3895_s9 = sld [smem:[#allocation4 + $0x12]] }
  0xc7   : > { %v302_v6 = vpop.permute.xlu1 %301  ;;  %v298_v7 = vpop.permute.xlu0 %297 }
  0xc8   : > { %v315_v9 = vsel %vm312_vm3, 0.0, %v302_v6  ;;  %v313_v10 = vsel %vm312_vm3, 0.0, %v298_v7 }
  0xc9   : > { %v4382_v11 = vsel %vm318_vm4, %v315_v9, 0.0  ;;  %v4385_v12 = vsel %vm318_vm4, %v313_v10, 0.0 }
  0xca   : > { %v378_v13 = vmul.f32 %v377_v8, %v4385_v12  ;;  %v380_v18 = vmul.f32 %v377_v8, %v4382_v11  ;;  %v404_v24 = vmul.f32 %v403_v22, %v4385_v12  ;;  %v406_v25 = vmul.f32 %v403_v22, %v4382_v11 }
  0xcb   : > { %v304_v14 = vpop.permute.xlu1 %303  ;;  %v300_v15 = vpop.permute.xlu0 %299  ;;  %v430_v28 = vmul.f32 %v429_v27, %v4385_v12  ;;  %v432_v30 = vmul.f32 %v429_v27, %v4382_v11  ;;  %v456_v35 = vmul.f32 %v455_v33, %v4385_v12  ;;  %v458_v38 = vmul.f32 %v455_v33, %v4382_v11 }
  0xcc   : > { %v316_v16 = vsel %vm312_vm3, 0.0, %v304_v14  ;;  %v314_v17 = vsel %vm312_vm3, 0.0, %v300_v15  ;;  %386 = vrot.lane.b32.xlu0 %v378_v13, %s4258_s19  ;;  %v482_v44 = vmul.f32 %v481_v41, %v4385_v12  ;;  %v484_v54 = vmul.f32 %v481_v41, %v4382_v11 }
  0xcd   : > { %v4393_v19 = vsel %vm318_vm4, %v314_v17, 0.0  ;;  %v4397_v21 = vsel %vm318_vm4, %v316_v16, 0.0  ;;  %v508_v59 = vmul.f32 %v507_v56, %v4385_v12  ;;  %v564_v0 = vmul.f32 %v563_v61, %v4385_v12 }
  0xce   : > { %v379_v20 = vmul.f32 %v377_v8, %v4393_v19  ;;  %v381_v23 = vmul.f32 %v377_v8, %v4397_v21  ;;  %v405_v26 = vmul.f32 %v403_v22, %v4393_v19  ;;  %v407_v29 = vmul.f32 %v403_v22, %v4397_v21 }
  0xcf   : > { %v431_v31 = vmul.f32 %v429_v27, %v4393_v19  ;;  %v306_v32 = vpop.permute.xlu0 %305  ;;  %v342_v34 = vpop.permute.xlu1 %341  ;;  %v433_v36 = vmul.f32 %v429_v27, %v4397_v21  ;;  %v457_v39 = vmul.f32 %v455_v33, %v4393_v19  ;;  %v459_v45 = vmul.f32 %v455_v33, %v4397_v21 }
  0xd0   : > { %390 = vrot.lane.b32.xlu0 %v380_v18, %s4258_s19  ;;  %388 = vrot.lane.b32.xlu1 %v379_v20, %s4258_s19  ;;  %v356_v42 = vsel %vm312_vm3, 0.0, %v342_v34  ;;  %v483_v55 = vmul.f32 %v481_v41, %v4393_v19  ;;  %v485_v60 = vmul.f32 %v481_v41, %v4397_v21  ;;  %v565_v62 = vmul.f32 %v563_v61, %v4393_v19 }
  0xd1   : > { %v4429_v46 = vsel %vm318_vm4, %v356_v42, 0.0  ;;  %v317_v63 = vsel %vm312_vm3, 0.0, %v306_v32  ;;  %v510_v1 = vmul.f32 %v507_v56, %v4382_v11  ;;  %v509_v2 = vmul.f32 %v507_v56, %v4393_v19 }
  0xd2   : > { %v575_v3 = vrot.slane %v565_v62, 1  ;;  %v566_v4 = vmul.f32 %v563_v61, %v4382_v11  ;;  %v567_v5 = vmul.f32 %v563_v61, %v4397_v21  ;;  %v4465_v6 = vsel %vm318_vm4, %v317_v63, 0.0 }
  0xd3   : > { %v344_v37 = vpop.permute.xlu0 %343  ;;  %v346_v40 = vpop.permute.xlu1 %345  ;;  %v574_v7 = vrot.slane %v564_v0, 1  ;;  %v600_v8 = vstv %s3886_s30  ;;  %v511_v9 = vmul.f32 %v507_v56, %v4397_v21  ;;  %v568_v16 = vmul.f32 %v563_v61, %v4465_v6  ;;  %s3904_s30 = sld [smem:[#allocation4 + $0x1b]] }
  0xd4   : > { %412 = vrot.lane.b32.xlu0 %v404_v24, %s4259_s21  ;;  %392 = vrot.lane.b32.xlu1 %v381_v23, %s4258_s19  ;;  %v357_v47 = vsel %vm312_vm3, 0.0, %v344_v37  ;;  %v358_v49 = vsel %vm312_vm3, 0.0, %v346_v40  ;;  %v602_v10 = vmul.f32 %v600_v8, %v4393_v19  ;;  %v577_v14 = vrot.slane %v566_v4, 1 }
  0xd5   : > { %v4433_v48 = vsel %vm318_vm4, %v357_v47, 0.0  ;;  %v4440_v52 = vsel %vm318_vm4, %v358_v49, 0.0  ;;  %v576_v13 = vsel %vm544_vm5, %v574_v7, %v575_v3  ;;  %v579_v15 = vrot.slane %v567_v5, 1 }
  0xd6   : > { %v601_v17 = vmul.f32 %v600_v8, %v4385_v12  ;;  %v612_v18 = vrot.slane %v602_v10, 1  ;;  %v603_v20 = vmul.f32 %v600_v8, %v4382_v11  ;;  %v578_v23 = vsel %vm544_vm5, %v575_v3, %v577_v14 }
  0xd7   : > { %v348_v43 = vpop.permute.xlu0 %347  ;;  %v350_v51 = vpop.permute.xlu1 %349  ;;  %v580_v22 = vsel %vm544_vm5, %v577_v14, %v579_v15  ;;  %v581_v24 = vrot.slane %v568_v16, 1  ;;  %v605_v33 = vmul.f32 %v600_v8, %v4465_v6  ;;  %v674_v42 = vstv %s3888_s5  ;;  %s3907_s5 = sld [smem:[#allocation4 + $0x1e]] }
  0xd8   : > { %416 = vrot.lane.b32.xlu0 %v406_v25, %s4259_s21  ;;  %414 = vrot.lane.b32.xlu1 %v405_v26, %s4259_s21  ;;  %v359_v50 = vsel %vm312_vm3, 0.0, %v348_v43  ;;  %v360_v57 = vsel %vm312_vm3, 0.0, %v350_v51  ;;  %v604_v25 = vmul.f32 %v600_v8, %v4397_v21  ;;  %v611_v26 = vrot.slane %v601_v17, 1 }
  0xd9   : > { %v4443_v53 = vsel %vm318_vm4, %v359_v50, 0.0  ;;  %v4451_v58 = vsel %vm318_vm4, %v360_v57, 0.0  ;;  %v675_v51 = vmul.f32 %v674_v42, %v4385_v12  ;;  %v711_v0 = vstv %s3889_s6  ;;  %s3908_s6 = sld [smem:[#allocation4 + $0x1f]] }
  0xda   : > { %v613_v27 = vsel %vm544_vm5, %v611_v26, %v612_v18  ;;  %v713_v3 = vmul.f32 %v711_v0, %v4393_v19  ;;  %v679_v4 = vmul.f32 %v674_v42, %v4465_v6  ;;  %v712_v5 = vmul.f32 %v711_v0, %v4385_v12 }
  0xdb   : > { %v685_v61 = vrot.slane %v675_v51, 1  ;;  %v714_v8 = vmul.f32 %v711_v0, %v4382_v11  ;;  %v715_v14 = vmul.f32 %v711_v0, %v4397_v21  ;;  %v748_v16 = vstv %s3890_s7  ;;  %s3909_s7 = sld [smem:[#allocation4 + $0x20]] }
  0xdc   : > { %438 = vrot.lane.b32.xlu0 %v430_v28, %s4260_s23  ;;  %418 = vrot.lane.b32.xlu1 %v407_v29, %s4259_s21  ;;  %v614_v28 = vrot.slane %v603_v20, 1  ;;  %v637_v29 = vstv %s3887_s4  ;;  %v723_v10 = vrot.slane %v713_v3, 1  ;;  %s3906_s4 = sld [smem:[#allocation4 + $0x1d]] }
  0xdd   : > { %v639_v32 = vmul.f32 %v637_v29, %v4393_v19  ;;  %v638_v34 = vmul.f32 %v637_v29, %v4385_v12  ;;  %v641_v40 = vmul.f32 %v637_v29, %v4397_v21  ;;  %v642_v50 = vmul.f32 %v637_v29, %v4465_v6 }
  0xde   : > { %v725_v17 = vrot.slane %v714_v8, 1 }
  0xdf   : > { %v648_v41 = vrot.slane %v638_v34, 1  ;;  %v653_v49 = vrot.slane %v641_v40, 1 }
  0xe0   : > { %442 = vrot.lane.b32.xlu0 %v432_v30, %s4260_s23  ;;  %440 = vrot.lane.b32.xlu1 %v431_v31, %s4260_s23  ;;  %v582_v30 = vsel %vm544_vm5, %v579_v15, %v581_v24  ;;  %v616_v31 = vrot.slane %v604_v25, 1  ;;  %v722_v15 = vrot.slane %v712_v5, 1  ;;  %v716_v24 = vmul.f32 %v711_v0, %v4465_v6 }
  0xe1   : > { %v749_v25 = vmul.f32 %v748_v16, %v4385_v12  ;;  %v726_v26 = vsel %vm544_vm5, %v723_v10, %v725_v17 }
  0xe2   : > { %v617_v37 = vsel %vm544_vm5, %v614_v28, %v616_v31  ;;  %v724_v20 = vsel %vm544_vm5, %v722_v15, %v723_v10 }
  0xe4   : > { %464 = vrot.lane.b32.xlu0 %v456_v35, %s4261_s25  ;;  %444 = vrot.lane.b32.xlu1 %v433_v36, %s4260_s23  ;;  %v615_v35 = vsel %vm544_vm5, %v612_v18, %v614_v28  ;;  %v640_v36 = vmul.f32 %v637_v29, %v4382_v11  ;;  %v750_v18 = vmul.f32 %v748_v16, %v4393_v19  ;;  %v729_v29 = vrot.slane %v716_v24, 1 }
  0xe6   : > { %v651_v43 = vrot.slane %v640_v36, 1 }
  0xe8   : > { %468 = vrot.lane.b32.xlu0 %v458_v38, %s4261_s25  ;;  %466 = vrot.lane.b32.xlu1 %v457_v39, %s4261_s25  ;;  %v649_v38 = vrot.slane %v639_v32, 1  ;;  %v618_v39 = vrot.slane %v605_v33, 1  ;;  %v654_v56 = vsel %vm544_vm5, %v651_v43, %v653_v49  ;;  %v759_v32 = vrot.slane %v749_v25, 1 }
  0xe9   : > { %v815_v33 = vstv %s3892_s8  ;;  %s3910_s8 = sld [smem:[#allocation4 + $0x21]] }
  0xea   : > { %v619_v47 = vsel %vm544_vm5, %v616_v31, %v618_v39  ;;  %v652_v57 = vsel %vm544_vm5, %v649_v38, %v651_v43  ;;  %v752_v31 = vmul.f32 %v748_v16, %v4397_v21  ;;  %v753_v39 = vmul.f32 %v748_v16, %v4465_v6 }
  0xeb   : > { %v816_v40 = vmul.f32 %v815_v33, %v4385_v12 }
  0xec   : > { %490 = vrot.lane.b32.xlu0 %v482_v44, %s4262_s28  ;;  %470 = vrot.lane.b32.xlu1 %v459_v45, %s4261_s25  ;;  %v676_v44 = vmul.f32 %v674_v42, %v4393_v19  ;;  %v650_v45 = vsel %vm544_vm5, %v648_v41, %v649_v38  ;;  %v764_v38 = vrot.slane %v752_v31, 1 }
  0xf0   : > { %494 = vrot.lane.b32.xlu0 %v484_v54, %s4262_s28  ;;  %492 = vrot.lane.b32.xlu1 %v483_v55, %s4262_s28  ;;  %v686_v54 = vrot.slane %v676_v44, 1  ;;  %v677_v55 = vmul.f32 %v674_v42, %v4382_v11 }
  0xf2   : > { %v687_v62 = vsel %vm544_vm5, %v685_v61, %v686_v54  ;;  %v688_v63 = vrot.slane %v677_v55, 1 }
  0xf4   : > { %516 = vrot.lane.b32.xlu0 %v508_v59, %s4263_s3  ;;  %496 = vrot.lane.b32.xlu1 %v485_v60, %s4262_s28  ;;  %v655_v59 = vrot.slane %v642_v50, 1  ;;  %v678_v60 = vmul.f32 %v674_v42, %v4397_v21  ;;  %v689_v7 = vsel %vm544_vm5, %v686_v54, %v688_v63  ;;  %v818_v42 = vmul.f32 %v815_v33, %v4382_v11 }
  0xf5   : > { %v852_v50 = vstv %s3893_s10  ;;  %s3911_s10 = sld [smem:[#allocation4 + $0x22]] }
  0xf6   : > { %v829_v51 = vrot.slane %v818_v42, 2  ;;  %v854_v54 = vmul.f32 %v852_v50, %v4393_v19 }
  0xf8   : > { %520 = vrot.lane.b32.xlu0 %v510_v1, %s4263_s3  ;;  %518 = vrot.lane.b32.xlu1 %v509_v2, %s4263_s3  ;;  %v656_v1 = vsel %vm544_vm5, %v653_v49, %v655_v59  ;;  %v690_v2 = vrot.slane %v678_v60, 1  ;;  %v826_v49 = vrot.slane %v816_v40, 2  ;;  %v820_v59 = vmul.f32 %v815_v33, %v4465_v6 }
  0xf9   : > { %v853_v60 = vmul.f32 %v852_v50, %v4385_v12 }
  0xfa   : > { %v833_v0 = vrot.slane %v820_v59, 2 }
  0xfb   : > { %v863_v3 = vrot.slane %v853_v60, 2 }
  0xfc   : > { %583 = vrot.lane.b32.xlu0 %v576_v13, %s4258_s19  ;;  %522 = vrot.lane.b32.xlu1 %v511_v9, %s4263_s3  ;;  %v691_v9 = vsel %vm544_vm5, %v688_v63, %v690_v2  ;;  %v692_v13 = vrot.slane %v679_v4, 1  ;;  %v889_v4 = vstv %s3894_s14  ;;  %s3913_s14 = sld [smem:[#allocation4 + $0x24]] }
 0x100   : > { %587 = vrot.lane.b32.xlu0 %v580_v22, %s4258_s19  ;;  %585 = vrot.lane.b32.xlu1 %v578_v23, %s4258_s19  ;;  %v693_v22 = vsel %vm544_vm5, %v690_v2, %v692_v13  ;;  %v727_v23 = vrot.slane %v715_v14, 1  ;;  %v856_v2 = vmul.f32 %v852_v50, %v4397_v21  ;;  %v857_v13 = vmul.f32 %v852_v50, %v4465_v6 }
 0x101   : > { %v890_v14 = vmul.f32 %v889_v4, %v4385_v12 }
 0x102   : > { %v728_v28 = vsel %vm544_vm5, %v725_v17, %v727_v23  ;;  %v730_v36 = vsel %vm544_vm5, %v727_v23, %v729_v29  ;;  %v868_v10 = vrot.slane %v856_v2, 2 }
 0x103   : > { %v900_v23 = vrot.slane %v890_v14, 2 }
 0x104   : > { %620 = vrot.lane.b32.xlu0 %v613_v27, %s4259_s21  ;;  %589 = vrot.lane.b32.xlu1 %v582_v30, %s4258_s19  ;;  %v760_v27 = vrot.slane %v750_v18, 1  ;;  %v751_v30 = vmul.f32 %v748_v16, %v4382_v11  ;;  %v892_v16 = vmul.f32 %v889_v4, %v4382_v11 }
 0x106   : > { %v761_v34 = vsel %vm544_vm5, %v759_v32, %v760_v27  ;;  %v903_v25 = vrot.slane %v892_v16, 2 }
 0x108   : > { %624 = vrot.lane.b32.xlu0 %v617_v37, %s4259_s21  ;;  %622 = vrot.lane.b32.xlu1 %v615_v35, %s4259_s21  ;;  %v817_v35 = vmul.f32 %v815_v33, %v4393_v19  ;;  %v762_v37 = vrot.slane %v751_v30, 1  ;;  %v894_v30 = vmul.f32 %v889_v4, %v4465_v6 }
 0x10a   : > { %v827_v41 = vrot.slane %v817_v35, 2  ;;  %v765_v43 = vsel %vm544_vm5, %v762_v37, %v764_v38  ;;  %v763_v44 = vsel %vm544_vm5, %v760_v27, %v762_v37 }
 0x10c   : > { %657 = vrot.lane.b32.xlu0 %v650_v45, %s4260_s23  ;;  %626 = vrot.lane.b32.xlu1 %v619_v47, %s4259_s21  ;;  %v766_v45 = vrot.slane %v753_v39, 1  ;;  %v819_v47 = vmul.f32 %v815_v33, %v4397_v21  ;;  %v828_v55 = vsel %vm796_vm6, %v826_v49, %v827_v41  ;;  %v830_v61 = vsel %vm796_vm6, %v827_v41, %v829_v51 }
 0x110   : > { %661 = vrot.lane.b32.xlu0 %v654_v56, %s4260_s23  ;;  %659 = vrot.lane.b32.xlu1 %v652_v57, %s4260_s23  ;;  %v767_v56 = vsel %vm544_vm5, %v764_v38, %v766_v45  ;;  %v831_v57 = vrot.slane %v819_v47, 2  ;;  %v907_v38 = vrot.slane %v894_v30, 2 }
 0x112   : > { %v832_v63 = vsel %vm796_vm6, %v829_v51, %v831_v57  ;;  %v834_v8 = vsel %vm796_vm6, %v831_v57, %v833_v0  ;;  %v1000_v0 = vstv %s3897_s18  ;;  %s3916_s18 = sld [smem:[#allocation4 + $0x27]] }
 0x113   : > { %v1003_v16 = vmul.f32 %v1000_v0, %v4382_v11 }
 0x114   : > { %694 = vrot.lane.b32.xlu0 %v687_v62, %s4261_s25  ;;  %663 = vrot.lane.b32.xlu1 %v656_v1, %s4260_s23  ;;  %v864_v62 = vrot.slane %v854_v54, 2  ;;  %v855_v1 = vmul.f32 %v852_v50, %v4382_v11 }
 0x116   : > { %v865_v5 = vsel %vm796_vm6, %v863_v3, %v864_v62 }
 0x118   : > { %698 = vrot.lane.b32.xlu0 %v691_v9, %s4261_s25  ;;  %696 = vrot.lane.b32.xlu1 %v689_v7, %s4261_s25  ;;  %v891_v7 = vmul.f32 %v889_v4, %v4393_v19  ;;  %v866_v9 = vrot.slane %v855_v1, 2 }
 0x11a   : > { %v901_v15 = vrot.slane %v891_v7, 2  ;;  %v869_v17 = vsel %vm796_vm6, %v866_v9, %v868_v10  ;;  %v867_v18 = vsel %vm796_vm6, %v864_v62, %v866_v9 }
 0x11c   : > { %731 = vrot.lane.b32.xlu0 %v724_v20, %s4262_s28  ;;  %700 = vrot.lane.b32.xlu1 %v693_v22, %s4261_s25  ;;  %v870_v20 = vrot.slane %v857_v13, 2  ;;  %v893_v22 = vmul.f32 %v889_v4, %v4397_v21  ;;  %v902_v24 = vsel %vm796_vm6, %v900_v23, %v901_v15  ;;  %v1002_v4 = vmul.f32 %v1000_v0, %v4393_v19 }
 0x11e   : > { %v871_v27 = vsel %vm796_vm6, %v868_v10, %v870_v20  ;;  %v1001_v10 = vmul.f32 %v1000_v0, %v4385_v12 }
 0x120   : > { %735 = vrot.lane.b32.xlu0 %v728_v28, %s4262_s28  ;;  %733 = vrot.lane.b32.xlu1 %v726_v26, %s4262_s28  ;;  %v926_v26 = vstv %s3895_s9  ;;  %v905_v28 = vrot.slane %v893_v22, 2  ;;  %v1004_v22 = vmul.f32 %v1000_v0, %v4397_v21  ;;  %v1011_v23 = vrot.slane %v1001_v10, 2  ;;  %s3914_s9 = sld [smem:[#allocation4 + $0x25]] }
 0x121   : > { %v928_v29 = vmul.f32 %v926_v26, %v4393_v19  ;;  %v927_v31 = vmul.f32 %v926_v26, %v4385_v12  ;;  %v929_v33 = vmul.f32 %v926_v26, %v4382_v11  ;;  %v931_v50 = vmul.f32 %v926_v26, %v4465_v6 }
 0x122   : > { %v906_v35 = vsel %vm796_vm6, %v903_v25, %v905_v28  ;;  %v908_v47 = vsel %vm796_vm6, %v905_v28, %v907_v38 }
 0x123   : > { %v938_v37 = vrot.slane %v928_v29, 2  ;;  %v937_v39 = vrot.slane %v927_v31, 2  ;;  %v940_v42 = vrot.slane %v929_v33, 2  ;;  %v1016_v31 = vrot.slane %v1004_v22, 2 }
 0x124   : > { %768 = vrot.lane.b32.xlu0 %v761_v34, %s4263_s3  ;;  %737 = vrot.lane.b32.xlu1 %v730_v36, %s4262_s28  ;;  %v930_v34 = vmul.f32 %v926_v26, %v4397_v21  ;;  %v904_v36 = vsel %vm796_vm6, %v901_v15, %v903_v25  ;;  %v1005_v33 = vmul.f32 %v1000_v0, %v4465_v6 }
 0x125   : > { %v939_v45 = vsel %vm796_vm6, %v937_v39, %v938_v37  ;;  %v941_v59 = vsel %vm796_vm6, %v938_v37, %v940_v42 }
 0x128   : > { %772 = vrot.lane.b32.xlu0 %v765_v43, %s4263_s3  ;;  %770 = vrot.lane.b32.xlu1 %v763_v44, %s4263_s3  ;;  %v942_v43 = vrot.slane %v930_v34, 2  ;;  %v963_v44 = vstv %s3896_s17  ;;  %s3915_s17 = sld [smem:[#allocation4 + $0x26]] }
 0x129   : > { %v965_v49 = vmul.f32 %v963_v44, %v4393_v19  ;;  %v964_v51 = vmul.f32 %v963_v44, %v4385_v12  ;;  %v966_v57 = vmul.f32 %v963_v44, %v4382_v11  ;;  %v967_v62 = vmul.f32 %v963_v44, %v4397_v21 }
 0x12a   : > { %v968_v9 = vmul.f32 %v963_v44, %v4465_v6 }
 0x12b   : > { %v975_v60 = vrot.slane %v965_v49, 2  ;;  %v977_v3 = vrot.slane %v966_v57, 2 }
 0x12c   : > { %835 = vrot.lane.b32.xlu0 %v828_v55, %s4258_s19  ;;  %774 = vrot.lane.b32.xlu1 %v767_v56, %s4263_s3  ;;  %v943_v56 = vsel %vm796_vm6, %v940_v42, %v942_v43  ;;  %v981_v20 = vrot.slane %v968_v9, 2  ;;  %v1018_v42 = vrot.slane %v1005_v33, 2 }
 0x12d   : > { %v978_v15 = vsel %vm796_vm6, %v975_v60, %v977_v3 }
 0x12e   : > { %v1019_v57 = vsel %vm796_vm6, %v1016_v31, %v1018_v42 }
 0x130   : > { %839 = vrot.lane.b32.xlu0 %v832_v63, %s4258_s19  ;;  %837 = vrot.lane.b32.xlu1 %v830_v61, %s4258_s19  ;;  %v944_v61 = vrot.slane %v931_v50, 2  ;;  %v974_v63 = vrot.slane %v964_v51, 2 }
 0x132   : > { %v945_v7 = vsel %vm796_vm6, %v942_v43, %v944_v61 }
 0x134   : > { %872 = vrot.lane.b32.xlu0 %v865_v5, %s4259_s21  ;;  %841 = vrot.lane.b32.xlu1 %v834_v8, %s4258_s19  ;;  %v976_v5 = vsel %vm796_vm6, %v974_v63, %v975_v60  ;;  %v979_v8 = vrot.slane %v967_v62, 2 }
 0x136   : > { %v982_v30 = vsel %vm796_vm6, %v979_v8, %v981_v20 }
 0x138   : > { %876 = vrot.lane.b32.xlu0 %v869_v17, %s4259_s21  ;;  %874 = vrot.lane.b32.xlu1 %v867_v18, %s4259_s21  ;;  %v980_v17 = vsel %vm796_vm6, %v977_v3, %v979_v8  ;;  %v1012_v18 = vrot.slane %v1002_v4, 2 }
 0x13a   : > { %v1013_v29 = vsel %vm796_vm6, %v1011_v23, %v1012_v18 }
 0x13c   : > { %909 = vrot.lane.b32.xlu0 %v902_v24, %s4260_s23  ;;  %878 = vrot.lane.b32.xlu1 %v871_v27, %s4259_s21  ;;  %v1067_v24 = vstv %s3899_s20  ;;  %v1014_v27 = vrot.slane %v1003_v16, 2  ;;  %s3917_s20 = sld [smem:[#allocation4 + $0x28]] }
 0x13d   : > { %v1069_v28 = vmul.f32 %v1067_v24, %v4393_v19  ;;  %v1068_v34 = vmul.f32 %v1067_v24, %v4385_v12  ;;  %v1070_v43 = vmul.f32 %v1067_v24, %v4382_v11  ;;  %v1071_v44 = vmul.f32 %v1067_v24, %v4397_v21 }
 0x13e   : > { %v4580_v32 = vpop.permute.xlu0 %386  ;;  %v1015_v37 = vsel %vm796_vm6, %v1012_v18, %v1014_v27  ;;  %v1017_v39 = vsel %vm796_vm6, %v1014_v27, %v1016_v31  ;;  %v1072_v61 = vmul.f32 %v1067_v24, %v4465_v6 }
 0x13f   : > { %v1079_v38 = vrot.slane %v1069_v28, 3  ;;  %v1083_v60 = vrot.slane %v1071_v44, 3 }
 0x140   : > { %913 = vrot.lane.b32.xlu0 %v906_v35, %s4260_s23  ;;  %911 = vrot.lane.b32.xlu1 %v904_v36, %s4260_s23  ;;  %v1085_v8 = vrot.slane %v1072_v61, 3 }
 0x142   : > { %v4588_v40 = vpop.permute.xlu1 %388  ;;  %v4590_v41 = vpop.permute.xlu0 %390  ;;  %v1086_v23 = vsel %vm1048_vm7, %v1083_v60, %v1085_v8 }
 0x144   : > { %946 = vrot.lane.b32.xlu0 %v939_v45, %s4261_s25  ;;  %915 = vrot.lane.b32.xlu1 %v908_v47, %s4260_s23  ;;  %v1078_v45 = vrot.slane %v1068_v34, 3  ;;  %v1104_v47 = vstv %s3900_s22  ;;  %s3918_s22 = sld [smem:[#allocation4 + $0x29]] }
 0x145   : > { %v1105_v62 = vmul.f32 %v1104_v47, %v4385_v12  ;;  %v1107_v4 = vmul.f32 %v1104_v47, %v4382_v11  ;;  %v1108_v9 = vmul.f32 %v1104_v47, %v4397_v21  ;;  %v1109_v27 = vmul.f32 %v1104_v47, %v4465_v6 }
 0x146   : > { %v4599_v54 = vpop.permute.xlu1 %392  ;;  %v4601_v55 = vpop.permute.xlu0 %412  ;;  %v1080_v51 = vsel %vm1048_vm7, %v1078_v45, %v1079_v38 }
 0x147   : > { %v1115_v10 = vrot.slane %v1105_v62, 3  ;;  %v1118_v18 = vrot.slane %v1107_v4, 3  ;;  %v1120_v24 = vrot.slane %v1108_v9, 3 }
 0x148   : > { %950 = vrot.lane.b32.xlu0 %v943_v56, %s4261_s25  ;;  %948 = vrot.lane.b32.xlu1 %v941_v59, %s4261_s25  ;;  %v1106_v56 = vmul.f32 %v1104_v47, %v4393_v19  ;;  %v1081_v59 = vrot.slane %v1070_v43, 3  ;;  %v1178_v43 = vstv %s3902_s26  ;;  %s3921_s26 = sld [smem:[#allocation4 + $0x2c]] }
 0x149   : > { %v1121_v34 = vsel %vm1048_vm7, %v1118_v18, %v1120_v24  ;;  %v1179_v61 = vmul.f32 %v1178_v43, %v4385_v12 }
 0x14a   : > { %v4609_v1 = vpop.permute.xlu1 %414  ;;  %v4611_v2 = vpop.permute.xlu0 %416  ;;  %v1116_v3 = vrot.slane %v1106_v56, 3 }
 0x14c   : > { %983 = vrot.lane.b32.xlu0 %v976_v5, %s4262_s28  ;;  %952 = vrot.lane.b32.xlu1 %v945_v7, %s4261_s25  ;;  %v1084_v5 = vsel %vm1048_vm7, %v1081_v59, %v1083_v60  ;;  %v1082_v7 = vsel %vm1048_vm7, %v1079_v38, %v1081_v59  ;;  %v1117_v22 = vsel %vm1048_vm7, %v1115_v10, %v1116_v3 }
 0x14d   : > { %v1119_v31 = vsel %vm1048_vm7, %v1116_v3, %v1118_v18  ;;  %v1182_v10 = vmul.f32 %v1178_v43, %v4397_v21 }
 0x14e   : > { %v4620_v13 = vpop.permute.xlu1 %418  ;;  %v4622_v14 = vpop.permute.xlu0 %438 }
 0x150   : > { %987 = vrot.lane.b32.xlu0 %v980_v17, %s4262_s28  ;;  %985 = vrot.lane.b32.xlu1 %v978_v15, %s4262_s28  ;;  %v1141_v15 = vstv %s3901_s24  ;;  %s3920_s24 = sld [smem:[#allocation4 + $0x2b]] }
 0x151   : > { %v1143_v20 = vmul.f32 %v1141_v15, %v4393_v19  ;;  %v1142_v28 = vmul.f32 %v1141_v15, %v4385_v12  ;;  %v1144_v38 = vmul.f32 %v1141_v15, %v4382_v11  ;;  %v1146_v60 = vmul.f32 %v1141_v15, %v4465_v6 }
 0x152   : > { %v4630_v25 = vpop.permute.xlu1 %440  ;;  %v4632_v26 = vpop.permute.xlu0 %442 }
 0x153   : > { %v1153_v33 = vrot.slane %v1143_v20, 3  ;;  %v1152_v42 = vrot.slane %v1142_v28, 3  ;;  %v1159_v9 = vrot.slane %v1146_v60, 3  ;;  %v1194_v28 = vrot.slane %v1182_v10, 3 }
 0x154   : > { %1020 = vrot.lane.b32.xlu0 %v1013_v29, %s4263_s3  ;;  %989 = vrot.lane.b32.xlu1 %v982_v30, %s4262_s28 }
 0x155   : > { %v1154_v47 = vsel %vm1048_vm7, %v1152_v42, %v1153_v33 }
 0x156   : > { %v4641_v35 = vpop.permute.xlu1 %444  ;;  %v4643_v36 = vpop.permute.xlu0 %464 }
 0x158   : > { %1024 = vrot.lane.b32.xlu0 %v1017_v39, %s4263_s3  ;;  %1022 = vrot.lane.b32.xlu1 %v1015_v37, %s4263_s3  ;;  %v1122_v37 = vrot.slane %v1109_v27, 3  ;;  %v1145_v39 = vmul.f32 %v1141_v15, %v4397_v21  ;;  %v1189_v15 = vrot.slane %v1179_v61, 3 }
 0x15a   : > { %v4651_v49 = vpop.permute.xlu1 %466  ;;  %v4653_v50 = vpop.permute.xlu0 %468  ;;  %v1123_v56 = vsel %vm1048_vm7, %v1120_v24, %v1122_v37  ;;  %v1157_v59 = vrot.slane %v1145_v39, 3  ;;  %v1215_v24 = vstv %s3903_s27  ;;  %s3922_s27 = sld [smem:[#allocation4 + $0x2d]] }
 0x15b   : > { %v1218_v42 = vmul.f32 %v1215_v24, %v4382_v11 }
 0x15c   : > { %1087 = vrot.lane.b32.xlu0 %v1080_v51, %s4258_s19  ;;  %1026 = vrot.lane.b32.xlu1 %v1019_v57, %s4263_s3  ;;  %v1180_v51 = vmul.f32 %v1178_v43, %v4393_v19  ;;  %v1155_v57 = vrot.slane %v1144_v38, 3  ;;  %v1160_v27 = vsel %vm1048_vm7, %v1157_v59, %v1159_v9 }
 0x15d   : > { %v1229_v61 = vrot.slane %v1218_v42, 3 }
 0x15e   : > { %v4662_v63 = vpop.permute.xlu1 %470  ;;  %v4664_v0 = vpop.permute.xlu0 %490  ;;  %v1190_v4 = vrot.slane %v1180_v51, 3  ;;  %v1156_v8 = vsel %vm1048_vm7, %v1153_v33, %v1155_v57  ;;  %v1183_v33 = vmul.f32 %v1178_v43, %v4465_v6 }
 0x160   : > { %1091 = vrot.lane.b32.xlu0 %v1084_v5, %s4258_s19  ;;  %1089 = vrot.lane.b32.xlu1 %v1082_v7, %s4258_s19  ;;  %v1181_v5 = vmul.f32 %v1178_v43, %v4382_v11  ;;  %v1158_v7 = vsel %vm1048_vm7, %v1155_v57, %v1157_v59  ;;  %v1219_v43 = vmul.f32 %v1215_v24, %v4397_v21 }
 0x162   : > { %v4672_v16 = vpop.permute.xlu1 %492  ;;  %v4674_v17 = vpop.permute.xlu0 %494  ;;  %v1231_v9 = vrot.slane %v1219_v43, 3  ;;  %v1319_v43 = vstv %s3906_s4  ;;  %s3924_s4 = sld [smem:[#allocation4 + $0x2f]] }
 0x164   : > { %1124 = vrot.lane.b32.xlu0 %v1117_v22, %s4259_s21  ;;  %1093 = vrot.lane.b32.xlu1 %v1086_v23, %s4258_s19  ;;  %v1191_v22 = vsel %vm1048_vm7, %v1189_v15, %v1190_v4  ;;  %v1192_v23 = vrot.slane %v1181_v5, 3  ;;  %v1252_v5 = vstv %s3904_s30  ;;  %s3923_s30 = sld [smem:[#allocation4 + $0x2e]] }
 0x165   : > { %v1254_v10 = vmul.f32 %v1252_v5, %v4393_v19  ;;  %v1253_v15 = vmul.f32 %v1252_v5, %v4385_v12 }
 0x166   : > { %v4683_v29 = vpop.permute.xlu1 %496  ;;  %v4685_v30 = vpop.permute.xlu0 %516  ;;  %v1193_v39 = vsel %vm1048_vm7, %v1190_v4, %v1192_v23  ;;  %v1220_v4 = vmul.f32 %v1215_v24, %v4465_v6 }
 0x167   : > { %6670 = vst [vmem:[#allocation7_spill] sm:$0xff] %v4683_v29 }
 0x168   : > { %1128 = vrot.lane.b32.xlu0 %v1121_v34, %s4259_s21  ;;  %1126 = vrot.lane.b32.xlu1 %v1119_v31, %s4259_s21  ;;  %v1217_v31 = vmul.f32 %v1215_v24, %v4393_v19  ;;  %v1216_v34 = vmul.f32 %v1215_v24, %v4385_v12 }
 0x16a   : > { %v4693_v44 = vpop.permute.xlu1 %518  ;;  %v4695_v45 = vpop.permute.xlu0 %520  ;;  %v1227_v51 = vrot.slane %v1217_v31, 3  ;;  %v1226_v57 = vrot.slane %v1216_v34, 3  ;;  %v1232_v31 = vsel %vm1048_vm7, %v1229_v61, %v1231_v9  ;;  %v1256_v34 = vmul.f32 %v1252_v5, %v4397_v21 }
 0x16b   : > { %6671 = vst [vmem:[#allocation8_spill] sm:$0xff] %v4693_v44  ;;  %6672 = vst [vmem:[#allocation9_spill] sm:$0xff] %v4695_v45 }
 0x16c   : > { %1161 = vrot.lane.b32.xlu0 %v1154_v47, %s4260_s23  ;;  %1130 = vrot.lane.b32.xlu1 %v1123_v56, %s4259_s21  ;;  %v1195_v47 = vsel %vm1048_vm7, %v1192_v23, %v1194_v28  ;;  %v1196_v56 = vrot.slane %v1183_v33, 3  ;;  %v1230_v24 = vsel %vm1048_vm7, %v1227_v51, %v1229_v61  ;;  %v1264_v33 = vrot.slane %v1254_v10, 3 }
 0x16e   : > { %v4704_v62 = vpop.permute.xlu1 %522  ;;  %v4706_v3 = vpop.permute.xlu0 %583 }
 0x16f   : > { %6673 = vst [vmem:[#allocation10_spill] sm:$0xff] %v4704_v62  ;;  %6674 = vst [vmem:[#allocation11_spill] sm:$0xff] %v4706_v3 }
 0x170   : > { %1165 = vrot.lane.b32.xlu0 %v1158_v7, %s4260_s23  ;;  %1163 = vrot.lane.b32.xlu1 %v1156_v8, %s4260_s23  ;;  %v1228_v7 = vsel %vm1048_vm7, %v1226_v57, %v1227_v51  ;;  %v1197_v8 = vsel %vm1048_vm7, %v1194_v28, %v1196_v56  ;;  %v1255_v28 = vmul.f32 %v1252_v5, %v4382_v11 }
 0x171   : > { %v1257_v51 = vmul.f32 %v1252_v5, %v4465_v6  ;;  %v1322_v5 = vmul.f32 %v1319_v43, %v4382_v11 }
 0x172   : > { %v4714_v18 = vpop.permute.xlu1 %585  ;;  %v4716_v20 = vpop.permute.xlu0 %587  ;;  %v1266_v61 = vrot.slane %v1255_v28, 3  ;;  %v1323_v28 = vmul.f32 %v1319_v43, %v4397_v21 }
 0x173   : > { %6675 = vst [vmem:[#allocation12_spill] sm:$0xff] %v4714_v18  ;;  %6676 = vst [vmem:[#allocation13_spill] sm:$0xff] %v4716_v20 }
 0x174   : > { %1198 = vrot.lane.b32.xlu0 %v1191_v22, %s4261_s25  ;;  %1167 = vrot.lane.b32.xlu1 %v1160_v27, %s4260_s23  ;;  %v1233_v27 = vrot.slane %v1220_v4, 3  ;;  %v1268_v4 = vrot.slane %v1256_v34, 3 }
 0x176   : > { %v4725_v37 = vpop.permute.xlu1 %589  ;;  %v4727_v38 = vpop.permute.xlu0 %620  ;;  %v1234_v56 = vsel %vm1048_vm7, %v1231_v9, %v1233_v27  ;;  %v1270_v9 = vrot.slane %v1257_v51, 3  ;;  %v1269_v27 = vsel %vm1048_vm7, %v1266_v61, %v1268_v4 }
 0x177   : > { %6677 = vst [vmem:[#allocation14_spill] sm:$0xff] %v4725_v37  ;;  %6678 = vst [vmem:[#allocation15_spill] sm:$0xff] %v4727_v38 }
 0x178   : > { %1202 = vrot.lane.b32.xlu0 %v1195_v47, %s4261_s25  ;;  %1200 = vrot.lane.b32.xlu1 %v1193_v39, %s4261_s25  ;;  %v1263_v39 = vrot.slane %v1253_v15, 3  ;;  %v1271_v51 = vsel %vm1048_vm7, %v1268_v4, %v1270_v9 }
 0x17a   : > { %v4735_v59 = vpop.permute.xlu1 %622  ;;  %v4737_v60 = vpop.permute.xlu0 %624  ;;  %v1265_v57 = vsel %vm1048_vm7, %v1263_v39, %v1264_v33 }
 0x17b   : > { %6679 = vst [vmem:[#allocation16_spill] sm:$0xff] %v4735_v59  ;;  %6680 = vst [vmem:[#allocation17_spill] sm:$0xff] %v4737_v60 }
 0x17c   : > { %1235 = vrot.lane.b32.xlu0 %v1228_v7, %s4262_s28  ;;  %1204 = vrot.lane.b32.xlu1 %v1197_v8, %s4261_s25  ;;  %v1321_v7 = vmul.f32 %v1319_v43, %v4393_v19  ;;  %v1320_v8 = vmul.f32 %v1319_v43, %v4385_v12 }
 0x17e   : > { %v4746_v22 = vpop.permute.xlu1 %626  ;;  %v4748_v23 = vpop.permute.xlu0 %657  ;;  %v1330_v34 = vrot.slane %v1320_v8, 4 }
 0x17f   : > { %6681 = vst [vmem:[#allocation18_spill] sm:$0xff] %v4746_v22  ;;  %6682 = vst [vmem:[#allocation19_spill] sm:$0xff] %v4748_v23 }
 0x180   : > { %1239 = vrot.lane.b32.xlu0 %v1232_v31, %s4262_s28  ;;  %1237 = vrot.lane.b32.xlu1 %v1230_v24, %s4262_s28  ;;  %v1267_v24 = vsel %vm1048_vm7, %v1264_v33, %v1266_v61  ;;  %v1331_v31 = vrot.slane %v1321_v7, 4  ;;  %v1356_v33 = vstv %s3907_s5  ;;  %v1333_v7 = vrot.slane %v1322_v5, 4  ;;  %s3925_s5 = sld [smem:[#allocation4 + $0x30]] }
 0x181   : > { %v1357_v8 = vmul.f32 %v1356_v33, %v4385_v12 }
 0x182   : > { %v4756_v42 = vpop.permute.xlu1 %659  ;;  %v4758_v47 = vpop.permute.xlu0 %661  ;;  %v1332_v61 = vsel %vm1300_vm8, %v1330_v34, %v1331_v31  ;;  %v1334_v9 = vsel %vm1300_vm8, %v1331_v31, %v1333_v7  ;;  %v1360_v34 = vmul.f32 %v1356_v33, %v4397_v21 }
 0x183   : > { %6683 = vst [vmem:[#allocation20_spill] sm:$0xff] %v4756_v42  ;;  %6684 = vst [vmem:[#allocation21_spill] sm:$0xff] %v4758_v47 }
 0x184   : > { %1241 = vrot.lane.b32.xlu1 %v1234_v56, %s4262_s28  ;;  %1272 = vrot.lane.b32.xlu0 %v1265_v57, %s4263_s3  ;;  %v1324_v57 = vmul.f32 %v1319_v43, %v4465_v6  ;;  %v1359_v43 = vmul.f32 %v1356_v33, %v4382_v11 }
 0x186   : > { %v4767_v10 = vpop.permute.xlu1 %663  ;;  %v4769_v15 = vpop.permute.xlu0 %694  ;;  %v1337_v4 = vrot.slane %v1324_v57, 4  ;;  %v1361_v57 = vmul.f32 %v1356_v33, %v4465_v6 }
 0x187   : > { %6685 = vst [vmem:[#allocation22_spill] sm:$0xff] %v4767_v10  ;;  %6686 = vst [vmem:[#allocation23_spill] sm:$0xff] %v4769_v15  ;;  %v1335_v10 = vrot.slane %v1323_v28, 4 }
 0x188   : > { %1274 = vrot.lane.b32.xlu1 %v1267_v24, %s4263_s3  ;;  %1276 = vrot.lane.b32.xlu0 %v1269_v27, %s4263_s3  ;;  %v1358_v24 = vmul.f32 %v1356_v33, %v4393_v19 }
 0x189   : > { %v1336_v5 = vsel %vm1300_vm8, %v1333_v7, %v1335_v10  ;;  %v1338_v31 = vsel %vm1300_vm8, %v1335_v10, %v1337_v4 }
 0x18a   : > { %v4777_v39 = vpop.permute.xlu1 %696  ;;  %v4779_v56 = vpop.permute.xlu0 %698  ;;  %v1368_v28 = vrot.slane %v1358_v24, 4  ;;  %v1372_v24 = vrot.slane %v1360_v34, 4 }
 0x18b   : > { %6687 = vst [vmem:[#allocation24_spill] sm:$0xff] %v4777_v39  ;;  %6688 = vst [vmem:[#allocation25_spill] sm:$0xff] %v4779_v56  ;;  %v1393_v39 = vstv %s3908_s6  ;;  %s3927_s6 = sld [smem:[#allocation4 + $0x32]] }
 0x18c   : > { %1278 = vrot.lane.b32.xlu1 %v1271_v51, %s4263_s3  ;;  %1339 = vrot.lane.b32.xlu0 %v1332_v61, %s4258_s19  ;;  %v1367_v51 = vrot.slane %v1357_v8, 4  ;;  %v1395_v15 = vmul.f32 %v1393_v39, %v4393_v19  ;;  %v1394_v8 = vmul.f32 %v1393_v39, %v4385_v12  ;;  %v1396_v34 = vmul.f32 %v1393_v39, %v4382_v11 }
 0x18e   : > { %v4788_v27 = vpop.permute.xlu1 %700  ;;  %v4790_v56 = vpop.permute.xlu0 %731  ;;  %v1369_v7 = vsel %vm1300_vm8, %v1367_v51, %v1368_v28  ;;  %v1405_v4 = vrot.slane %v1395_v15, 4  ;;  %v1397_v51 = vmul.f32 %v1393_v39, %v4397_v21 }
 0x18f   : > { %6689 = vst [vmem:[#allocation26_spill] sm:$0xff] %v4788_v27  ;;  %6690 = vst [vmem:[#allocation27_spill] sm:$0xff] %v4790_v56  ;;  %v1370_v56 = vrot.slane %v1359_v43, 4 }
 0x190   : > { %1341 = vrot.lane.b32.xlu1 %v1334_v9, %s4258_s19  ;;  %1343 = vrot.lane.b32.xlu0 %v1336_v5, %s4258_s19  ;;  %v1374_v5 = vrot.slane %v1361_v57, 4  ;;  %v1430_v57 = vstv %s3909_s7  ;;  %s3928_s7 = sld [smem:[#allocation4 + $0x33]] }
 0x191   : > { %v1371_v33 = vsel %vm1300_vm8, %v1368_v28, %v1370_v56  ;;  %v1373_v10 = vsel %vm1300_vm8, %v1370_v56, %v1372_v24  ;;  %v1398_v28 = vmul.f32 %v1393_v39, %v4465_v6  ;;  %v1407_v56 = vrot.slane %v1396_v34, 4 }
 0x192   : > { %v4798_v61 = vpop.permute.xlu1 %733  ;;  %v4800_v27 = vpop.permute.xlu0 %735  ;;  %v1433_v39 = vmul.f32 %v1430_v57, %v4382_v11 }
 0x193   : > { %6691 = vst [vmem:[#allocation28_spill] sm:$0xff] %v4798_v61  ;;  %6692 = vst [vmem:[#allocation29_spill] sm:$0xff] %v4800_v27  ;;  %v1409_v27 = vrot.slane %v1397_v51, 4  ;;  %v1432_v61 = vmul.f32 %v1430_v57, %v4393_v19 }
 0x194   : > { %1345 = vrot.lane.b32.xlu1 %v1338_v31, %s4258_s19  ;;  %1376 = vrot.lane.b32.xlu0 %v1369_v7, %s4259_s21  ;;  %v1404_v31 = vrot.slane %v1394_v8, 4  ;;  %v1431_v8 = vmul.f32 %v1430_v57, %v4385_v12 }
 0x195   : > { %v1410_v34 = vsel %vm1300_vm8, %v1407_v56, %v1409_v27  ;;  %v1442_v51 = vrot.slane %v1432_v61, 4 }
 0x196   : > { %v4809_v9 = vpop.permute.xlu1 %737  ;;  %v4811_v43 = vpop.permute.xlu0 %768  ;;  %v1406_v15 = vsel %vm1300_vm8, %v1404_v31, %v1405_v4  ;;  %v1434_v31 = vmul.f32 %v1430_v57, %v4397_v21 }
 0x197   : > { %6693 = vst [vmem:[#allocation30_spill] sm:$0xff] %v4809_v9  ;;  %6694 = vst [vmem:[#allocation31_spill] sm:$0xff] %v4811_v43  ;;  %v1375_v43 = vsel %vm1300_vm8, %v1372_v24, %v1374_v5  ;;  %v1411_v24 = vrot.slane %v1398_v28, 4  ;;  %v1408_v5 = vsel %vm1300_vm8, %v1405_v4, %v1407_v56  ;;  %v1435_v28 = vmul.f32 %v1430_v57, %v4465_v6 }
 0x198   : > { %1378 = vrot.lane.b32.xlu1 %v1371_v33, %s4259_s21  ;;  %1380 = vrot.lane.b32.xlu0 %v1373_v10, %s4259_s21  ;;  %v1446_v56 = vrot.slane %v1434_v31, 4 }
 0x199   : > { %v1412_v4 = vsel %vm1300_vm8, %v1409_v27, %v1411_v24 }
 0x19a   : > { %v4819_v7 = vpop.permute.xlu1 %770  ;;  %v4821_v9 = vpop.permute.xlu0 %772 }
 0x19b   : > { %6695 = vst [vmem:[#allocation32_spill] sm:$0xff] %v4819_v7  ;;  %6696 = vst [vmem:[#allocation33_spill] sm:$0xff] %v4821_v9  ;;  %v1467_v7 = vstv %s3910_s8  ;;  %s3929_s8 = sld [smem:[#allocation4 + $0x34]] }
 0x19c   : > { %1382 = vrot.lane.b32.xlu1 %v1375_v43, %s4259_s21  ;;  %1413 = vrot.lane.b32.xlu0 %v1406_v15, %s4260_s23  ;;  %v1441_v43 = vrot.slane %v1431_v8, 4  ;;  %v1469_v9 = vmul.f32 %v1467_v7, %v4393_v19  ;;  %v1468_v8 = vmul.f32 %v1467_v7, %v4385_v12  ;;  %v1470_v31 = vmul.f32 %v1467_v7, %v4382_v11 }
 0x19e   : > { %v4830_v33 = vpop.permute.xlu1 %774  ;;  %v4832_v10 = vpop.permute.xlu0 %835  ;;  %v1443_v61 = vsel %vm1300_vm8, %v1441_v43, %v1442_v51  ;;  %v1479_v24 = vrot.slane %v1469_v9, 4  ;;  %v1471_v43 = vmul.f32 %v1467_v7, %v4397_v21 }
 0x19f   : > { %6697 = vst [vmem:[#allocation34_spill] sm:$0xff] %v4830_v33  ;;  %6698 = vst [vmem:[#allocation35_spill] sm:$0xff] %v4832_v10  ;;  %v1444_v10 = vrot.slane %v1433_v39, 4 }
 0x1a0   : > { %1415 = vrot.lane.b32.xlu1 %v1408_v5, %s4260_s23  ;;  %1417 = vrot.lane.b32.xlu0 %v1410_v34, %s4260_s23  ;;  %v1448_v34 = vrot.slane %v1435_v28, 4  ;;  %v1504_v28 = vstv %s3911_s10  ;;  %s3930_s10 = sld [smem:[#allocation4 + $0x35]] }
 0x1a1   : > { %v1445_v57 = vsel %vm1300_vm8, %v1442_v51, %v1444_v10  ;;  %v1447_v27 = vsel %vm1300_vm8, %v1444_v10, %v1446_v56  ;;  %v1472_v51 = vmul.f32 %v1467_v7, %v4465_v6  ;;  %v1481_v10 = vrot.slane %v1470_v31, 4 }
 0x1a2   : > { %v4840_v15 = vpop.permute.xlu1 %837  ;;  %v4842_v33 = vpop.permute.xlu0 %839  ;;  %v1507_v7 = vmul.f32 %v1504_v28, %v4382_v11 }
 0x1a3   : > { %6699 = vst [vmem:[#allocation36_spill] sm:$0xff] %v4840_v15  ;;  %6700 = vst [vmem:[#allocation37_spill] sm:$0xff] %v4842_v33  ;;  %v1483_v15 = vrot.slane %v1471_v43, 4  ;;  %v1506_v33 = vmul.f32 %v1504_v28, %v4393_v19 }
 0x1a4   : > { %1419 = vrot.lane.b32.xlu1 %v1412_v4, %s4260_s23  ;;  %1450 = vrot.lane.b32.xlu0 %v1443_v61, %s4261_s25  ;;  %v1478_v4 = vrot.slane %v1468_v8, 4  ;;  %v1505_v8 = vmul.f32 %v1504_v28, %v4385_v12 }
 0x1a5   : > { %v1484_v31 = vsel %vm1300_vm8, %v1481_v10, %v1483_v15  ;;  %v1516_v43 = vrot.slane %v1506_v33, 4  ;;  %v1509_v33 = vmul.f32 %v1504_v28, %v4465_v6 }
 0x1a6   : > { %v4851_v5 = vpop.permute.xlu1 %841  ;;  %v4853_v39 = vpop.permute.xlu0 %872  ;;  %v1480_v9 = vsel %vm1300_vm8, %v1478_v4, %v1479_v24  ;;  %v1508_v4 = vmul.f32 %v1504_v28, %v4397_v21 }
 0x1a7   : > { %6701 = vst [vmem:[#allocation38_spill] sm:$0xff] %v4851_v5  ;;  %6702 = vst [vmem:[#allocation39_spill] sm:$0xff] %v4853_v39  ;;  %v1449_v39 = vsel %vm1300_vm8, %v1446_v56, %v1448_v34  ;;  %v1485_v56 = vrot.slane %v1472_v51, 4  ;;  %v1482_v34 = vsel %vm1300_vm8, %v1479_v24, %v1481_v10 }
 0x1a8   : > { %1452 = vrot.lane.b32.xlu1 %v1445_v57, %s4261_s25  ;;  %1454 = vrot.lane.b32.xlu0 %v1447_v27, %s4261_s25  ;;  %v1520_v10 = vrot.slane %v1508_v4, 4  ;;  %v1522_v4 = vrot.slane %v1509_v33, 4 }
 0x1a9   : > { %v1486_v51 = vsel %vm1300_vm8, %v1483_v15, %v1485_v56 }
 0x1aa   : > { %v4861_v61 = vpop.permute.xlu1 %874  ;;  %v4863_v5 = vpop.permute.xlu0 %876 }
 0x1ab   : > { %6703 = vst [vmem:[#allocation40_spill] sm:$0xff] %v4861_v61  ;;  %6704 = vst [vmem:[#allocation41_spill] sm:$0xff] %v4863_v5  ;;  %v1570_v61 = vstv %s3913_s14  ;;  %s3931_s14 = sld [smem:[#allocation4 + $0x36]] }
 0x1ac   : > { %1456 = vrot.lane.b32.xlu1 %v1449_v39, %s4261_s25  ;;  %1487 = vrot.lane.b32.xlu0 %v1480_v9, %s4262_s28  ;;  %v1515_v39 = vrot.slane %v1505_v8, 4  ;;  %v1572_v5 = vmul.f32 %v1570_v61, %v4393_v19  ;;  %v1571_v8 = vmul.f32 %v1570_v61, %v4385_v12  ;;  %v1573_v56 = vmul.f32 %v1570_v61, %v4382_v11 }
 0x1ae   : > { %v4872_v57 = vpop.permute.xlu1 %878  ;;  %v4874_v27 = vpop.permute.xlu0 %909  ;;  %v1517_v24 = vsel %vm1300_vm8, %v1515_v39, %v1516_v43  ;;  %v1582_v28 = vrot.slane %v1572_v5, 5  ;;  %v1574_v39 = vmul.f32 %v1570_v61, %v4397_v21 }
 0x1af   : > { %6705 = vst [vmem:[#allocation42_spill] sm:$0xff] %v4872_v57  ;;  %6706 = vst [vmem:[#allocation43_spill] sm:$0xff] %v4874_v27  ;;  %v1518_v27 = vrot.slane %v1507_v7, 4 }
 0x1b0   : > { %1489 = vrot.lane.b32.xlu1 %v1482_v34, %s4262_s28  ;;  %1491 = vrot.lane.b32.xlu0 %v1484_v31, %s4262_s28  ;;  %v1586_v33 = vrot.slane %v1574_v39, 5 }
 0x1b1   : > { %v1519_v15 = vsel %vm1300_vm8, %v1516_v43, %v1518_v27  ;;  %v1521_v7 = vsel %vm1300_vm8, %v1518_v27, %v1520_v10  ;;  %v1575_v43 = vmul.f32 %v1570_v61, %v4465_v6  ;;  %v1523_v27 = vsel %vm1300_vm8, %v1520_v10, %v1522_v4 }
 0x1b2   : > { %v4882_v9 = vpop.permute.xlu1 %911  ;;  %v4884_v57 = vpop.permute.xlu0 %913 }
 0x1b3   : > { %6707 = vst [vmem:[#allocation44_spill] sm:$0xff] %v4882_v9  ;;  %6708 = vst [vmem:[#allocation45_spill] sm:$0xff] %v4884_v57  ;;  %v1588_v4 = vrot.slane %v1575_v43, 5 }
 0x1b4   : > { %1493 = vrot.lane.b32.xlu1 %v1486_v51, %s4262_s28  ;;  %1524 = vrot.lane.b32.xlu0 %v1517_v24, %s4263_s3  ;;  %v1581_v51 = vrot.slane %v1571_v8, 5 }
 0x1b6   : > { %v4893_v34 = vpop.permute.xlu1 %915  ;;  %v4895_v31 = vpop.permute.xlu0 %946  ;;  %v1583_v5 = vsel %vm283_vm2, %v1581_v51, %v1582_v28 }
 0x1b7   : > { %6709 = vst [vmem:[#allocation46_spill] sm:$0xff] %v4893_v34  ;;  %6710 = vst [vmem:[#allocation47_spill] sm:$0xff] %v4895_v31  ;;  %v1584_v31 = vrot.slane %v1573_v56, 5  ;;  %v1607_v34 = vstv %s3914_s9  ;;  %s3932_s9 = sld [smem:[#allocation4 + $0x37]] }
 0x1b8   : > { %1526 = vrot.lane.b32.xlu1 %v1519_v15, %s4263_s3  ;;  %1528 = vrot.lane.b32.xlu0 %v1521_v7, %s4263_s3  ;;  %v1609_v57 = vmul.f32 %v1607_v34, %v4393_v19  ;;  %v1608_v8 = vmul.f32 %v1607_v34, %v4385_v12  ;;  %v1610_v7 = vmul.f32 %v1607_v34, %v4382_v11 }
 0x1b9   : > { %v1585_v61 = vsel %vm283_vm2, %v1582_v28, %v1584_v31  ;;  %v1587_v10 = vsel %vm283_vm2, %v1584_v31, %v1586_v33  ;;  %v1611_v51 = vmul.f32 %v1607_v34, %v4397_v21  ;;  %v1612_v28 = vmul.f32 %v1607_v34, %v4465_v6 }
 0x1ba   : > { %v4903_v24 = vpop.permute.xlu1 %948  ;;  %v4905_v9 = vpop.permute.xlu0 %950  ;;  %v1619_v39 = vrot.slane %v1609_v57, 5  ;;  %v1589_v31 = vsel %vm283_vm2, %v1586_v33, %v1588_v4 }
 0x1bb   : > { %6711 = vst [vmem:[#allocation48_spill] sm:$0xff] %v4903_v24  ;;  %6712 = vst [vmem:[#allocation49_spill] sm:$0xff] %v4905_v9  ;;  %v1623_v43 = vrot.slane %v1611_v51, 5 }
 0x1bc   : > { %1530 = vrot.lane.b32.xlu1 %v1523_v27, %s4263_s3  ;;  %1590 = vrot.lane.b32.xlu0 %v1583_v5, %s4258_s19  ;;  %v1618_v27 = vrot.slane %v1608_v8, 5 }
 0x1be   : > { %v4914_v15 = vpop.permute.xlu1 %952  ;;  %v4916_v56 = vpop.permute.xlu0 %983  ;;  %v1620_v57 = vsel %vm283_vm2, %v1618_v27, %v1619_v39 }
 0x1bf   : > { %6713 = vst [vmem:[#allocation50_spill] sm:$0xff] %v4914_v15  ;;  %6714 = vst [vmem:[#allocation51_spill] sm:$0xff] %v4916_v56  ;;  %v1621_v56 = vrot.slane %v1610_v7, 5  ;;  %v1644_v15 = vstv %s3915_s17  ;;  %s3934_s17 = sld [smem:[#allocation4 + $0x39]] }
 0x1c0   : > { %1592 = vrot.lane.b32.xlu1 %v1585_v61, %s4258_s19  ;;  %1594 = vrot.lane.b32.xlu0 %v1587_v10, %s4258_s19  ;;  %v1646_v9 = vmul.f32 %v1644_v15, %v4393_v19  ;;  %v1645_v8 = vmul.f32 %v1644_v15, %v4385_v12  ;;  %v1625_v10 = vrot.slane %v1612_v28, 5  ;;  %v1647_v51 = vmul.f32 %v1644_v15, %v4382_v11 }
 0x1c1   : > { %v1622_v34 = vsel %vm283_vm2, %v1619_v39, %v1621_v56  ;;  %v1624_v33 = vsel %vm283_vm2, %v1621_v56, %v1623_v43  ;;  %v1648_v27 = vmul.f32 %v1644_v15, %v4397_v21  ;;  %v1649_v39 = vmul.f32 %v1644_v15, %v4465_v6 }
 0x1c2   : > { %v4924_v5 = vpop.permute.xlu1 %985  ;;  %v4926_v24 = vpop.permute.xlu0 %987  ;;  %v1656_v4 = vrot.slane %v1646_v9, 5  ;;  %v1681_v28 = vstv %s3916_s18  ;;  %v1658_v56 = vrot.slane %v1647_v51, 5  ;;  %s3935_s18 = sld [smem:[#allocation4 + $0x3a]] }
 0x1c3   : > { %6715 = vst [vmem:[#allocation52_spill] sm:$0xff] %v4924_v5  ;;  %6716 = vst [vmem:[#allocation53_spill] sm:$0xff] %v4926_v24  ;;  %v1683_v24 = vmul.f32 %v1681_v28, %v4393_v19  ;;  %v1684_v15 = vmul.f32 %v1681_v28, %v4382_v11 }
 0x1c4   : > { %1596 = vrot.lane.b32.xlu1 %v1589_v31, %s4258_s19  ;;  %1627 = vrot.lane.b32.xlu0 %v1620_v57, %s4259_s21  ;;  %v1655_v31 = vrot.slane %v1645_v8, 5  ;;  %v1682_v8 = vmul.f32 %v1681_v28, %v4385_v12 }
 0x1c6   : > { %v4935_v61 = vpop.permute.xlu1 %989  ;;  %v4937_v7 = vpop.permute.xlu0 %1020  ;;  %v1657_v9 = vsel %vm283_vm2, %v1655_v31, %v1656_v4  ;;  %v1685_v31 = vmul.f32 %v1681_v28, %v4397_v21 }
 0x1c7   : > { %6717 = vst [vmem:[#allocation54_spill] sm:$0xff] %v4935_v61  ;;  %6718 = vst [vmem:[#allocation55_spill] sm:$0xff] %v4937_v7  ;;  %v1626_v7 = vsel %vm283_vm2, %v1623_v43, %v1625_v10  ;;  %v1660_v61 = vrot.slane %v1648_v27, 5  ;;  %v1662_v43 = vrot.slane %v1649_v39, 5  ;;  %v1659_v10 = vsel %vm283_vm2, %v1656_v4, %v1658_v56 }
 0x1c8   : > { %1629 = vrot.lane.b32.xlu1 %v1622_v34, %s4259_s21  ;;  %1631 = vrot.lane.b32.xlu0 %v1624_v33, %s4259_s21  ;;  %v1693_v27 = vrot.slane %v1683_v24, 5  ;;  %v1695_v24 = vrot.slane %v1684_v15, 5 }
 0x1c9   : > { %v1661_v51 = vsel %vm283_vm2, %v1658_v56, %v1660_v61  ;;  %v1663_v39 = vsel %vm283_vm2, %v1660_v61, %v1662_v43  ;;  %v1697_v56 = vrot.slane %v1685_v31, 5 }
 0x1ca   : > { %v4945_v57 = vpop.permute.xlu1 %1022  ;;  %v4947_v5 = vpop.permute.xlu0 %1024  ;;  %v1696_v43 = vsel %vm283_vm2, %v1693_v27, %v1695_v24 }
 0x1cb   : > { %6719 = vst [vmem:[#allocation56_spill] sm:$0xff] %v4945_v57  ;;  %6720 = vst [vmem:[#allocation57_spill] sm:$0xff] %v4947_v5  ;;  %v1698_v15 = vsel %vm283_vm2, %v1695_v24, %v1697_v56 }
 0x1cc   : > { %1633 = vrot.lane.b32.xlu1 %v1626_v7, %s4259_s21  ;;  %1664 = vrot.lane.b32.xlu0 %v1657_v9, %s4260_s23  ;;  %v1692_v7 = vrot.slane %v1682_v8, 5 }
 0x1ce   : > { %v4956_v34 = vpop.permute.xlu1 %1026  ;;  %v4958_v33 = vpop.permute.xlu0 %1087  ;;  %v1694_v4 = vsel %vm283_vm2, %v1692_v7, %v1693_v27 }
 0x1cf   : > { %6721 = vst [vmem:[#allocation58_spill] sm:$0xff] %v4956_v34  ;;  %6722 = vst [vmem:[#allocation59_spill] sm:$0xff] %v4958_v33  ;;  %v1686_v33 = vmul.f32 %v1681_v28, %v4465_v6  ;;  %v1718_v34 = vstv %s3917_s20  ;;  %s3936_s20 = sld [smem:[#allocation4 + $0x3b]] }
 0x1d0   : > { %1666 = vrot.lane.b32.xlu1 %v1659_v10, %s4260_s23  ;;  %1668 = vrot.lane.b32.xlu0 %v1661_v51, %s4260_s23  ;;  %v1720_v5 = vmul.f32 %v1718_v34, %v4393_v19  ;;  %v1719_v8 = vmul.f32 %v1718_v34, %v4385_v12  ;;  %v1721_v28 = vmul.f32 %v1718_v34, %v4382_v11 }
 0x1d1   : > { %v1699_v61 = vrot.slane %v1686_v33, 5  ;;  %v1722_v7 = vmul.f32 %v1718_v34, %v4397_v21 }
 0x1d2   : > { %v4966_v9 = vpop.permute.xlu1 %1089  ;;  %v4968_v57 = vpop.permute.xlu0 %1091  ;;  %v1730_v31 = vrot.slane %v1720_v5, 5  ;;  %v1732_v5 = vrot.slane %v1721_v28, 5 }
 0x1d3   : > { %6723 = vst [vmem:[#allocation60_spill] sm:$0xff] %v4966_v9  ;;  %6724 = vst [vmem:[#allocation61_spill] sm:$0xff] %v4968_v57  ;;  %v1700_v33 = vsel %vm283_vm2, %v1697_v56, %v1699_v61  ;;  %v1734_v24 = vrot.slane %v1722_v7, 5 }
 0x1d4   : > { %1670 = vrot.lane.b32.xlu1 %v1663_v39, %s4260_s23  ;;  %1701 = vrot.lane.b32.xlu0 %v1694_v4, %s4261_s25  ;;  %v1729_v39 = vrot.slane %v1719_v8, 5  ;;  %v1733_v61 = vsel %vm283_vm2, %v1730_v31, %v1732_v5 }
 0x1d5   : > { %v1735_v28 = vsel %vm283_vm2, %v1732_v5, %v1734_v24 }
 0x1d6   : > { %v4977_v10 = vpop.permute.xlu1 %1093  ;;  %v4979_v51 = vpop.permute.xlu0 %1124  ;;  %v1731_v27 = vsel %vm283_vm2, %v1729_v39, %v1730_v31 }
 0x1d7   : > { %6725 = vst [vmem:[#allocation62_spill] sm:$0xff] %v4977_v10  ;;  %6726 = vst [vmem:[#allocation63_spill] sm:$0xff] %v4979_v51  ;;  %v1723_v51 = vmul.f32 %v1718_v34, %v4465_v6  ;;  %v1755_v10 = vstv %s3918_s22  ;;  %s3884_s22 = sld [smem:[#allocation4 + $0x7]] }
 0x1d8   : > { %1703 = vrot.lane.b32.xlu1 %v1696_v43, %s4261_s25  ;;  %1705 = vrot.lane.b32.xlu0 %v1698_v15, %s4261_s25  ;;  %v1757_v57 = vmul.f32 %v1755_v10, %v4393_v19  ;;  %v1756_v8 = vmul.f32 %v1755_v10, %v4385_v12  ;;  %v1758_v34 = vmul.f32 %v1755_v10, %v4382_v11 }
 0x1d9   : > { %v1736_v56 = vrot.slane %v1723_v51, 5  ;;  %v1759_v39 = vmul.f32 %v1755_v10, %v4397_v21 }
 0x1da   : > { %v4987_v4 = vpop.permute.xlu1 %1126  ;;  %v4989_v9 = vpop.permute.xlu0 %1128  ;;  %v1767_v7 = vrot.slane %v1757_v57, 5  ;;  %v1760_v57 = vmul.f32 %v1755_v10, %v4465_v6 }
 0x1db   : > { %6727 = vst [vmem:[#allocation64_spill] sm:$0xff] %v4987_v4  ;;  %6728 = vst [vmem:[#allocation65_spill] sm:$0xff] %v4989_v9  ;;  %v1737_v51 = vsel %vm283_vm2, %v1734_v24, %v1736_v56  ;;  %v1771_v5 = vrot.slane %v1759_v39, 5 }
 0x1dc   : > { %1707 = vrot.lane.b32.xlu1 %v1700_v33, %s4261_s25  ;;  %1738 = vrot.lane.b32.xlu0 %v1731_v27, %s4262_s28  ;;  %v1766_v33 = vrot.slane %v1756_v8, 5  ;;  %v1773_v39 = vrot.slane %v1760_v57, 5 }
 0x1de   : > { %v4998_v43 = vpop.permute.xlu1 %1130  ;;  %v5000_v15 = vpop.permute.xlu0 %1161  ;;  %v1768_v31 = vsel %vm283_vm2, %v1766_v33, %v1767_v7 }
 0x1df   : > { %6729 = vst [vmem:[#allocation66_spill] sm:$0xff] %v4998_v43  ;;  %6730 = vst [vmem:[#allocation67_spill] sm:$0xff] %v5000_v15  ;;  %v1769_v15 = vrot.slane %v1758_v34, 5  ;;  %v1822_v43 = vstv %s3920_s24  ;;  %s3937_s24 = sld [smem:[#allocation4 + $0x3c]] }
 0x1e0   : > { %1740 = vrot.lane.b32.xlu1 %v1733_v61, %s4262_s28  ;;  %1742 = vrot.lane.b32.xlu0 %v1735_v28, %s4262_s28  ;;  %v1824_v9 = vmul.f32 %v1822_v43, %v4393_v19  ;;  %v1823_v8 = vmul.f32 %v1822_v43, %v4385_v12  ;;  %v1825_v24 = vmul.f32 %v1822_v43, %v4382_v11 }
 0x1e1   : > { %v1826_v56 = vmul.f32 %v1822_v43, %v4397_v21  ;;  %v1770_v34 = vsel %vm283_vm2, %v1767_v7, %v1769_v15  ;;  %v1772_v10 = vsel %vm283_vm2, %v1769_v15, %v1771_v5  ;;  %v1774_v7 = vsel %vm283_vm2, %v1771_v5, %v1773_v39 }
 0x1e2   : > { %v5008_v27 = vpop.permute.xlu1 %1163  ;;  %v5010_v4 = vpop.permute.xlu0 %1165  ;;  %v1834_v33 = vrot.slane %v1824_v9, 6 }
 0x1e3   : > { %6731 = vst [vmem:[#allocation68_spill] sm:$0xff] %v5008_v27  ;;  %6732 = vst [vmem:[#allocation69_spill] sm:$0xff] %v5010_v4  ;;  %v1859_v4 = vstv %s3921_s26  ;;  %v1838_v9 = vrot.slane %v1826_v56, 6  ;;  %s366_s26 = sld [smem:[#allocation4]] }
 0x1e4   : > { %1744 = vrot.lane.b32.xlu1 %v1737_v51, %s4262_s28  ;;  %1775 = vrot.lane.b32.xlu0 %v1768_v31, %s4263_s3  ;;  %v1833_v51 = vrot.slane %v1823_v8, 6  ;;  %v1861_v57 = vmul.f32 %v1859_v4, %v4393_v19  ;;  %v1860_v8 = vmul.f32 %v1859_v4, %v4385_v12 }
 0x1e6   : > { %v5019_v61 = vpop.permute.xlu1 %1167  ;;  %v5021_v28 = vpop.permute.xlu0 %1198  ;;  %v1835_v15 = vsel %vm1803_vm9, %v1833_v51, %v1834_v33  ;;  %v1871_v56 = vrot.slane %v1861_v57, 6  ;;  %v1863_v51 = vmul.f32 %v1859_v4, %v4397_v21  ;;  %v1864_v57 = vmul.f32 %v1859_v4, %v4465_v6 }
 0x1e7   : > { %6733 = vst [vmem:[#allocation70_spill] sm:$0xff] %v5019_v61  ;;  %6734 = vst [vmem:[#allocation71_spill] sm:$0xff] %v5021_v28  ;;  %v1836_v28 = vrot.slane %v1825_v24, 6  ;;  %v1827_v61 = vmul.f32 %v1822_v43, %v4465_v6 }
 0x1e8   : > { %1777 = vrot.lane.b32.xlu1 %v1770_v34, %s4263_s3  ;;  %1779 = vrot.lane.b32.xlu0 %v1772_v10, %s4263_s3  ;;  %v1862_v10 = vmul.f32 %v1859_v4, %v4382_v11 }
 0x1e9   : > { %v1840_v43 = vrot.slane %v1827_v61, 6  ;;  %v1837_v5 = vsel %vm1803_vm9, %v1834_v33, %v1836_v28  ;;  %v1839_v39 = vsel %vm1803_vm9, %v1836_v28, %v1838_v9  ;;  %v1875_v28 = vrot.slane %v1863_v51, 6 }
 0x1ea   : > { %v5029_v31 = vpop.permute.xlu1 %1200  ;;  %v5031_v27 = vpop.permute.xlu0 %1202  ;;  %v1877_v51 = vrot.slane %v1864_v57, 6 }
 0x1eb   : > { %6735 = vst [vmem:[#allocation72_spill] sm:$0xff] %v5029_v31  ;;  %6736 = vst [vmem:[#allocation73_spill] sm:$0xff] %v5031_v27  ;;  %v1841_v61 = vsel %vm1803_vm9, %v1838_v9, %v1840_v43 }
 0x1ec   : > { %1781 = vrot.lane.b32.xlu1 %v1774_v7, %s4263_s3  ;;  %1842 = vrot.lane.b32.xlu0 %v1835_v15, %s4258_s19  ;;  %v1870_v7 = vrot.slane %v1860_v8, 6 }
 0x1ee   : > { %v5040_v34 = vpop.permute.xlu1 %1204  ;;  %v5042_v24 = vpop.permute.xlu0 %1235  ;;  %v1872_v33 = vsel %vm1803_vm9, %v1870_v7, %v1871_v56 }
 0x1ef   : > { %6737 = vst [vmem:[#allocation74_spill] sm:$0xff] %v5040_v34  ;;  %6738 = vst [vmem:[#allocation75_spill] sm:$0xff] %v5042_v24  ;;  %v1873_v24 = vrot.slane %v1862_v10, 6  ;;  %v1896_v34 = vstv %s3922_s27  ;;  %s5281_s27 = sld [smem:[#allocation4 + $0xe]] }
 0x1f0   : > { %1844 = vrot.lane.b32.xlu1 %v1837_v5, %s4258_s19  ;;  %1846 = vrot.lane.b32.xlu0 %v1839_v39, %s4258_s19  ;;  %v1898_v27 = vmul.f32 %v1896_v34, %v4393_v19  ;;  %v1897_v8 = vmul.f32 %v1896_v34, %v4385_v12  ;;  %v1899_v43 = vmul.f32 %v1896_v34, %v4382_v11 }
 0x1f1   : > { %v1874_v9 = vsel %vm1803_vm9, %v1871_v56, %v1873_v24  ;;  %v1876_v10 = vsel %vm1803_vm9, %v1873_v24, %v1875_v28  ;;  %v1900_v7 = vmul.f32 %v1896_v34, %v4397_v21  ;;  %v1901_v56 = vmul.f32 %v1896_v34, %v4465_v6 }
 0x1f2   : > { %v5050_v15 = vpop.permute.xlu1 %1237  ;;  %v5052_v31 = vpop.permute.xlu0 %1239  ;;  %v1908_v4 = vrot.slane %v1898_v27, 6  ;;  %v1878_v24 = vsel %vm1803_vm9, %v1875_v28, %v1877_v51 }
 0x1f3   : > { %6739 = vst [vmem:[#allocation76_spill] sm:$0xff] %v5050_v15  ;;  %6740 = vst [vmem:[#allocation77_spill] sm:$0xff] %v5052_v31  ;;  %v1912_v57 = vrot.slane %v1900_v7, 6 }
 0x1f4   : > { %1848 = vrot.lane.b32.xlu1 %v1841_v61, %s4258_s19  ;;  %1879 = vrot.lane.b32.xlu0 %v1872_v33, %s4259_s21  ;;  %v1907_v61 = vrot.slane %v1897_v8, 6 }
 0x1f5   : > { %v785_v59 = vstv %s5281_s27  ;;  %s5746_s27 = sld [smem:[#allocation4 + $0x38]] }
 0x1f6   : > { %v5061_v5 = vpop.permute.xlu1 %1241  ;;  %v5063_v39 = vpop.permute.xlu0 %1272  ;;  %v1909_v27 = vsel %vm1803_vm9, %v1907_v61, %v1908_v4 }
 0x1f7   : > { %6741 = vst [vmem:[#allocation78_spill] sm:$0xff] %v5061_v5  ;;  %6742 = vst [vmem:[#allocation79_spill] sm:$0xff] %v5063_v39  ;;  %v1910_v39 = vrot.slane %v1899_v43, 6  ;;  %v1933_v5 = vstv %s3923_s30  ;;  %s5283_s30 = sld [smem:[#allocation4 + $0x15]] }
 0x1f8   : > { %1881 = vrot.lane.b32.xlu1 %v1874_v9, %s4259_s21  ;;  %1883 = vrot.lane.b32.xlu0 %v1876_v10, %s4259_s21  ;;  %v1935_v31 = vmul.f32 %v1933_v5, %v4393_v19  ;;  %v1934_v8 = vmul.f32 %v1933_v5, %v4385_v12  ;;  %v1914_v10 = vrot.slane %v1901_v56, 6  ;;  %v1936_v7 = vmul.f32 %v1933_v5, %v4382_v11 }
 0x1f9   : > { %v1911_v34 = vsel %vm1803_vm9, %v1908_v4, %v1910_v39  ;;  %v1913_v28 = vsel %vm1803_vm9, %v1910_v39, %v1912_v57  ;;  %v1937_v61 = vmul.f32 %v1933_v5, %v4397_v21  ;;  %v1938_v4 = vmul.f32 %v1933_v5, %v4465_v6 }
 0x1fa   : > { %v5071_v33 = vpop.permute.xlu1 %1274  ;;  %v5073_v15 = vpop.permute.xlu0 %1276  ;;  %v1945_v51 = vrot.slane %v1935_v31, 6  ;;  %v1970_v56 = vstv %s3924_s4  ;;  %v1947_v39 = vrot.slane %v1936_v7, 6  ;;  %s5297_s4 = sld [smem:[#allocation4 + $0x3d]] }
 0x1fb   : > { %6743 = vst [vmem:[#allocation80_spill] sm:$0xff] %v5071_v33  ;;  %6744 = vst [vmem:[#allocation81_spill] sm:$0xff] %v5073_v15  ;;  %v1972_v15 = vmul.f32 %v1970_v56, %v4393_v19  ;;  %v1973_v5 = vmul.f32 %v1970_v56, %v4382_v11 }
 0x1fc   : > { %1885 = vrot.lane.b32.xlu1 %v1878_v24, %s4259_s21  ;;  %1916 = vrot.lane.b32.xlu0 %v1909_v27, %s4260_s23  ;;  %v1944_v24 = vrot.slane %v1934_v8, 6  ;;  %v1971_v8 = vmul.f32 %v1970_v56, %v4385_v12 }
 0x1fe   : > { %v5082_v9 = vpop.permute.xlu1 %1278  ;;  %v5084_v43 = vpop.permute.xlu0 %1339  ;;  %v1946_v31 = vsel %vm1803_vm9, %v1944_v24, %v1945_v51  ;;  %v1974_v24 = vmul.f32 %v1970_v56, %v4397_v21 }
 0x1ff   : > { %6745 = vst [vmem:[#allocation82_spill] sm:$0xff] %v5082_v9  ;;  %6746 = vst [vmem:[#allocation83_spill] sm:$0xff] %v5084_v43  ;;  %v1915_v43 = vsel %vm1803_vm9, %v1912_v57, %v1914_v10  ;;  %v1949_v9 = vrot.slane %v1937_v61, 6  ;;  %v1951_v57 = vrot.slane %v1938_v4, 6  ;;  %v1948_v10 = vsel %vm1803_vm9, %v1945_v51, %v1947_v39 }
 0x200   : > { %1918 = vrot.lane.b32.xlu1 %v1911_v34, %s4260_s23  ;;  %1920 = vrot.lane.b32.xlu0 %v1913_v28, %s4260_s23  ;;  %v1982_v61 = vrot.slane %v1972_v15, 6  ;;  %v1975_v15 = vmul.f32 %v1970_v56, %v4465_v6 }
 0x201   : > { %v1950_v7 = vsel %vm1803_vm9, %v1947_v39, %v1949_v9  ;;  %v1952_v4 = vsel %vm1803_vm9, %v1949_v9, %v1951_v57 }
 0x202   : > { %v5092_v27 = vpop.permute.xlu1 %1341  ;;  %v5094_v33 = vpop.permute.xlu0 %1343 }
 0x203   : > { %6747 = vst [vmem:[#allocation84_spill] sm:$0xff] %v5092_v27  ;;  %6748 = vst [vmem:[#allocation85_spill] sm:$0xff] %v5094_v33  ;;  %v1986_v33 = vrot.slane %v1974_v24, 6  ;;  %v1988_v24 = vrot.slane %v1975_v15, 6 }
 0x204   : > { %1922 = vrot.lane.b32.xlu1 %v1915_v43, %s4260_s23  ;;  %1953 = vrot.lane.b32.xlu0 %v1946_v31, %s4261_s25  ;;  %v1981_v43 = vrot.slane %v1971_v8, 6 }
 0x206   : > { %v5103_v34 = vpop.permute.xlu1 %1345  ;;  %v5105_v28 = vpop.permute.xlu0 %1376  ;;  %v1983_v51 = vsel %vm1803_vm9, %v1981_v43, %v1982_v61 }
 0x207   : > { %6749 = vst [vmem:[#allocation86_spill] sm:$0xff] %v5103_v34  ;;  %6750 = vst [vmem:[#allocation87_spill] sm:$0xff] %v5105_v28  ;;  %v1984_v28 = vrot.slane %v1973_v5, 6  ;;  %v2007_v34 = vstv %s3925_s5  ;;  %s5337_s5 = sld [smem:[#allocation4 + $0x3e]] }
 0x208   : > { %1955 = vrot.lane.b32.xlu1 %v1948_v10, %s4261_s25  ;;  %1957 = vrot.lane.b32.xlu0 %v1950_v7, %s4261_s25  ;;  %v2009_v39 = vmul.f32 %v2007_v34, %v4393_v19  ;;  %v2008_v8 = vmul.f32 %v2007_v34, %v4385_v12  ;;  %v2010_v57 = vmul.f32 %v2007_v34, %v4382_v11 }
 0x209   : > { %v1985_v9 = vsel %vm1803_vm9, %v1982_v61, %v1984_v28  ;;  %v1987_v5 = vsel %vm1803_vm9, %v1984_v28, %v1986_v33  ;;  %v2011_v43 = vmul.f32 %v2007_v34, %v4397_v21  ;;  %v1989_v61 = vsel %vm1803_vm9, %v1986_v33, %v1988_v24 }
 0x20a   : > { %v5113_v31 = vpop.permute.xlu1 %1378  ;;  %v5115_v27 = vpop.permute.xlu0 %1380  ;;  %v2019_v56 = vrot.slane %v2009_v39, 6  ;;  %v2012_v15 = vmul.f32 %v2007_v34, %v4465_v6 }
 0x20b   : > { %6751 = vst [vmem:[#allocation88_spill] sm:$0xff] %v5113_v31  ;;  %6752 = vst [vmem:[#allocation89_spill] sm:$0xff] %v5115_v27  ;;  %v2023_v28 = vrot.slane %v2011_v43, 6 }
 0x20c   : > { %1959 = vrot.lane.b32.xlu1 %v1952_v4, %s4261_s25  ;;  %1990 = vrot.lane.b32.xlu0 %v1983_v51, %s4262_s28  ;;  %v2018_v4 = vrot.slane %v2008_v8, 6 }
 0x20e   : > { %v5124_v10 = vpop.permute.xlu1 %1382  ;;  %v5126_v7 = vpop.permute.xlu0 %1413 }
 0x20f   : > { %6753 = vst [vmem:[#allocation90_spill] sm:$0xff] %v5124_v10  ;;  %6754 = vst [vmem:[#allocation91_spill] sm:$0xff] %v5126_v7  ;;  %v2021_v7 = vrot.slane %v2010_v57, 6  ;;  %v2020_v10 = vsel %vm1803_vm9, %v2018_v4, %v2019_v56  ;;  %v2025_v57 = vrot.slane %v2012_v15, 6 }
 0x210   : > { %1992 = vrot.lane.b32.xlu1 %v1985_v9, %s4262_s28  ;;  %1994 = vrot.lane.b32.xlu0 %v1987_v5, %s4262_s28 }
 0x211   : > { %v2022_v8 = vsel %vm1803_vm9, %v2019_v56, %v2021_v7  ;;  %v2024_v5 = vsel %vm1803_vm9, %v2021_v7, %v2023_v28  ;;  %v2026_v24 = vsel %vm1803_vm9, %v2023_v28, %v2025_v57 }
 0x212   : > { %v5134_v51 = vpop.permute.xlu1 %1415  ;;  %v5136_v31 = vpop.permute.xlu0 %1417 }
 0x213   : > { %6755 = vst [vmem:[#allocation92_spill] sm:$0xff] %v5134_v51  ;;  %6756 = vst [vmem:[#allocation93_spill] sm:$0xff] %v5136_v31  ;;  %v2054_v51 = vstv %s3927_s6  ;;  %s5382_s6 = sld [smem:[#allocation4 + $0x40]] }
 0x214   : > { %1996 = vrot.lane.b32.xlu1 %v1989_v61, %s4262_s28  ;;  %2027 = vrot.lane.b32.xlu0 %v2020_v10, %s4263_s3  ;;  %v2055_v10 = vmul.f32 %v2054_v51, %v4429_v46  ;;  %v2056_v43 = vmul.f32 %v2054_v51, %v4433_v48  ;;  %v2057_v4 = vmul.f32 %v2054_v51, %v4440_v52  ;;  %v2080_v61 = vstv %s3928_s7  ;;  %s5398_s7 = sld [smem:[#allocation4 + $0x1c]] }
 0x216   : > { %v5143_v39 = vpop.permute.xlu1 %1419  ;;  %v5145_v9 = vpop.permute.xlu0 %1450 }
 0x217   : > { %6757 = vst [vmem:[#allocation94_spill] sm:$0xff] %v5143_v39  ;;  %6758 = vst [vmem:[#allocation95_spill] sm:$0xff] %v5145_v9 }
 0x218   : > { %2029 = vrot.lane.b32.xlu1 %v2022_v8, %s4263_s3  ;;  %2031 = vrot.lane.b32.xlu0 %v2024_v5, %s4263_s3  ;;  %v2058_v8 = vmul.f32 %v2054_v51, %v4443_v53  ;;  %v2081_v5 = vmul.f32 %v2080_v61, %v4429_v46 }
 0x21a   : > { %v5151_v33 = vpop.permute.xlu1 %1452  ;;  %v5153_v34 = vpop.permute.xlu0 %1454 }
 0x21b   : > { %6759 = vst [vmem:[#allocation96_spill] sm:$0xff] %v5151_v33  ;;  %6760 = vst [vmem:[#allocation97_spill] sm:$0xff] %v5153_v34  ;;  %v2132_v33 = vstv %s3930_s10  ;;  %s5476_s10 = sld [smem:[#allocation4 + $0x23]] }
 0x21c   : > { %2033 = vrot.lane.b32.xlu1 %v2026_v24, %s4263_s3  ;;  %2063 = vrot.lane.b32.xlu0 %v2055_v10, %s4258_s19  ;;  %v2082_v24 = vmul.f32 %v2080_v61, %v4433_v48 }
 0x21e   : > { %v5159_v7 = vpop.permute.xlu1 %1456  ;;  %v5161_v56 = vpop.permute.xlu0 %1487 }
 0x21f   : > { %6761 = vst [vmem:[#allocation98_spill] sm:$0xff] %v5159_v7  ;;  %6762 = vst [vmem:[#allocation99_spill] sm:$0xff] %v5161_v56 }
 0x220   : > { %2065 = vrot.lane.b32.xlu1 %v2056_v43, %s4258_s19  ;;  %2067 = vrot.lane.b32.xlu0 %v2057_v4, %s4258_s19  ;;  %v2083_v43 = vmul.f32 %v2080_v61, %v4440_v52  ;;  %v2106_v4 = vstv %s3929_s8  ;;  %s5447_s8 = sld [smem:[#allocation4 + $0x41]] }
 0x222   : > { %v5167_v15 = vpop.permute.xlu1 %1489  ;;  %v5169_v28 = vpop.permute.xlu0 %1491 }
 0x223   : > { %6763 = vst [vmem:[#allocation100_spill] sm:$0xff] %v5167_v15  ;;  %6764 = vst [vmem:[#allocation101_spill] sm:$0xff] %v5169_v28 }
 0x224   : > { %2069 = vrot.lane.b32.xlu1 %v2058_v8, %s4258_s19  ;;  %2089 = vrot.lane.b32.xlu0 %v2081_v5, %s4259_s21  ;;  %v2084_v8 = vmul.f32 %v2080_v61, %v4443_v53  ;;  %v2107_v5 = vmul.f32 %v2106_v4, %v4429_v46 }
 0x226   : > { %v5175_v57 = vpop.permute.xlu1 %1493  ;;  %v5177_v10 = vpop.permute.xlu0 %1524 }
 0x227   : > { %6765 = vst [vmem:[#allocation102_spill] sm:$0xff] %v5175_v57  ;;  %6766 = vst [vmem:[#allocation103_spill] sm:$0xff] %v5177_v10 }
 0x228   : > { %2091 = vrot.lane.b32.xlu1 %v2082_v24, %s4259_s21  ;;  %2093 = vrot.lane.b32.xlu0 %v2083_v43, %s4259_s21  ;;  %v2108_v24 = vmul.f32 %v2106_v4, %v4433_v48  ;;  %v2109_v43 = vmul.f32 %v2106_v4, %v4440_v52 }
 0x22a   : > { %v5183_v51 = vpop.permute.xlu1 %1526  ;;  %v5185_v15 = vpop.permute.xlu0 %1528 }
 0x22b   : > { %6767 = vst [vmem:[#allocation104_spill] sm:$0xff] %v5183_v51  ;;  %6768 = vst [vmem:[#allocation105_spill] sm:$0xff] %v5185_v15  ;;  %v2158_v15 = vstv %s3931_s14  ;;  %s5491_s14 = sld [smem:[#allocation4 + $0x42]] }
 0x22c   : > { %2095 = vrot.lane.b32.xlu1 %v2084_v8, %s4259_s21  ;;  %2115 = vrot.lane.b32.xlu0 %v2107_v5, %s4260_s23  ;;  %v2110_v8 = vmul.f32 %v2106_v4, %v4443_v53  ;;  %v2133_v5 = vmul.f32 %v2132_v33, %v4429_v46 }
 0x22e   : > { %v5191_v10 = vpop.permute.xlu1 %1530  ;;  %v5193_v57 = vpop.permute.xlu0 %1590 }
 0x22f   : > { %6769 = vst [vmem:[#allocation106_spill] sm:$0xff] %v5191_v10  ;;  %6770 = vst [vmem:[#allocation107_spill] sm:$0xff] %v5193_v57 }
 0x230   : > { %2117 = vrot.lane.b32.xlu1 %v2108_v24, %s4260_s23  ;;  %2119 = vrot.lane.b32.xlu0 %v2109_v43, %s4260_s23  ;;  %v2134_v24 = vmul.f32 %v2132_v33, %v4433_v48  ;;  %v2135_v43 = vmul.f32 %v2132_v33, %v4440_v52 }
 0x232   : > { %v5199_v61 = vpop.permute.xlu1 %1592  ;;  %v5201_v51 = vpop.permute.xlu0 %1594 }
 0x233   : > { %6771 = vst [vmem:[#allocation108_spill] sm:$0xff] %v5199_v61  ;;  %6772 = vst [vmem:[#allocation109_spill] sm:$0xff] %v5201_v51  ;;  %v2159_v61 = vmul.f32 %v2158_v15, %v4429_v46  ;;  %v2184_v51 = vstv %s3932_s9  ;;  %s5537_s9 = sld [smem:[#allocation4 + $0x43]] }
 0x234   : > { %2121 = vrot.lane.b32.xlu1 %v2110_v8, %s4260_s23  ;;  %2141 = vrot.lane.b32.xlu0 %v2133_v5, %s4261_s25  ;;  %v2136_v5 = vmul.f32 %v2132_v33, %v4443_v53  ;;  %v2239_v33 = vstv %s3934_s17  ;;  %s5563_s17 = sld [smem:[#allocation4 + $0x2a]] }
 0x235   : > { %v2243_v28 = vmul.f32 %v2239_v33, %v4443_v53  ;;  %v2244_v39 = vmul.f32 %v2239_v33, %v4451_v58 }
 0x236   : > { %v5207_v57 = vpop.permute.xlu1 %1596  ;;  %v5209_v10 = vpop.permute.xlu0 %1627 }
 0x237   : > { %6773 = vst [vmem:[#allocation110_spill] sm:$0xff] %v5207_v57  ;;  %6774 = vst [vmem:[#allocation111_spill] sm:$0xff] %v5209_v10 }
 0x238   : > { %2143 = vrot.lane.b32.xlu1 %v2134_v24, %s4261_s25  ;;  %2145 = vrot.lane.b32.xlu0 %v2135_v43, %s4261_s25  ;;  %v2160_v24 = vmul.f32 %v2158_v15, %v4433_v48  ;;  %v2161_v43 = vmul.f32 %v2158_v15, %v4440_v52 }
 0x23a   : > { %v5215_v4 = vpop.permute.xlu1 %1629  ;;  %v5217_v8 = vpop.permute.xlu0 %1631 }
 0x23b   : > { %6775 = vst [vmem:[#allocation112_spill] sm:$0xff] %v5215_v4  ;;  %6776 = vst [vmem:[#allocation113_spill] sm:$0xff] %v5217_v8  ;;  %v2241_v8 = vmul.f32 %v2239_v33, %v4433_v48 }
 0x23c   : > { %2147 = vrot.lane.b32.xlu1 %v2136_v5, %s4261_s25  ;;  %2167 = vrot.lane.b32.xlu0 %v2159_v61, %s4262_s28  ;;  %v2162_v61 = vmul.f32 %v2158_v15, %v4443_v53  ;;  %v2242_v15 = vmul.f32 %v2239_v33, %v4440_v52 }
 0x23d   : > { %v2251_v7 = vrot.slane %v2241_v8, 1  ;;  %v2255_v8 = vrot.slane %v2243_v28, 1 }
 0x23e   : > { %v5223_v10 = vpop.permute.xlu1 %1633  ;;  %v5225_v57 = vpop.permute.xlu0 %1664  ;;  %v2253_v9 = vrot.slane %v2242_v15, 1  ;;  %v2257_v15 = vrot.slane %v2244_v39, 1 }
 0x23f   : > { %6777 = vst [vmem:[#allocation114_spill] sm:$0xff] %v5223_v10  ;;  %6778 = vst [vmem:[#allocation115_spill] sm:$0xff] %v5225_v57  ;;  %v2185_v10 = vmul.f32 %v2184_v51, %v4429_v46  ;;  %v2240_v57 = vmul.f32 %v2239_v33, %v4429_v46 }
 0x240   : > { %2169 = vrot.lane.b32.xlu1 %v2160_v24, %s4262_s28  ;;  %2171 = vrot.lane.b32.xlu0 %v2161_v43, %s4262_s28  ;;  %v2258_v39 = vsel %vm544_vm5, %v2255_v8, %v2257_v15 }
 0x241   : > { %v2250_v56 = vrot.slane %v2240_v57, 1 }
 0x242   : > { %v5231_v4 = vpop.permute.xlu1 %1666  ;;  %v5233_v5 = vpop.permute.xlu0 %1668 }
 0x243   : > { %6779 = vst [vmem:[#allocation116_spill] sm:$0xff] %v5231_v4  ;;  %6780 = vst [vmem:[#allocation117_spill] sm:$0xff] %v5233_v5  ;;  %v2186_v4 = vmul.f32 %v2184_v51, %v4433_v48  ;;  %v2187_v5 = vmul.f32 %v2184_v51, %v4440_v52  ;;  %v2252_v57 = vsel %vm544_vm5, %v2250_v56, %v2251_v7 }
 0x244   : > { %2173 = vrot.lane.b32.xlu1 %v2162_v61, %s4262_s28  ;;  %2193 = vrot.lane.b32.xlu0 %v2185_v10, %s4263_s3  ;;  %v2276_v61 = vstv %s3935_s18  ;;  %v2256_v56 = vsel %vm544_vm5, %v2253_v9, %v2255_v8  ;;  %s5579_s18 = sld [smem:[#allocation4 + $0x44]] }
 0x245   : > { %v2277_v34 = vmul.f32 %v2276_v61, %v4429_v46  ;;  %v2279_v33 = vmul.f32 %v2276_v61, %v4440_v52  ;;  %v2280_v31 = vmul.f32 %v2276_v61, %v4443_v53 }
 0x246   : > { %v5241_v24 = vpop.permute.xlu1 %1670  ;;  %v5243_v43 = vpop.permute.xlu0 %1701 }
 0x247   : > { %6781 = vst [vmem:[#allocation118_spill] sm:$0xff] %v5241_v24  ;;  %6782 = vst [vmem:[#allocation119_spill] sm:$0xff] %v5243_v43  ;;  %v2188_v43 = vmul.f32 %v2184_v51, %v4443_v53  ;;  %v2254_v51 = vsel %vm544_vm5, %v2251_v7, %v2253_v9  ;;  %v2287_v28 = vrot.slane %v2277_v34, 1  ;;  %v2290_v7 = vrot.slane %v2279_v33, 1 }
 0x248   : > { %2195 = vrot.lane.b32.xlu1 %v2186_v4, %s4263_s3  ;;  %2197 = vrot.lane.b32.xlu0 %v2187_v5, %s4263_s3  ;;  %v2278_v4 = vmul.f32 %v2276_v61, %v4433_v48  ;;  %v2281_v9 = vmul.f32 %v2276_v61, %v4451_v58 }
 0x24a   : > { %v5251_v10 = vpop.permute.xlu1 %1703  ;;  %v5253_v24 = vpop.permute.xlu0 %1705 }
 0x24b   : > { %6783 = vst [vmem:[#allocation120_spill] sm:$0xff] %v5251_v10  ;;  %6784 = vst [vmem:[#allocation121_spill] sm:$0xff] %v5253_v24  ;;  %v2288_v24 = vrot.slane %v2278_v4, 1  ;;  %v2292_v4 = vrot.slane %v2280_v31, 1  ;;  %v2294_v31 = vrot.slane %v2281_v9, 1 }
 0x24c   : > { %2199 = vrot.lane.b32.xlu1 %v2188_v43, %s4263_s3  ;;  %2259 = vrot.lane.b32.xlu0 %v2252_v57, %s4258_s19  ;;  %v2313_v43 = vstv %s3936_s20  ;;  %s5614_s20 = sld [smem:[#allocation4 + $0x45]] }
 0x24d   : > { %v2289_v34 = vsel %vm544_vm5, %v2287_v28, %v2288_v24  ;;  %v2291_v61 = vsel %vm544_vm5, %v2288_v24, %v2290_v7  ;;  %v2316_v33 = vmul.f32 %v2313_v43, %v4440_v52  ;;  %v2293_v28 = vsel %vm544_vm5, %v2290_v7, %v2292_v4 }
 0x24e   : > { %v5262_v5 = vpop.permute.xlu1 %1707  ;;  %v5264_v10 = vpop.permute.xlu0 %1738  ;;  %v2317_v27 = vmul.f32 %v2313_v43, %v4443_v53 }
 0x24f   : > { %6785 = vst [vmem:[#allocation122_spill] sm:$0xff] %v5262_v5  ;;  %6786 = vst [vmem:[#allocation123_spill] sm:$0xff] %v5264_v10  ;;  %v2314_v5 = vmul.f32 %v2313_v43, %v4429_v46 }
 0x250   : > { %2261 = vrot.lane.b32.xlu1 %v2254_v51, %s4258_s19  ;;  %2263 = vrot.lane.b32.xlu0 %v2256_v56, %s4258_s19  ;;  %v2315_v51 = vmul.f32 %v2313_v43, %v4433_v48  ;;  %v533_v56 = vstv %s3884_s22  ;;  %v2329_v47 = vrot.slane %v2317_v27, 1  ;;  %s5662_s22 = sld [smem:[#allocation4 + $0x47]] }
 0x251   : > { %v534_v24 = vmul.f32 %v533_v56, %v4385_v12  ;;  %v535_v9 = vmul.f32 %v533_v56, %v4393_v19  ;;  %v536_v7 = vmul.f32 %v533_v56, %v4382_v11  ;;  %v537_v23 = vmul.f32 %v533_v56, %v4397_v21 }
 0x252   : > { %v5272_v57 = vpop.permute.xlu1 %1740  ;;  %v5274_v10 = vpop.permute.xlu0 %1742  ;;  %v538_v60 = vmul.f32 %v533_v56, %v4465_v6 }
 0x253   : > { %6787 = vst [vmem:[#allocation124_spill] sm:$0xff] %v5272_v57  ;;  %6788 = vst [vmem:[#allocation125_spill] sm:$0xff] %v5274_v10  ;;  %v2324_v57 = vrot.slane %v2314_v5, 1  ;;  %v2325_v10 = vrot.slane %v2315_v51, 1  ;;  %v550_v3 = vrot.slane %v537_v23, 1 }
 0x254   : > { %2265 = vrot.lane.b32.xlu1 %v2258_v39, %s4258_s19  ;;  %2296 = vrot.lane.b32.xlu0 %v2289_v34, %s4259_s21  ;;  %v2350_v39 = vstv %s3937_s24  ;;  %v367_v34 = vstv %s366_s26  ;;  %s5674_s24 = sld [smem:[#allocation4 + $0x31]]  ;;  %s5708_s26 = sld [smem:[#allocation4 + $0x48]] }
 0x255   : > { %v2351_v42 = vmul.f32 %v2350_v39, %v4429_v46  ;;  %v2352_v22 = vmul.f32 %v2350_v39, %v4433_v48  ;;  %v5323_v27 = vmul.f32 %v367_v34, %v4393_v19  ;;  %v2354_v18 = vmul.f32 %v2350_v39, %v4443_v53 }
 0x256   : > { %v5287_v8 = vpop.permute.xlu1 %1744  ;;  %v5289_v15 = vpop.permute.xlu0 %1775 }
 0x257   : > { %6789 = vst [vmem:[#allocation126_spill] sm:$0xff] %v5287_v8  ;;  %6790 = vst [vmem:[#allocation127_spill] sm:$0xff] %v5289_v15  ;;  %v2327_v15 = vrot.slane %v2316_v33, 1  ;;  %v2326_v8 = vsel %vm544_vm5, %v2324_v57, %v2325_v10  ;;  %v545_v57 = vrot.slane %v534_v24, 1  ;;  %v2361_v37 = vrot.slane %v2351_v42, 1 }
 0x258   : > { %2298 = vrot.lane.b32.xlu1 %v2291_v61, %s4259_s21  ;;  %2300 = vrot.lane.b32.xlu0 %v2293_v28, %s4259_s21  ;;  %v2295_v61 = vsel %vm544_vm5, %v2292_v4, %v2294_v31  ;;  %v2318_v28 = vmul.f32 %v2313_v43, %v4451_v58  ;;  %v5320_v43 = vmul.f32 %v367_v34, %v4385_v12  ;;  %v546_v4 = vrot.slane %v535_v9, 1 }
 0x259   : > { %v548_v31 = vrot.slane %v536_v7, 1  ;;  %v2362_v20 = vrot.slane %v2352_v22, 1  ;;  %v552_v24 = vrot.slane %v538_v60, 1  ;;  %v786_v9 = vmul.f32 %v785_v59, %v4385_v12 }
 0x25a   : > { %v5302_v5 = vpop.permute.xlu1 %1777  ;;  %v5304_v51 = vpop.permute.xlu0 %1779  ;;  %v2331_v38 = vrot.slane %v2318_v28, 1  ;;  %v2387_v7 = vstv %s5297_s4  ;;  %v5346_v22 = vsel %vm544_vm5, %v545_v57, %v546_v4  ;;  %v787_v60 = vmul.f32 %v785_v59, %v4393_v19  ;;  %s5803_s4 = sld [smem:[#allocation4 + $0x4a]] }
 0x25b   : > { %6791 = vst [vmem:[#allocation128_spill] sm:$0xff] %v5302_v5  ;;  %6792 = vst [vmem:[#allocation129_spill] sm:$0xff] %v5304_v51  ;;  %v5315_v5 = vstv %s5283_s30  ;;  %v2328_v51 = vsel %vm544_vm5, %v2325_v10, %v2327_v15  ;;  %v5340_v10 = vmul.f32 %v367_v34, %v4382_v11  ;;  %v5350_v23 = vsel %vm544_vm5, %v546_v4, %v548_v31  ;;  %s5757_s30 = sld [smem:[#allocation4 + $0x49]] }
 0x25c   : > { %2302 = vrot.lane.b32.xlu1 %v2295_v61, %s4259_s21  ;;  %2333 = vrot.lane.b32.xlu0 %v2326_v8, %s4260_s23  ;;  %v2353_v61 = vmul.f32 %v2350_v39, %v4440_v52  ;;  %v2330_v8 = vsel %vm544_vm5, %v2327_v15, %v2329_v47  ;;  %v5343_v15 = vmul.f32 %v367_v34, %v4397_v21 }
 0x25d   : > { %6795 = vst [vmem:[#allocation132_spill] sm:$0xff] %v5346_v22  ;;  %6796 = vst [vmem:[#allocation133_spill] sm:$0xff] %v5350_v23  ;;  %v2332_v28 = vsel %vm544_vm5, %v2329_v47, %v2331_v38  ;;  %v2363_v34 = vsel %vm544_vm5, %v2361_v37, %v2362_v20  ;;  %v2388_v57 = vmul.f32 %v2387_v7, %v4429_v46  ;;  %v798_v38 = vrot.slane %v787_v60, 2 }
 0x25e   : > { %v5325_v33 = vpop.permute.xlu1 %1781  ;;  %v5327_v56 = vpop.permute.xlu0 %1842  ;;  %v2389_v62 = vmul.f32 %v2387_v7, %v4433_v48  ;;  %v5362_v45 = vsel %vm544_vm5, %v548_v31, %v550_v3  ;;  %v5365_v4 = vsel %vm544_vm5, %v550_v3, %v552_v24  ;;  %v790_v37 = vmul.f32 %v785_v59, %v4465_v6 }
 0x25f   : > { %6793 = vst [vmem:[#allocation130_spill] sm:$0xff] %v5325_v33  ;;  %6794 = vst [vmem:[#allocation131_spill] sm:$0xff] %v5327_v56  ;;  %v2355_v56 = vmul.f32 %v2350_v39, %v4451_v58  ;;  %v2366_v33 = vrot.slane %v2354_v18, 1  ;;  %v789_v18 = vmul.f32 %v785_v59, %v4397_v21  ;;  %v1039_v47 = vmul.f32 %v5315_v5, %v4393_v19 }
 0x260   : > { %2335 = vrot.lane.b32.xlu1 %v2328_v51, %s4260_s23  ;;  %2337 = vrot.lane.b32.xlu0 %v2330_v8, %s4260_s23  ;;  %v2364_v8 = vrot.slane %v2353_v61, 1  ;;  %6799 = vst [vmem:[#allocation136_spill] sm:$0xff] %v5362_v45  ;;  %6800 = vst [vmem:[#allocation137_spill] sm:$0xff] %v5365_v4  ;;  %v1038_v39 = vmul.f32 %v5315_v5, %v4385_v12  ;;  %v2398_v60 = vrot.slane %v2388_v57, 1 }
 0x261   : > { %v2368_v24 = vrot.slane %v2355_v56, 1  ;;  %v1040_v45 = vmul.f32 %v5315_v5, %v4382_v11  ;;  %v1050_v57 = vrot.slane %v1039_v47, 3 }
 0x262   : > { %v5352_v42 = vpop.permute.xlu1 %1844  ;;  %v5354_v51 = vpop.permute.xlu0 %1846  ;;  %v2365_v61 = vsel %vm544_vm5, %v2362_v20, %v2364_v8  ;;  %v2424_v20 = vstv %s5337_s5  ;;  %s5856_s5 = sld [smem:[#allocation4 + $0x4b]] }
 0x263   : > { %6797 = vst [vmem:[#allocation134_spill] sm:$0xff] %v5352_v42  ;;  %6798 = vst [vmem:[#allocation135_spill] sm:$0xff] %v5354_v51  ;;  %v797_v42 = vrot.slane %v786_v9, 2  ;;  %v788_v51 = vmul.f32 %v785_v59, %v4382_v11  ;;  %v2390_v9 = vmul.f32 %v2387_v7, %v4440_v52  ;;  %v2367_v59 = vsel %vm544_vm5, %v2364_v8, %v2366_v33 }
 0x264   : > { %2339 = vrot.lane.b32.xlu1 %v2332_v28, %s4260_s23  ;;  %2370 = vrot.lane.b32.xlu0 %v2363_v34, %s4261_s25  ;;  %v2399_v28 = vrot.slane %v2389_v62, 1  ;;  %v2391_v34 = vmul.f32 %v2387_v7, %v4443_v53  ;;  %v802_v8 = vrot.slane %v789_v18, 2  ;;  %v804_v62 = vrot.slane %v790_v37, 2 }
 0x265   : > { %v800_v4 = vrot.slane %v788_v51, 2  ;;  %v5396_v56 = vsel %vm796_vm6, %v797_v42, %v798_v38  ;;  %v1049_v51 = vrot.slane %v1038_v39, 3  ;;  %v2369_v44 = vsel %vm544_vm5, %v2366_v33, %v2368_v24 }
 0x266   : > { %v5376_v3 = vpop.permute.xlu1 %1848  ;;  %v5378_v31 = vpop.permute.xlu0 %1879  ;;  %v2401_v22 = vrot.slane %v2390_v9, 1  ;;  %v2403_v29 = vrot.slane %v2391_v34, 1  ;;  %v2425_v42 = vmul.f32 %v2424_v20, %v4429_v46  ;;  %v2426_v18 = vmul.f32 %v2424_v20, %v4433_v48 }
 0x267   : > { %6801 = vst [vmem:[#allocation138_spill] sm:$0xff] %v5376_v3  ;;  %6802 = vst [vmem:[#allocation139_spill] sm:$0xff] %v5378_v31  ;;  %v5390_v31 = vmul.f32 %v5315_v5, %v4397_v21  ;;  %v5410_v37 = vsel %vm796_vm6, %v798_v38, %v800_v4  ;;  %v1052_v47 = vrot.slane %v1040_v45, 3  ;;  %v1042_v33 = vmul.f32 %v5315_v5, %v4465_v6 }
 0x268   : > { %2372 = vrot.lane.b32.xlu1 %v2365_v61, %s4261_s25  ;;  %2374 = vrot.lane.b32.xlu0 %v2367_v59, %s4261_s25  ;;  %v2392_v61 = vmul.f32 %v2387_v7, %v4451_v58  ;;  %v2400_v59 = vsel %vm544_vm5, %v2398_v60, %v2399_v28  ;;  %v398_v7 = vadd.f32 %v4580_v32, %v5320_v43  ;;  %v2490_v32 = vstv %s5382_s6  ;;  %s5886_s6 = sld [smem:[#allocation4 + $0x4c]] }
 0x269   : > { %v1054_v39 = vrot.slane %v5390_v31, 3  ;;  %v5420_v24 = vsel %vm796_vm6, %v800_v4, %v802_v8  ;;  %v5423_v9 = vsel %vm796_vm6, %v802_v8, %v804_v62  ;;  %v5426_v45 = vsel %vm1048_vm7, %v1049_v51, %v1050_v57 }
 0x26a   : > { %v5400_v3 = vpop.permute.xlu1 %1881  ;;  %v5402_v23 = vpop.permute.xlu0 %1883  ;;  %v2405_v5 = vrot.slane %v2392_v61, 1  ;;  %v2427_v60 = vmul.f32 %v2424_v20, %v4440_v52  ;;  %v2404_v43 = vsel %vm544_vm5, %v2401_v22, %v2403_v29  ;;  %v2435_v4 = vrot.slane %v2425_v42, 1 }
 0x26b   : > { %v2436_v34 = vrot.slane %v2426_v18, 1  ;;  %v2428_v8 = vmul.f32 %v2424_v20, %v4443_v53  ;;  %v399_v62 = vadd.f32 %v4588_v40, %v5323_v27  ;;  %v5440_v51 = vsel %vm1048_vm7, %v1050_v57, %v1052_v47 }
 0x26c   : > { %2376 = vrot.lane.b32.xlu1 %v2369_v44, %s4261_s25  ;;  %2407 = vrot.lane.b32.xlu0 %v2400_v59, %s4262_s28  ;;  %v2402_v44 = vsel %vm544_vm5, %v2399_v28, %v2401_v22  ;;  %v5443_v59 = vsel %vm1048_vm7, %v1052_v47, %v1054_v39  ;;  %v1056_v28 = vrot.slane %v1042_v33, 3  ;;  %v400_v22 = vadd.f32 %v4590_v41, %v5340_v10 }
 0x26d   : > { %v401_v61 = vadd.f32 %v4599_v54, %v5343_v15  ;;  %v424_v40 = vadd.f32 %v4601_v55, %v398_v7  ;;  %v1289_v27 = vstv %s5398_s7  ;;  %v2438_v47 = vrot.slane %v2427_v60, 1  ;;  %s5934_s7 = sld [smem:[#allocation4 + $0x4e]] }
 0x26e   : > { %v5428_v38 = vpop.permute.xlu1 %1885  ;;  %v5430_v31 = vpop.permute.xlu0 %1916  ;;  %v1291_v57 = vmul.f32 %v1289_v27, %v4393_v19  ;;  %v2429_v33 = vmul.f32 %v2424_v20, %v4451_v58  ;;  %v2437_v41 = vsel %vm544_vm5, %v2435_v4, %v2436_v34  ;;  %v2440_v10 = vrot.slane %v2428_v8, 1 }
 0x26f   : > { %v2492_v54 = vmul.f32 %v2490_v32, %v4433_v48  ;;  %v425_v55 = vadd.f32 %v4609_v1, %v399_v62  ;;  %v5467_v15 = vsel %vm1048_vm7, %v1054_v39, %v1056_v28  ;;  %v1292_v7 = vmul.f32 %v1289_v27, %v4382_v11 }
 0x270   : > { %2409 = vrot.lane.b32.xlu1 %v2402_v44, %s4262_s28  ;;  %2411 = vrot.lane.b32.xlu0 %v2404_v43, %s4262_s28  ;;  %v2491_v44 = vmul.f32 %v2490_v32, %v4429_v46  ;;  %v2406_v43 = vsel %vm544_vm5, %v2403_v29, %v2405_v5  ;;  %v426_v20 = vadd.f32 %v4611_v2, %v400_v22  ;;  %v1302_v4 = vrot.slane %v1291_v57, 4 }
 0x271   : > { %v427_v29 = vadd.f32 %v4620_v13, %v401_v61  ;;  %v450_v5 = vadd.f32 %v4622_v14, %v424_v40  ;;  %v1290_v60 = vmul.f32 %v1289_v27, %v4385_v12  ;;  %v2439_v8 = vsel %vm544_vm5, %v2436_v34, %v2438_v47 }
 0x272   : > { %v5456_v42 = vpop.permute.xlu1 %1918  ;;  %v5458_v18 = vpop.permute.xlu0 %1920  ;;  %v2442_v62 = vrot.slane %v2429_v33, 1  ;;  %v2493_v28 = vmul.f32 %v2490_v32, %v4440_v52  ;;  %v2441_v2 = vsel %vm544_vm5, %v2438_v47, %v2440_v10  ;;  %v2501_v13 = vrot.slane %v2491_v44, 2 }
 0x273   : > { %6803 = vst [vmem:[#allocation140_spill] sm:$0xff] %v5456_v42  ;;  %v2502_v22 = vrot.slane %v2492_v54, 2  ;;  %v2494_v14 = vmul.f32 %v2490_v32, %v4443_v53  ;;  %v1304_v61 = vrot.slane %v1292_v7, 4  ;;  %v1293_v40 = vmul.f32 %v1289_v27, %v4397_v21 }
 0x274   : > { %2413 = vrot.lane.b32.xlu1 %v2406_v43, %s4262_s28  ;;  %2444 = vrot.lane.b32.xlu0 %v2437_v41, %s4263_s3  ;;  %v1294_v57 = vmul.f32 %v1289_v27, %v4465_v6  ;;  %v2527_v43 = vstv %s5447_s8  ;;  %v451_v34 = vadd.f32 %v4630_v25, %v425_v55  ;;  %v452_v47 = vadd.f32 %v4632_v26, %v426_v20  ;;  %s5995_s8 = sld [smem:[#allocation4 + $0x4f]] }
 0x275   : > { %v453_v33 = vadd.f32 %v4641_v35, %v427_v29  ;;  %v1301_v44 = vrot.slane %v1290_v60, 4  ;;  %v476_v41 = vadd.f32 %v4643_v36, %v450_v5  ;;  %v2443_v27 = vsel %vm544_vm5, %v2440_v10, %v2442_v62 }
 0x276   : > { %v5478_v1 = vpop.permute.xlu1 %1922  ;;  %v5480_v39 = vpop.permute.xlu0 %1953  ;;  %v2503_v42 = vsel %vm796_vm6, %v2501_v13, %v2502_v22  ;;  %v2506_v25 = vrot.slane %v2494_v14, 2  ;;  %v2528_v26 = vmul.f32 %v2527_v43, %v4429_v46  ;;  %v2529_v35 = vmul.f32 %v2527_v43, %v4433_v48 }
 0x277   : > { %v5507_v55 = vsel %vm1300_vm8, %v1301_v44, %v1302_v4  ;;  %v5510_v36 = vsel %vm1300_vm8, %v1302_v4, %v1304_v61  ;;  %v1306_v20 = vrot.slane %v1293_v40, 4  ;;  %v1308_v29 = vrot.slane %v1294_v57, 4  ;;  %v6806_v44 = vld [vmem:[#allocation7_spill] sm:$0xff] }
 0x278   : > { %2446 = vrot.lane.b32.xlu1 %v2439_v8, %s4263_s3  ;;  %2448 = vrot.lane.b32.xlu0 %v2441_v2, %s4263_s3  ;;  %v2504_v8 = vrot.slane %v2493_v28, 2  ;;  %v2495_v2 = vmul.f32 %v2490_v32, %v4451_v58  ;;  %v477_v32 = vadd.f32 %v4651_v49, %v451_v34  ;;  %v478_v10 = vadd.f32 %v4653_v50, %v452_v47 }
 0x279   : > { %v479_v5 = vadd.f32 %v4662_v63, %v453_v33  ;;  %v502_v60 = vadd.f32 %v4664_v0, %v476_v41  ;;  %v1541_v62 = vstv %s5476_s10  ;;  %v2530_v40 = vmul.f32 %v2527_v43, %v4440_v52  ;;  %s6030_s10 = sld [smem:[#allocation4 + $0x50]] }
 0x27a   : > { %v5497_v54 = vpop.permute.xlu1 %1955  ;;  %v5499_v7 = vpop.permute.xlu0 %1957  ;;  %v2505_v13 = vsel %vm796_vm6, %v2502_v22, %v2504_v8  ;;  %v2508_v14 = vrot.slane %v2495_v2, 2  ;;  %v2538_v49 = vrot.slane %v2528_v26, 2  ;;  %v2539_v57 = vrot.slane %v2529_v35, 2 }
 0x27b   : > { %6804 = vst [vmem:[#allocation141_spill] sm:$0xff] %v5497_v54  ;;  %v2531_v50 = vmul.f32 %v2527_v43, %v4443_v53  ;;  %v528_v63 = vadd.f32 %v4685_v30, %v502_v60  ;;  %v5529_v0 = vsel %vm1300_vm8, %v1304_v61, %v1306_v20  ;;  %v5532_v34 = vsel %vm1300_vm8, %v1306_v20, %v1308_v29  ;;  %v6818_v54 = vld [vmem:[#allocation12_spill] sm:$0xff] }
 0x27c   : > { %2450 = vrot.lane.b32.xlu1 %v2443_v27, %s4263_s3  ;;  %2510 = vrot.lane.b32.xlu0 %v2503_v42, %s4258_s19  ;;  %v2507_v42 = vsel %vm796_vm6, %v2504_v8, %v2506_v25  ;;  %v2564_v22 = vstv %s5491_s14  ;;  %v503_v47 = vadd.f32 %v4672_v16, %v477_v32  ;;  %v504_v33 = vadd.f32 %v4674_v17, %v478_v10  ;;  %v6808_v32 = vld [vmem:[#allocation132_spill] sm:$0xff]  ;;  %s6047_s14 = sld [smem:[#allocation4 + $0x3f]] }
 0x27d   : > { %v505_v41 = vadd.f32 %v6806_v44, %v479_v5  ;;  %v1542_v30 = vmul.f32 %v1541_v62, %v4385_v12  ;;  %v1543_v61 = vmul.f32 %v1541_v62, %v4393_v19  ;;  %v2509_v2 = vsel %vm796_vm6, %v2506_v25, %v2508_v14  ;;  %v6809_v5 = vld [vmem:[#allocation8_spill] sm:$0xff]  ;;  %v6810_v25 = vld [vmem:[#allocation9_spill] sm:$0xff]  ;;  %v6811_v14 = vld [vmem:[#allocation10_spill] sm:$0xff] }
 0x27e   : > { %v5519_v28 = vpop.permute.xlu1 %1959  ;;  %v5521_v4 = vpop.permute.xlu0 %1990  ;;  %v2541_v26 = vrot.slane %v2530_v40, 2  ;;  %v2532_v35 = vmul.f32 %v2527_v43, %v4451_v58  ;;  %v2540_v20 = vsel %vm796_vm6, %v2538_v49, %v2539_v57  ;;  %v2543_v16 = vrot.slane %v2531_v50, 2 }
 0x27f   : > { %6805 = vst [vmem:[#allocation142_spill] sm:$0xff] %v5521_v4  ;;  %v2565_v17 = vmul.f32 %v2564_v22, %v4429_v46  ;;  %v2566_v29 = vmul.f32 %v2564_v22, %v4433_v48  ;;  %v558_v10 = vadd.f32 %v6808_v32, %v528_v63  ;;  %v529_v60 = vadd.f32 %v6809_v5, %v503_v47  ;;  %v6814_v5 = vld [vmem:[#allocation133_spill] sm:$0xff] }
 0x280   : > { %2512 = vrot.lane.b32.xlu1 %v2505_v13, %s4258_s19  ;;  %2514 = vrot.lane.b32.xlu0 %v2507_v42, %s4258_s19  ;;  %v5556_v13 = vmul.f32 %v1541_v62, %v4382_v11  ;;  %v530_v43 = vadd.f32 %v6810_v25, %v504_v33  ;;  %v531_v40 = vadd.f32 %v6811_v14, %v505_v41  ;;  %v1552_v42 = vrot.slane %v1542_v30, 5 }
 0x281   : > { %v1545_v49 = vmul.f32 %v1541_v62, %v4397_v21  ;;  %v1553_v50 = vrot.slane %v1543_v61, 5  ;;  %v2542_v44 = vsel %vm796_vm6, %v2539_v57, %v2541_v26  ;;  %v2544_v33 = vsel %vm796_vm6, %v2541_v26, %v2543_v16  ;;  %v6816_v26 = vld [vmem:[#allocation137_spill] sm:$0xff] }
 0x282   : > { %v5544_v27 = vpop.permute.xlu1 %1992  ;;  %v5546_v8 = vpop.permute.xlu0 %1994  ;;  %v2575_v32 = vrot.slane %v2565_v17, 2  ;;  %v2576_v41 = vrot.slane %v2566_v29, 2  ;;  %v2568_v30 = vmul.f32 %v2564_v22, %v4443_v53  ;;  %v559_v25 = vadd.f32 %v6814_v5, %v529_v60  ;;  %v6817_v29 = vld [vmem:[#allocation11_spill] sm:$0xff] }
 0x283   : > { %6807 = vst [vmem:[#allocation7_spill] sm:$0xff] %v5544_v27  ;;  %v1555_v14 = vrot.slane %v5556_v13, 5  ;;  %v1546_v61 = vmul.f32 %v1541_v62, %v4465_v6  ;;  %v2601_v57 = vstv %s5537_s9  ;;  %v561_v17 = vadd.f32 %v6816_v26, %v531_v40  ;;  %s6087_s9 = sld [smem:[#allocation4 + $0x51]] }
 0x284   : > { %2516 = vrot.lane.b32.xlu1 %v2509_v2, %s4258_s19  ;;  %2547 = vrot.lane.b32.xlu0 %v2540_v20, %s4259_s21  ;;  %v2545_v2 = vrot.slane %v2532_v35, 2  ;;  %v2567_v20 = vmul.f32 %v2564_v22, %v4440_v52  ;;  %v6815_v35 = vld [vmem:[#allocation136_spill] sm:$0xff]  ;;  %v596_v60 = vadd.f32 %v6818_v54, %v559_v25  ;;  %v2577_v4 = vsel %vm796_vm6, %v2575_v32, %v2576_v41 }
 0x285   : > { %v560_v27 = vadd.f32 %v6815_v35, %v530_v43  ;;  %v2580_v43 = vrot.slane %v2568_v30, 2  ;;  %v2602_v40 = vmul.f32 %v2601_v57, %v4429_v46  ;;  %v5596_v54 = vsel %vm283_vm2, %v1552_v42, %v1553_v50  ;;  %v6824_v30 = vld [vmem:[#allocation16_spill] sm:$0xff] }
 0x286   : > { %v5565_v63 = vpop.permute.xlu1 %1996  ;;  %v5567_v47 = vpop.permute.xlu0 %2027  ;;  %v2546_v62 = vsel %vm796_vm6, %v2543_v16, %v2545_v2  ;;  %v5599_v25 = vsel %vm283_vm2, %v1553_v50, %v1555_v14  ;;  %v1559_v16 = vrot.slane %v1546_v61, 5  ;;  %v633_v26 = vadd.f32 %v6824_v30, %v596_v60 }
 0x287   : > { %6812 = vst [vmem:[#allocation132_spill] sm:$0xff] %v5565_v63  ;;  %6813 = vst [vmem:[#allocation8_spill] sm:$0xff] %v5567_v47  ;;  %v595_v47 = vadd.f32 %v6817_v29, %v558_v10  ;;  %v1557_v63 = vrot.slane %v1545_v49, 5  ;;  %v2603_v10 = vmul.f32 %v2601_v57, %v4433_v48  ;;  %v6821_v49 = vld [vmem:[#allocation13_spill] sm:$0xff]  ;;  %v1792_v29 = vstv %s5563_s17  ;;  %s6150_s17 = sld [smem:[#allocation4 + $0x52]] }
 0x288   : > { %2549 = vrot.lane.b32.xlu1 %v2542_v44, %s4259_s21  ;;  %2551 = vrot.lane.b32.xlu0 %v2544_v33, %s4259_s21  ;;  %v2578_v44 = vrot.slane %v2567_v20, 2  ;;  %v2569_v33 = vmul.f32 %v2564_v22, %v4451_v58  ;;  %v597_v35 = vadd.f32 %v6821_v49, %v560_v27  ;;  %v6822_v22 = vld [vmem:[#allocation14_spill] sm:$0xff]  ;;  %v6823_v20 = vld [vmem:[#allocation15_spill] sm:$0xff]  ;;  %v2605_v60 = vmul.f32 %v2601_v57, %v4443_v53 }
 0x289   : > { %v598_v2 = vadd.f32 %v6822_v22, %v561_v17  ;;  %v632_v32 = vadd.f32 %v6823_v20, %v595_v47  ;;  %v2612_v47 = vrot.slane %v2602_v40, 2  ;;  %v2613_v17 = vrot.slane %v2603_v10, 2  ;;  %v6828_v22 = vld [vmem:[#allocation19_spill] sm:$0xff]  ;;  %v6831_v10 = vld [vmem:[#allocation21_spill] sm:$0xff] }
 0x28a   : > { %v5585_v5 = vpop.permute.xlu1 %2029  ;;  %v5587_v13 = vpop.permute.xlu0 %2031  ;;  %v2579_v50 = vsel %vm796_vm6, %v2576_v41, %v2578_v44  ;;  %v2582_v61 = vrot.slane %v2569_v33, 2  ;;  %v5623_v20 = vsel %vm283_vm2, %v1557_v63, %v1559_v16  ;;  %v2638_v41 = vstv %s5579_s18  ;;  %v6829_v33 = vld [vmem:[#allocation18_spill] sm:$0xff]  ;;  %s6183_s18 = sld [smem:[#allocation4 + $0x53]] }
 0x28b   : > { %6819 = vst [vmem:[#allocation9_spill] sm:$0xff] %v5585_v5  ;;  %6820 = vst [vmem:[#allocation10_spill] sm:$0xff] %v5587_v13  ;;  %v6825_v5 = vld [vmem:[#allocation17_spill] sm:$0xff]  ;;  %v635_v30 = vadd.f32 %v6829_v33, %v598_v2  ;;  %v2617_v2 = vrot.slane %v2605_v60, 2  ;;  %v5647_v33 = vmul.f32 %v1792_v29, %v4397_v21 }
 0x28c   : > { %2553 = vrot.lane.b32.xlu1 %v2546_v62, %s4259_s21  ;;  %2584 = vrot.lane.b32.xlu0 %v2577_v4, %s4260_s23  ;;  %v634_v27 = vadd.f32 %v6825_v5, %v597_v35  ;;  %v2604_v62 = vmul.f32 %v2601_v57, %v4440_v52  ;;  %v2581_v4 = vsel %vm796_vm6, %v2578_v44, %v2580_v43  ;;  %v6830_v44 = vld [vmem:[#allocation20_spill] sm:$0xff] }
 0x28d   : > { %v669_v5 = vadd.f32 %v6828_v22, %v632_v32  ;;  %v5620_v35 = vsel %vm283_vm2, %v1555_v14, %v1557_v63  ;;  %v670_v40 = vadd.f32 %v6830_v44, %v633_v26  ;;  %v6832_v32 = vld [vmem:[#allocation23_spill] sm:$0xff]  ;;  %v2583_v63 = vsel %vm796_vm6, %v2580_v43, %v2582_v61  ;;  %v6836_v61 = vld [vmem:[#allocation24_spill] sm:$0xff] }
 0x28e   : > { %v5608_v42 = vpop.permute.xlu1 %2033  ;;  %v5610_v49 = vpop.permute.xlu0 %2063  ;;  %v2615_v16 = vrot.slane %v2604_v62, 2  ;;  %v2639_v26 = vmul.f32 %v2638_v41, %v4429_v46  ;;  %v6838_v44 = vld [vmem:[#allocation27_spill] sm:$0xff] }
 0x28f   : > { %6826 = vst [vmem:[#allocation133_spill] sm:$0xff] %v5608_v42  ;;  %6827 = vst [vmem:[#allocation136_spill] sm:$0xff] %v5610_v49  ;;  %v671_v49 = vadd.f32 %v6831_v10, %v634_v27  ;;  %v1793_v42 = vmul.f32 %v1792_v29, %v4385_v12  ;;  %v706_v22 = vadd.f32 %v6832_v32, %v669_v5 }
 0x290   : > { %2586 = vrot.lane.b32.xlu1 %v2579_v50, %s4260_s23  ;;  %2588 = vrot.lane.b32.xlu0 %v2581_v4, %s4260_s23  ;;  %v2606_v50 = vmul.f32 %v2601_v57, %v4451_v58  ;;  %v2614_v4 = vsel %vm796_vm6, %v2612_v47, %v2613_v17  ;;  %v2640_v27 = vmul.f32 %v2638_v41, %v4433_v48  ;;  %v6835_v57 = vld [vmem:[#allocation22_spill] sm:$0xff]  ;;  %v6837_v47 = vld [vmem:[#allocation25_spill] sm:$0xff] }
 0x291   : > { %v1794_v12 = vmul.f32 %v1792_v29, %v4393_v19  ;;  %v5644_v5 = vmul.f32 %v1792_v29, %v4382_v11  ;;  %v672_v43 = vadd.f32 %v6835_v57, %v635_v30  ;;  %v707_v62 = vadd.f32 %v6836_v61, %v670_v40  ;;  %v6841_v57 = vld [vmem:[#allocation26_spill] sm:$0xff] }
 0x292   : > { %v5633_v14 = vpop.permute.xlu1 %2065  ;;  %v5635_v13 = vpop.permute.xlu0 %2067  ;;  %v708_v60 = vadd.f32 %v6837_v47, %v671_v49  ;;  %v743_v10 = vadd.f32 %v6838_v44, %v706_v22  ;;  %v2616_v11 = vsel %vm796_vm6, %v2613_v17, %v2615_v16  ;;  %v2619_v21 = vrot.slane %v2606_v50, 2  ;;  %v6842_v17 = vld [vmem:[#allocation28_spill] sm:$0xff] }
 0x293   : > { %6833 = vst [vmem:[#allocation137_spill] sm:$0xff] %v5633_v14  ;;  %6834 = vst [vmem:[#allocation11_spill] sm:$0xff] %v5635_v13  ;;  %v2641_v14 = vmul.f32 %v2638_v41, %v4440_v52  ;;  %v2618_v30 = vsel %vm796_vm6, %v2615_v16, %v2617_v2  ;;  %v2650_v40 = vrot.slane %v2640_v27, 2  ;;  %v2642_v49 = vmul.f32 %v2638_v41, %v4443_v53  ;;  %v6844_v13 = vld [vmem:[#allocation31_spill] sm:$0xff]  ;;  %v6845_v27 = vld [vmem:[#allocation30_spill] sm:$0xff] }
 0x294   : > { %2590 = vrot.lane.b32.xlu1 %v2583_v63, %s4260_s23  ;;  %2621 = vrot.lane.b32.xlu0 %v2614_v4, %s4261_s25  ;;  %v2675_v63 = vstv %s5614_s20  ;;  %v2649_v4 = vrot.slane %v2639_v26, 2  ;;  %v709_v22 = vadd.f32 %v6841_v57, %v672_v43  ;;  %v1804_v61 = vrot.slane %v1793_v42, 6  ;;  %s6233_s20 = sld [smem:[#allocation4 + $0x55]] }
 0x295   : > { %v1805_v47 = vrot.slane %v1794_v12, 6  ;;  %v1797_v44 = vmul.f32 %v1792_v29, %v4465_v6  ;;  %v744_v50 = vadd.f32 %v6842_v17, %v707_v62  ;;  %v780_v16 = vadd.f32 %v6844_v13, %v743_v10  ;;  %v6847_v10 = vld [vmem:[#allocation33_spill] sm:$0xff] }
 0x296   : > { %v5655_v32 = vpop.permute.xlu1 %2069  ;;  %v5657_v19 = vpop.permute.xlu0 %2089  ;;  %v1807_v26 = vrot.slane %v5644_v5, 6  ;;  %v746_v43 = vadd.f32 %v6845_v27, %v709_v22  ;;  %v2652_v6 = vrot.slane %v2641_v14, 2  ;;  %v2643_v29 = vmul.f32 %v2638_v41, %v4451_v58 }
 0x297   : > { %6839 = vst [vmem:[#allocation12_spill] sm:$0xff] %v5655_v32  ;;  %6840 = vst [vmem:[#allocation13_spill] sm:$0xff] %v5657_v19  ;;  %v6843_v19 = vld [vmem:[#allocation29_spill] sm:$0xff]  ;;  %v2620_v62 = vsel %vm796_vm6, %v2617_v2, %v2619_v21  ;;  %v2654_v13 = vrot.slane %v2642_v49, 2  ;;  %v2677_v5 = vmul.f32 %v2675_v63, %v4433_v48  ;;  %v1809_v57 = vrot.slane %v5647_v33, 6  ;;  %v6848_v2 = vld [vmem:[#allocation32_spill] sm:$0xff] }
 0x298   : > { %2623 = vrot.lane.b32.xlu1 %v2616_v11, %s4261_s25  ;;  %2625 = vrot.lane.b32.xlu0 %v2618_v30, %s4261_s25  ;;  %v745_v32 = vadd.f32 %v6843_v19, %v708_v60  ;;  %v2676_v11 = vmul.f32 %v2675_v63, %v4429_v46  ;;  %v2651_v60 = vsel %vm796_vm6, %v2649_v4, %v2650_v40  ;;  %v1811_v14 = vrot.slane %v1797_v44, 6  ;;  %v6849_v4 = vld [vmem:[#allocation34_spill] sm:$0xff] }
 0x299   : > { %v5688_v30 = vsel %vm1803_vm9, %v1804_v61, %v1805_v47  ;;  %v810_v41 = vadd.f32 %v5396_v56, %v780_v16  ;;  %v781_v21 = vadd.f32 %v6848_v2, %v744_v50  ;;  %v783_v49 = vadd.f32 %v6849_v4, %v746_v43 }
 0x29a   : > { %v5677_v42 = vpop.permute.xlu1 %2091  ;;  %v5679_v12 = vpop.permute.xlu0 %2093  ;;  %v782_v19 = vadd.f32 %v6847_v10, %v745_v32  ;;  %v5697_v22 = vsel %vm1803_vm9, %v1805_v47, %v1807_v26  ;;  %v2653_v33 = vsel %vm796_vm6, %v2650_v40, %v2652_v6  ;;  %v2656_v44 = vrot.slane %v2643_v29, 2  ;;  %v6852_v29 = vld [vmem:[#allocation35_spill] sm:$0xff]  ;;  %v6853_v10 = vld [vmem:[#allocation37_spill] sm:$0xff] }
 0x29b   : > { %6846 = vst [vmem:[#allocation14_spill] sm:$0xff] %v5677_v42  ;;  %v2686_v17 = vrot.slane %v2676_v11, 2  ;;  %v2741_v27 = vstv %s5662_s22  ;;  %v2687_v56 = vrot.slane %v2677_v5, 2  ;;  %v2678_v50 = vmul.f32 %v2675_v63, %v4440_v52  ;;  %s6279_s22 = sld [smem:[#allocation4 + $0x56]] }
 0x29c   : > { %2627 = vrot.lane.b32.xlu1 %v2620_v62, %s4261_s25  ;;  %2658 = vrot.lane.b32.xlu0 %v2651_v60, %s4262_s28  ;;  %v2655_v62 = vsel %vm796_vm6, %v2652_v6, %v2654_v13  ;;  %v2679_v16 = vmul.f32 %v2675_v63, %v4443_v53  ;;  %v812_v47 = vadd.f32 %v5420_v24, %v782_v19  ;;  %v5722_v60 = vstv %s5674_s24  ;;  %s6313_s24 = sld [smem:[#allocation4 + $0x57]] }
 0x29d   : > { %v5712_v43 = vsel %vm1803_vm9, %v1807_v26, %v1809_v57  ;;  %v5715_v40 = vsel %vm1803_vm9, %v1809_v57, %v1811_v14  ;;  %v811_v6 = vadd.f32 %v5410_v37, %v781_v21  ;;  %v847_v11 = vadd.f32 %v6852_v29, %v810_v41 }
 0x29e   : > { %v5699_v32 = vpop.permute.xlu1 %2095  ;;  %v5701_v61 = vpop.permute.xlu0 %2115  ;;  %v2680_v5 = vmul.f32 %v2675_v63, %v4451_v58  ;;  %v813_v24 = vadd.f32 %v5423_v9, %v783_v49  ;;  %v849_v26 = vadd.f32 %v6853_v10, %v812_v47  ;;  %v2742_v14 = vmul.f32 %v2741_v27, %v4429_v46 }
 0x29f   : > { %6850 = vst [vmem:[#allocation15_spill] sm:$0xff] %v5699_v32  ;;  %6851 = vst [vmem:[#allocation16_spill] sm:$0xff] %v5701_v61  ;;  %v2743_v2 = vmul.f32 %v2741_v27, %v4433_v48  ;;  %v2657_v37 = vsel %vm796_vm6, %v2654_v13, %v2656_v44  ;;  %v2688_v41 = vsel %vm796_vm6, %v2686_v17, %v2687_v56  ;;  %v2689_v21 = vrot.slane %v2678_v50, 2  ;;  %v6858_v13 = vld [vmem:[#allocation38_spill] sm:$0xff]  ;;  %v6859_v17 = vld [vmem:[#allocation39_spill] sm:$0xff] }
 0x2a0   : > { %2660 = vrot.lane.b32.xlu1 %v2653_v33, %s4262_s28  ;;  %2662 = vrot.lane.b32.xlu0 %v2655_v62, %s4262_s28  ;;  %v2691_v4 = vrot.slane %v2679_v16, 2  ;;  %v6856_v33 = vld [vmem:[#allocation36_spill] sm:$0xff]  ;;  %v5738_v9 = vmul.f32 %v5722_v60, %v4429_v46  ;;  %v5742_v49 = vmul.f32 %v5722_v60, %v4433_v48  ;;  %v850_v44 = vadd.f32 %v6858_v13, %v813_v24  ;;  %v6860_v50 = vld [vmem:[#allocation41_spill] sm:$0xff] }
 0x2a1   : > { %v848_v63 = vadd.f32 %v6856_v33, %v811_v6  ;;  %v884_v62 = vadd.f32 %v6859_v17, %v847_v11  ;;  %v886_v16 = vadd.f32 %v6860_v50, %v849_v26  ;;  %v2693_v47 = vrot.slane %v2680_v5, 2  ;;  %v6864_v5 = vld [vmem:[#allocation40_spill] sm:$0xff] }
 0x2a2   : > { %v5727_v19 = vpop.permute.xlu1 %2117  ;;  %v5729_v57 = vpop.permute.xlu0 %2119  ;;  %6857 = vst [vmem:[#allocation18_spill] sm:$0xff] %v5742_v49  ;;  %v2752_v10 = vrot.slane %v2742_v14, 3  ;;  %v2753_v33 = vrot.slane %v2743_v2, 3  ;;  %v2690_v24 = vsel %vm796_vm6, %v2687_v56, %v2689_v21  ;;  %v2692_v11 = vsel %vm796_vm6, %v2689_v21, %v2691_v4  ;;  %v6865_v2 = vld [vmem:[#allocation42_spill] sm:$0xff]  ;;  %v6867_v56 = vld [vmem:[#allocation49_spill] sm:$0xff] }
 0x2a3   : > { %6854 = vst [vmem:[#allocation17_spill] sm:$0xff] %v5727_v19  ;;  %6855 = vst [vmem:[#allocation19_spill] sm:$0xff] %v5729_v57  ;;  %v6863_v19 = vld [vmem:[#allocation45_spill] sm:$0xff]  ;;  %v2778_v26 = vstv %s5708_s26  ;;  %v885_v13 = vadd.f32 %v6864_v5, %v848_v63  ;;  %v5766_v17 = vmul.f32 %v5722_v60, %v4440_v52  ;;  %v2746_v14 = vmul.f32 %v2741_v27, %v4451_v58  ;;  %v6910_v49 = vld [vmem:[#allocation78_spill] sm:$0xff]  ;;  %s6340_s26 = sld [smem:[#allocation4 + $0x46]] }
 0x2a4   : > { %2664 = vrot.lane.b32.xlu1 %v2657_v37, %s4262_s28  ;;  %2695 = vrot.lane.b32.xlu0 %v2688_v41, %s4263_s3  ;;  %v2744_v37 = vmul.f32 %v2741_v27, %v4440_v52  ;;  %v2745_v41 = vmul.f32 %v2741_v27, %v4443_v53  ;;  %v923_v42 = vadd.f32 %v6863_v19, %v886_v16  ;;  %v6866_v19 = vld [vmem:[#allocation43_spill] sm:$0xff]  ;;  %v6870_v27 = vld [vmem:[#allocation46_spill] sm:$0xff] }
 0x2a5   : > { %v887_v50 = vadd.f32 %v6865_v2, %v850_v44  ;;  %v921_v16 = vadd.f32 %v6866_v19, %v884_v62  ;;  %v2694_v21 = vsel %vm796_vm6, %v2691_v4, %v2693_v47  ;;  %v6871_v44 = vld [vmem:[#allocation47_spill] sm:$0xff]  ;;  %v6872_v62 = vld [vmem:[#allocation53_spill] sm:$0xff]  ;;  %v2759_v47 = vrot.slane %v2746_v14, 3 }
 0x2a6   : > { %v5751_v6 = vpop.permute.xlu1 %2121  ;;  %v5753_v29 = vpop.permute.xlu0 %2141  ;;  %v2757_v61 = vrot.slane %v2745_v41, 3  ;;  %v6874_v41 = vld [vmem:[#allocation50_spill] sm:$0xff] }
 0x2a7   : > { %6861 = vst [vmem:[#allocation20_spill] sm:$0xff] %v5751_v6  ;;  %6862 = vst [vmem:[#allocation21_spill] sm:$0xff] %v5753_v29  ;;  %v960_v29 = vadd.f32 %v6867_v56, %v923_v42  ;;  %v2754_v6 = vsel %vm1048_vm7, %v2752_v10, %v2753_v33  ;;  %v924_v32 = vadd.f32 %v6870_v27, %v887_v50  ;;  %v6873_v56 = vld [vmem:[#allocation44_spill] sm:$0xff]  ;;  %v5789_v10 = vstv %s5746_s27  ;;  %v6875_v27 = vld [vmem:[#allocation51_spill] sm:$0xff]  ;;  %s6382_s27 = sld [smem:[#allocation4 + $0x58]] }
 0x2a8   : > { %2697 = vrot.lane.b32.xlu1 %v2690_v24, %s4263_s3  ;;  %2699 = vrot.lane.b32.xlu0 %v2692_v11, %s4263_s3  ;;  %v2755_v24 = vrot.slane %v2744_v37, 3  ;;  %v2779_v11 = vmul.f32 %v2778_v26, %v4429_v46  ;;  %v958_v2 = vadd.f32 %v6871_v44, %v921_v16  ;;  %v2780_v42 = vmul.f32 %v2778_v26, %v4433_v48  ;;  %v6876_v44 = vld [vmem:[#allocation57_spill] sm:$0xff] }
 0x2a9   : > { %v997_v19 = vadd.f32 %v6872_v62, %v960_v29  ;;  %v922_v4 = vadd.f32 %v6873_v56, %v885_v13  ;;  %v2781_v37 = vmul.f32 %v2778_v26, %v4440_v52  ;;  %v961_v50 = vadd.f32 %v6874_v41, %v924_v32  ;;  %v6880_v41 = vld [vmem:[#allocation54_spill] sm:$0xff] }
 0x2aa   : > { %v5775_v63 = vpop.permute.xlu1 %2143  ;;  %v5777_v5 = vpop.permute.xlu0 %2145  ;;  %v995_v16 = vadd.f32 %v6875_v27, %v958_v2  ;;  %v2782_v62 = vmul.f32 %v2778_v26, %v4443_v53  ;;  %v2789_v14 = vrot.slane %v2779_v11, 3  ;;  %v2815_v56 = vstv %s5757_s30  ;;  %v6881_v27 = vld [vmem:[#allocation55_spill] sm:$0xff]  ;;  %v6882_v11 = vld [vmem:[#allocation52_spill] sm:$0xff]  ;;  %s6442_s30 = sld [smem:[#allocation4 + $0x59]] }
 0x2ab   : > { %6868 = vst [vmem:[#allocation23_spill] sm:$0xff] %v5775_v63  ;;  %6869 = vst [vmem:[#allocation22_spill] sm:$0xff] %v5777_v5  ;;  %v1034_v29 = vadd.f32 %v6876_v44, %v997_v19  ;;  %v6879_v5 = vld [vmem:[#allocation48_spill] sm:$0xff]  ;;  %v998_v2 = vadd.f32 %v6880_v41, %v961_v50  ;;  %v2790_v44 = vrot.slane %v2780_v42, 3  ;;  %v6883_v42 = vld [vmem:[#allocation58_spill] sm:$0xff] }
 0x2ac   : > { %2701 = vrot.lane.b32.xlu1 %v2694_v21, %s4263_s3  ;;  %2761 = vrot.lane.b32.xlu0 %v2754_v6, %s4258_s19  ;;  %v2756_v21 = vsel %vm1048_vm7, %v2753_v33, %v2755_v24  ;;  %v2758_v6 = vsel %vm1048_vm7, %v2755_v24, %v2757_v61  ;;  %v959_v32 = vadd.f32 %v6879_v5, %v922_v4  ;;  %v2792_v24 = vrot.slane %v2781_v37, 3 }
 0x2ad   : > { %v1032_v19 = vadd.f32 %v6881_v27, %v995_v16  ;;  %v5816_v33 = vmul.f32 %v5789_v10, %v4429_v46  ;;  %v2783_v5 = vmul.f32 %v2778_v26, %v4451_v58  ;;  %v1064_v50 = vadd.f32 %v5443_v59, %v1034_v29  ;;  %v6886_v59 = vld [vmem:[#allocation56_spill] sm:$0xff] }
 0x2ae   : > { %v5796_v63 = vpop.permute.xlu1 %2147  ;;  %v5798_v13 = vpop.permute.xlu0 %2167  ;;  %v996_v4 = vadd.f32 %v6882_v11, %v959_v32  ;;  %v1035_v16 = vadd.f32 %v6883_v42, %v998_v2  ;;  %v2794_v41 = vrot.slane %v2782_v62, 3  ;;  %v2816_v37 = vmul.f32 %v2815_v56, %v4429_v46  ;;  %v6887_v2 = vld [vmem:[#allocation61_spill] sm:$0xff] }
 0x2af   : > { %6877 = vst [vmem:[#allocation24_spill] sm:$0xff] %v5796_v63  ;;  %6878 = vst [vmem:[#allocation25_spill] sm:$0xff] %v5798_v13  ;;  %v5810_v63 = vmul.f32 %v5722_v60, %v4443_v53  ;;  %v2817_v26 = vmul.f32 %v2815_v56, %v4433_v48  ;;  %v1062_v32 = vadd.f32 %v5426_v45, %v1032_v19  ;;  %v2796_v42 = vrot.slane %v2783_v5, 3  ;;  %v6888_v19 = vld [vmem:[#allocation59_spill] sm:$0xff] }
 0x2b0   : > { %2763 = vrot.lane.b32.xlu1 %v2756_v21, %s4258_s19  ;;  %2765 = vrot.lane.b32.xlu0 %v2758_v6, %s4258_s19  ;;  %v2760_v21 = vsel %vm1048_vm7, %v2757_v61, %v2759_v47  ;;  %v5829_v6 = vmul.f32 %v5789_v10, %v4433_v48  ;;  %v1033_v29 = vadd.f32 %v6886_v59, %v996_v4  ;;  %v2221_v61 = vrot.slane %v5816_v33, 1  ;;  %v6889_v59 = vld [vmem:[#allocation65_spill] sm:$0xff] }
 0x2b1   : > { %v1101_v62 = vadd.f32 %v6887_v2, %v1064_v50  ;;  %v2791_v11 = vsel %vm1048_vm7, %v2789_v14, %v2790_v44  ;;  %v2793_v47 = vsel %vm1048_vm7, %v2790_v44, %v2792_v24  ;;  %v1065_v45 = vadd.f32 %v5467_v15, %v1035_v16  ;;  %v6893_v15 = vld [vmem:[#allocation63_spill] sm:$0xff] }
 0x2b2   : > { %v5822_v60 = vpop.permute.xlu1 %2169  ;;  %v5824_v27 = vpop.permute.xlu0 %2171  ;;  %v1099_v4 = vadd.f32 %v6888_v19, %v1062_v32  ;;  %v2795_v14 = vsel %vm1048_vm7, %v2792_v24, %v2794_v41  ;;  %v2827_v13 = vrot.slane %v2817_v26, 3  ;;  %v2819_v33 = vmul.f32 %v2815_v56, %v4443_v53  ;;  %v6894_v32 = vld [vmem:[#allocation69_spill] sm:$0xff] }
 0x2b3   : > { %6884 = vst [vmem:[#allocation27_spill] sm:$0xff] %v5822_v60  ;;  %6885 = vst [vmem:[#allocation26_spill] sm:$0xff] %v5824_v27  ;;  %v2818_v60 = vmul.f32 %v2815_v56, %v4440_v52  ;;  %v1138_v50 = vadd.f32 %v6889_v59, %v1101_v62  ;;  %v2852_v44 = vstv %s5803_s4  ;;  %v1063_v5 = vadd.f32 %v5440_v51, %v1033_v29  ;;  %v6892_v27 = vld [vmem:[#allocation62_spill] sm:$0xff]  ;;  %v6895_v51 = vld [vmem:[#allocation60_spill] sm:$0xff]  ;;  %s6475_s4 = sld [smem:[#allocation4 + $0x5a]] }
 0x2b4   : > { %2767 = vrot.lane.b32.xlu1 %v2760_v21, %s4258_s19  ;;  %2798 = vrot.lane.b32.xlu0 %v2791_v11, %s4259_s21  ;;  %v2826_v11 = vrot.slane %v2816_v37, 3  ;;  %v1102_v57 = vadd.f32 %v6892_v27, %v1065_v45  ;;  %v1136_v16 = vadd.f32 %v6893_v15, %v1099_v4  ;;  %v2797_v37 = vsel %vm1048_vm7, %v2794_v41, %v2796_v42  ;;  %v6896_v27 = vld [vmem:[#allocation66_spill] sm:$0xff]  ;;  %v6897_v4 = vld [vmem:[#allocation67_spill] sm:$0xff] }
 0x2b5   : > { %v1175_v19 = vadd.f32 %v6894_v32, %v1138_v50  ;;  %v2829_v26 = vrot.slane %v2818_v60, 3  ;;  %v2820_v62 = vmul.f32 %v2815_v56, %v4451_v58  ;;  %v1100_v29 = vadd.f32 %v6895_v51, %v1063_v5  ;;  %v6898_v50 = vld [vmem:[#allocation73_spill] sm:$0xff]  ;;  %v6901_v56 = vld [vmem:[#allocation64_spill] sm:$0xff]  ;;  %v6902_v5 = vld [vmem:[#allocation70_spill] sm:$0xff] }
 0x2b6   : > { %v5846_v2 = vpop.permute.xlu1 %2173  ;;  %v5848_v21 = vpop.permute.xlu0 %2193  ;;  %v1139_v45 = vadd.f32 %v6896_v27, %v1102_v57  ;;  %v1173_v59 = vadd.f32 %v6897_v4, %v1136_v16  ;;  %v2853_v41 = vmul.f32 %v2852_v44, %v4429_v46  ;;  %v2854_v60 = vmul.f32 %v2852_v44, %v4433_v48  ;;  %v6903_v57 = vld [vmem:[#allocation71_spill] sm:$0xff]  ;;  %v6904_v16 = vld [vmem:[#allocation77_spill] sm:$0xff] }
 0x2b7   : > { %6890 = vst [vmem:[#allocation28_spill] sm:$0xff] %v5846_v2  ;;  %6891 = vst [vmem:[#allocation29_spill] sm:$0xff] %v5848_v21  ;;  %v1212_v15 = vadd.f32 %v6898_v50, %v1175_v19  ;;  %v1137_v42 = vadd.f32 %v6901_v56, %v1100_v29  ;;  %v5880_v19 = vmul.f32 %v5789_v10, %v4440_v52  ;;  %v6906_v50 = vld [vmem:[#allocation74_spill] sm:$0xff]  ;;  %v6907_v56 = vld [vmem:[#allocation75_spill] sm:$0xff] }
 0x2b8   : > { %2800 = vrot.lane.b32.xlu1 %v2793_v47, %s4259_s21  ;;  %2802 = vrot.lane.b32.xlu0 %v2795_v14, %s4259_s21  ;;  %v2828_v47 = vsel %vm1048_vm7, %v2826_v11, %v2827_v13  ;;  %v2831_v14 = vrot.slane %v2819_v33, 3  ;;  %v1176_v51 = vadd.f32 %v6902_v5, %v1139_v45  ;;  %v1210_v27 = vadd.f32 %v6903_v57, %v1173_v59  ;;  %v6905_v45 = vld [vmem:[#allocation68_spill] sm:$0xff]  ;;  %v6908_v57 = vld [vmem:[#allocation81_spill] sm:$0xff] }
 0x2b9   : > { %v1249_v4 = vadd.f32 %v6904_v16, %v1212_v15  ;;  %v2830_v11 = vsel %vm1048_vm7, %v2827_v13, %v2829_v26  ;;  %v2833_v33 = vrot.slane %v2820_v62, 3  ;;  %v2855_v29 = vmul.f32 %v2852_v44, %v4440_v52  ;;  %v6909_v2 = vld [vmem:[#allocation72_spill] sm:$0xff] }
 0x2ba   : > { %v5867_v32 = vpop.permute.xlu1 %2195  ;;  %v5869_v24 = vpop.permute.xlu0 %2197  ;;  %v1174_v59 = vadd.f32 %v6905_v45, %v1137_v42  ;;  %v1213_v15 = vadd.f32 %v6906_v50, %v1176_v51  ;;  %v1247_v5 = vadd.f32 %v6907_v56, %v1210_v27  ;;  %v2832_v13 = vsel %vm1048_vm7, %v2829_v26, %v2831_v14  ;;  %v6911_v45 = vld [vmem:[#allocation79_spill] sm:$0xff] }
 0x2bb   : > { %6899 = vst [vmem:[#allocation31_spill] sm:$0xff] %v5867_v32  ;;  %6900 = vst [vmem:[#allocation30_spill] sm:$0xff] %v5869_v24  ;;  %v1286_v16 = vadd.f32 %v6908_v57, %v1249_v4  ;;  %v2863_v62 = vrot.slane %v2853_v41, 3  ;;  %v2856_v21 = vmul.f32 %v2852_v44, %v4443_v53  ;;  %v2889_v50 = vstv %s5856_s5  ;;  %s3969_s5 = sld [smem:[#allocation4 + $0x5c]] }
 0x2bc   : > { %2804 = vrot.lane.b32.xlu1 %v2797_v37, %s4259_s21  ;;  %2835 = vrot.lane.b32.xlu0 %v2828_v47, %s4260_s23  ;;  %v2864_v47 = vrot.slane %v2854_v60, 3  ;;  %v1211_v24 = vadd.f32 %v6909_v2, %v1174_v59  ;;  %v1250_v42 = vadd.f32 %v6910_v49, %v1213_v15  ;;  %v1284_v51 = vadd.f32 %v6911_v45, %v1247_v5  ;;  %v6913_v2 = vld [vmem:[#allocation76_spill] sm:$0xff]  ;;  %v6914_v59 = vld [vmem:[#allocation82_spill] sm:$0xff] }
 0x2bd   : > { %v6912_v27 = vrot.slane %v5829_v6, 1  ;;  %v5910_v26 = vmul.f32 %v5789_v10, %v4443_v53  ;;  %v2857_v49 = vmul.f32 %v2852_v44, %v4451_v58  ;;  %v1316_v60 = vadd.f32 %v5529_v0, %v1286_v16  ;;  %v6917_v0 = vld [vmem:[#allocation85_spill] sm:$0xff] }
 0x2be   : > { %v5892_v32 = vpop.permute.xlu1 %2199  ;;  %v5894_v37 = vpop.permute.xlu0 %2259  ;;  %v1248_v41 = vadd.f32 %v6913_v2, %v1211_v24  ;;  %v1287_v15 = vadd.f32 %v6914_v59, %v1250_v42  ;;  %v2834_v45 = vsel %vm1048_vm7, %v2831_v14, %v2833_v33  ;;  %v1314_v44 = vadd.f32 %v5507_v55, %v1284_v51  ;;  %v6916_v24 = vld [vmem:[#allocation80_spill] sm:$0xff]  ;;  %v6918_v51 = vld [vmem:[#allocation83_spill] sm:$0xff]  ;;  %v6919_v59 = vld [vmem:[#allocation89_spill] sm:$0xff] }
 0x2bf   : > { %v5905_v4 = vsel %vm544_vm5, %v2221_v61, %v6912_v27  ;;  %v2866_v61 = vrot.slane %v2855_v29, 3  ;;  %v2868_v27 = vrot.slane %v2856_v21, 3  ;;  %v1353_v16 = vadd.f32 %v6917_v0, %v1316_v60 }
 0x2c0   : > { %2837 = vrot.lane.b32.xlu1 %v2830_v11, %s4260_s23  ;;  %2839 = vrot.lane.b32.xlu0 %v2832_v13, %s4260_s23  ;;  %v2890_v11 = vmul.f32 %v2889_v50, %v4429_v46  ;;  %v2891_v13 = vmul.f32 %v2889_v50, %v4433_v48  ;;  %v1285_v2 = vadd.f32 %v6916_v24, %v1248_v41  ;;  %v2870_v14 = vrot.slane %v2857_v49, 3 }
 0x2c1   : > { %v2865_v29 = vsel %vm1048_vm7, %v2863_v62, %v2864_v47  ;;  %v2892_v21 = vmul.f32 %v2889_v50, %v4440_v52  ;;  %v2926_v33 = vstv %s5886_s6  ;;  %v1317_v55 = vadd.f32 %v5532_v34, %v1287_v15  ;;  %v6922_v15 = vld [vmem:[#allocation87_spill] sm:$0xff]  ;;  %s3970_s6 = sld [smem:[#allocation4 + $0x5d]] }
 0x2c2   : > { %v5918_v5 = vpop.permute.xlu1 %2261  ;;  %v5920_v57 = vpop.permute.xlu0 %2263  ;;  %v1351_v41 = vadd.f32 %v6918_v51, %v1314_v44  ;;  %v1390_v60 = vadd.f32 %v6919_v59, %v1353_v16  ;;  %v2867_v62 = vsel %vm1048_vm7, %v2864_v47, %v2866_v61  ;;  %v2900_v49 = vrot.slane %v2890_v11, 3  ;;  %v6923_v51 = vld [vmem:[#allocation93_spill] sm:$0xff]  ;;  %v6926_v11 = vld [vmem:[#allocation84_spill] sm:$0xff] }
 0x2c3   : > { %6915 = vst [vmem:[#allocation33_spill] sm:$0xff] %v5918_v5  ;;  %v2893_v42 = vmul.f32 %v2889_v50, %v4443_v53  ;;  %v1315_v56 = vadd.f32 %v5510_v36, %v1285_v2  ;;  %v6921_v5 = vld [vmem:[#allocation86_spill] sm:$0xff]  ;;  %v6924_v47 = vrot.slane %v5880_v19, 1  ;;  %v6925_v59 = vrot.slane %v5829_v6, 1 }
 0x2c4   : > { %2841 = vrot.lane.b32.xlu1 %v2834_v45, %s4260_s23  ;;  %2872 = vrot.lane.b32.xlu0 %v2865_v29, %s4261_s25  ;;  %v2869_v45 = vsel %vm1048_vm7, %v2866_v61, %v2868_v27  ;;  %v2901_v29 = vrot.slane %v2891_v13, 3  ;;  %v1354_v34 = vadd.f32 %v6921_v5, %v1317_v55  ;;  %v1388_v44 = vadd.f32 %v6922_v15, %v1351_v41  ;;  %v6927_v2 = vld [vmem:[#allocation90_spill] sm:$0xff]  ;;  %v6928_v41 = vld [vmem:[#allocation91_spill] sm:$0xff]  ;;  %v6929_v15 = vld [vmem:[#allocation97_spill] sm:$0xff] }
 0x2c5   : > { %v1427_v16 = vadd.f32 %v6923_v51, %v1390_v60  ;;  %v2871_v61 = vsel %vm1048_vm7, %v2868_v27, %v2870_v14  ;;  %v2903_v36 = vrot.slane %v2892_v21, 3  ;;  %v2894_v5 = vmul.f32 %v2889_v50, %v4451_v58  ;;  %v6931_v14 = vld [vmem:[#allocation88_spill] sm:$0xff]  ;;  %v6932_v21 = vld [vmem:[#allocation94_spill] sm:$0xff] }
 0x2c6   : > { %v5940_v24 = vpop.permute.xlu1 %2265  ;;  %v5942_v0 = vpop.permute.xlu0 %2296  ;;  %v1352_v13 = vadd.f32 %v6926_v11, %v1315_v56  ;;  %v1391_v55 = vadd.f32 %v6927_v2, %v1354_v34  ;;  %v1425_v60 = vadd.f32 %v6928_v41, %v1388_v44  ;;  %v2927_v27 = vmul.f32 %v2926_v33, %v4429_v46  ;;  %v6934_v11 = vld [vmem:[#allocation101_spill] sm:$0xff] }
 0x2c7   : > { %6920 = vst [vmem:[#allocation32_spill] sm:$0xff] %v5942_v0  ;;  %v5955_v0 = vsel %vm544_vm5, %v6925_v59, %v6924_v47  ;;  %v1464_v6 = vadd.f32 %v6929_v15, %v1427_v16  ;;  %v2928_v50 = vmul.f32 %v2926_v33, %v4433_v48  ;;  %v6933_v59 = vld [vmem:[#allocation95_spill] sm:$0xff]  ;;  %v5978_v2 = vmul.f32 %v5789_v10, %v4451_v58  ;;  %v6935_v15 = vld [vmem:[#allocation92_spill] sm:$0xff] }
 0x2c8   : > { %2874 = vrot.lane.b32.xlu1 %v2867_v62, %s4261_s25  ;;  %2876 = vrot.lane.b32.xlu0 %v2869_v45, %s4261_s25  ;;  %v2902_v62 = vsel %vm1048_vm7, %v2900_v49, %v2901_v29  ;;  %v2905_v45 = vrot.slane %v2893_v42, 3  ;;  %v1389_v56 = vadd.f32 %v6931_v14, %v1352_v13  ;;  %v1428_v34 = vadd.f32 %v6932_v21, %v1391_v55  ;;  %v6936_v14 = vld [vmem:[#allocation98_spill] sm:$0xff]  ;;  %v6937_v21 = vld [vmem:[#allocation99_spill] sm:$0xff] }
 0x2c9   : > { %v1462_v44 = vadd.f32 %v6933_v59, %v1425_v60  ;;  %v1501_v16 = vadd.f32 %v6934_v11, %v1464_v6  ;;  %v2907_v42 = vrot.slane %v2894_v5, 3  ;;  %v2929_v49 = vmul.f32 %v2926_v33, %v4440_v52  ;;  %v6938_v59 = vld [vmem:[#allocation105_spill] sm:$0xff] }
 0x2ca   : > { %v5965_v51 = vpop.permute.xlu1 %2298  ;;  %v5967_v47 = vpop.permute.xlu0 %2300  ;;  %v2992_v41 = vstv %s5934_s7  ;;  %v1426_v13 = vadd.f32 %v6935_v15, %v1389_v56  ;;  %v1465_v55 = vadd.f32 %v6936_v14, %v1428_v34  ;;  %v2937_v5 = vrot.slane %v2927_v27, 3  ;;  %v6941_v56 = vld [vmem:[#allocation96_spill] sm:$0xff]  ;;  %v6942_v34 = vld [vmem:[#allocation102_spill] sm:$0xff]  ;;  %s3971_s7 = sld [smem:[#allocation4 + $0x5e]] }
 0x2cb   : > { %6930 = vst [vmem:[#allocation34_spill] sm:$0xff] %v5965_v51  ;;  %v1499_v60 = vadd.f32 %v6937_v21, %v1462_v44  ;;  %v1538_v6 = vadd.f32 %v6938_v59, %v1501_v16  ;;  %v2930_v51 = vmul.f32 %v2926_v33, %v4443_v53  ;;  %v6943_v44 = vld [vmem:[#allocation103_spill] sm:$0xff]  ;;  %v2938_v16 = vrot.slane %v2928_v50, 3  ;;  %v6944_v59 = vld [vmem:[#allocation100_spill] sm:$0xff] }
 0x2cc   : > { %2878 = vrot.lane.b32.xlu1 %v2871_v61, %s4261_s25  ;;  %2909 = vrot.lane.b32.xlu0 %v2902_v62, %s4262_s28  ;;  %v2904_v61 = vsel %vm1048_vm7, %v2901_v29, %v2903_v36  ;;  %v2906_v62 = vsel %vm1048_vm7, %v2903_v36, %v2905_v45  ;;  %v1463_v15 = vadd.f32 %v6941_v56, %v1426_v13  ;;  %v6945_v13 = vld [vmem:[#allocation106_spill] sm:$0xff]  ;;  %v6947_v50 = vrot.slane %v5880_v19, 1 }
 0x2cd   : > { %v1502_v14 = vadd.f32 %v6942_v34, %v1465_v55  ;;  %v1536_v21 = vadd.f32 %v6943_v44, %v1499_v60  ;;  %v2931_v29 = vmul.f32 %v2926_v33, %v4451_v58  ;;  %v2993_v36 = vmul.f32 %v2992_v41, %v4429_v46 }
 0x2ce   : > { %v5988_v11 = vpop.permute.xlu1 %2302  ;;  %v5990_v10 = vpop.permute.xlu0 %2333  ;;  %v2994_v27 = vmul.f32 %v2992_v41, %v4433_v48  ;;  %v6946_v55 = vrot.slane %v5910_v26, 1  ;;  %v2940_v34 = vrot.slane %v2929_v49, 3  ;;  %v2942_v44 = vrot.slane %v2930_v51, 3 }
 0x2cf   : > { %6939 = vst [vmem:[#allocation35_spill] sm:$0xff] %v5988_v11  ;;  %6940 = vst [vmem:[#allocation37_spill] sm:$0xff] %v5990_v10  ;;  %v1500_v10 = vadd.f32 %v6944_v59, %v1463_v15  ;;  %v1567_v11 = vadd.f32 %v5620_v35, %v1538_v6  ;;  %v1539_v56 = vadd.f32 %v6945_v13, %v1502_v14  ;;  %v6949_v6 = vld [vmem:[#allocation104_spill] sm:$0xff]  ;;  %v6950_v59 = vld [vmem:[#allocation109_spill] sm:$0xff] }
 0x2d0   : > { %2911 = vrot.lane.b32.xlu1 %v2904_v61, %s4262_s28  ;;  %2913 = vrot.lane.b32.xlu0 %v2906_v62, %s4262_s28  ;;  %v6013_v60 = vsel %vm544_vm5, %v6947_v50, %v6946_v55  ;;  %v2908_v62 = vsel %vm1048_vm7, %v2905_v45, %v2907_v42  ;;  %v2995_v15 = vmul.f32 %v2992_v41, %v4440_v52  ;;  %v2944_v55 = vrot.slane %v2931_v29, 3  ;;  %v6951_v42 = vld [vmem:[#allocation107_spill] sm:$0xff] }
 0x2d1   : > { %v1565_v35 = vadd.f32 %v5596_v54, %v1536_v21  ;;  %v1537_v14 = vadd.f32 %v6949_v6, %v1500_v10  ;;  %v1604_v13 = vadd.f32 %v6950_v59, %v1567_v11  ;;  %v2939_v19 = vsel %vm1048_vm7, %v2937_v5, %v2938_v16  ;;  %v6952_v11 = vld [vmem:[#allocation113_spill] sm:$0xff] }
 0x2d2   : > { %v6015_v61 = vpop.permute.xlu1 %2335  ;;  %v6017_v33 = vpop.permute.xlu0 %2337  ;;  %v3003_v50 = vrot.slane %v2993_v36, 4  ;;  %v3004_v45 = vrot.slane %v2994_v27, 4  ;;  %v6028_v51 = vmul.f32 %v2992_v41, %v4443_v53  ;;  %v1568_v54 = vadd.f32 %v5623_v20, %v1539_v56  ;;  %v6956_v56 = vld [vmem:[#allocation111_spill] sm:$0xff] }
 0x2d3   : > { %6948 = vst [vmem:[#allocation36_spill] sm:$0xff] %v6015_v61  ;;  %v1602_v49 = vadd.f32 %v6951_v42, %v1565_v35  ;;  %v1641_v10 = vadd.f32 %v6952_v11, %v1604_v13  ;;  %v2228_v5 = vrot.slane %v5978_v2, 1  ;;  %v2941_v29 = vsel %vm1048_vm7, %v2938_v16, %v2940_v34  ;;  %v6957_v42 = vld [vmem:[#allocation117_spill] sm:$0xff]  ;;  %v6960_v11 = vld [vmem:[#allocation115_spill] sm:$0xff]  ;;  %v6968_v61 = vld [vmem:[#allocation116_spill] sm:$0xff] }
 0x2d4   : > { %2915 = vrot.lane.b32.xlu1 %v2908_v62, %s4262_s28  ;;  %2946 = vrot.lane.b32.xlu0 %v2939_v19, %s4263_s3  ;;  %v2943_v36 = vsel %vm1048_vm7, %v2940_v34, %v2942_v44  ;;  %v3006_v27 = vrot.slane %v2995_v15, 4  ;;  %v3029_v6 = vstv %s5995_s8  ;;  %v1566_v59 = vadd.f32 %v5599_v25, %v1537_v14  ;;  %v6955_v19 = vld [vmem:[#allocation110_spill] sm:$0xff]  ;;  %v6958_v15 = vld [vmem:[#allocation108_spill] sm:$0xff]  ;;  %s3954_s8 = sld [smem:[#allocation4 + $0x4d]] }
 0x2d5   : > { %v1605_v20 = vadd.f32 %v6955_v19, %v1568_v54  ;;  %v1639_v35 = vadd.f32 %v6956_v56, %v1602_v49  ;;  %v1678_v13 = vadd.f32 %v6957_v42, %v1641_v10  ;;  %v2945_v2 = vsel %vm1048_vm7, %v2942_v44, %v2944_v55  ;;  %v6959_v54 = vld [vmem:[#allocation114_spill] sm:$0xff]  ;;  %v6961_v19 = vld [vmem:[#allocation121_spill] sm:$0xff] }
 0x2d6   : > { %v6036_v21 = vpop.permute.xlu1 %2339  ;;  %v6038_v62 = vpop.permute.xlu0 %2370  ;;  %v3005_v16 = vsel %vm1300_vm8, %v3003_v50, %v3004_v45  ;;  %v3008_v34 = vrot.slane %v6028_v51, 4  ;;  %v2997_v25 = vmul.f32 %v2992_v41, %v4451_v58  ;;  %v1603_v14 = vadd.f32 %v6958_v15, %v1566_v59  ;;  %v6964_v51 = vld [vmem:[#allocation112_spill] sm:$0xff] }
 0x2d7   : > { %6953 = vst [vmem:[#allocation38_spill] sm:$0xff] %v6036_v21  ;;  %6954 = vst [vmem:[#allocation39_spill] sm:$0xff] %v6038_v62  ;;  %v1642_v49 = vadd.f32 %v6959_v54, %v1605_v20  ;;  %v1676_v10 = vadd.f32 %v6960_v11, %v1639_v35  ;;  %v1715_v56 = vadd.f32 %v6961_v19, %v1678_v13  ;;  %v6965_v20 = vld [vmem:[#allocation118_spill] sm:$0xff]  ;;  %v6966_v35 = vld [vmem:[#allocation119_spill] sm:$0xff] }
 0x2d8   : > { %2948 = vrot.lane.b32.xlu1 %v2941_v29, %s4263_s3  ;;  %2950 = vrot.lane.b32.xlu0 %v2943_v36, %s4263_s3  ;;  %v3007_v44 = vsel %vm1300_vm8, %v3004_v45, %v3006_v27  ;;  %v3030_v55 = vmul.f32 %v3029_v6, %v4429_v46  ;;  %v3031_v50 = vmul.f32 %v3029_v6, %v4433_v48  ;;  %v6967_v13 = vld [vmem:[#allocation125_spill] sm:$0xff]  ;;  %v3010_v11 = vrot.slane %v2997_v25, 4  ;;  %v6972_v21 = vld [vmem:[#allocation120_spill] sm:$0xff] }
 0x2d9   : > { %v3032_v41 = vmul.f32 %v3029_v6, %v4440_v52  ;;  %v1640_v59 = vadd.f32 %v6964_v51, %v1603_v14  ;;  %v1679_v42 = vadd.f32 %v6965_v20, %v1642_v49  ;;  %v1713_v15 = vadd.f32 %v6966_v35, %v1676_v10  ;;  %v6969_v51 = vld [vmem:[#allocation122_spill] sm:$0xff]  ;;  %v6970_v20 = vld [vmem:[#allocation123_spill] sm:$0xff]  ;;  %v6971_v35 = vld [vmem:[#allocation129_spill] sm:$0xff] }
 0x2da   : > { %v6059_v29 = vpop.permute.xlu1 %2372  ;;  %v6061_v36 = vpop.permute.xlu0 %2374  ;;  %v1752_v54 = vadd.f32 %v6967_v13, %v1715_v56  ;;  %v3009_v45 = vsel %vm1300_vm8, %v3006_v27, %v3008_v34  ;;  %v3033_v19 = vmul.f32 %v3029_v6, %v4443_v53  ;;  %v3041_v27 = vrot.slane %v3031_v50, 4 }
 0x2db   : > { %6962 = vst [vmem:[#allocation41_spill] sm:$0xff] %v6059_v29  ;;  %6963 = vst [vmem:[#allocation45_spill] sm:$0xff] %v6061_v36  ;;  %v6076_v29 = vstv %s6030_s10  ;;  %v1677_v14 = vadd.f32 %v6968_v61, %v1640_v59  ;;  %v1716_v49 = vadd.f32 %v6969_v51, %v1679_v42  ;;  %v1750_v10 = vadd.f32 %v6970_v20, %v1713_v15  ;;  %v6973_v61 = vld [vmem:[#allocation126_spill] sm:$0xff]  ;;  %v6974_v42 = vld [vmem:[#allocation127_spill] sm:$0xff]  ;;  %s6538_s10 = sld [smem:[#allocation4 + $0x5f]] }
 0x2dc   : > { %2952 = vrot.lane.b32.xlu1 %v2945_v2, %s4263_s3  ;;  %3012 = vrot.lane.b32.xlu0 %v3005_v16, %s4258_s19  ;;  %v1789_v56 = vadd.f32 %v6971_v35, %v1752_v54  ;;  %v3040_v16 = vrot.slane %v3030_v55, 4  ;;  %v3043_v25 = vrot.slane %v3032_v41, 4  ;;  %v3034_v62 = vmul.f32 %v3029_v6, %v4451_v58  ;;  %v6976_v55 = vld [vmem:[#allocation124_spill] sm:$0xff] }
 0x2dd   : > { %v1714_v36 = vadd.f32 %v6972_v21, %v1677_v14  ;;  %v1753_v59 = vadd.f32 %v6973_v61, %v1716_v49  ;;  %v1787_v51 = vadd.f32 %v6974_v42, %v1750_v10  ;;  %v6093_v15 = vstv %s6047_s14  ;;  %v6977_v14 = vld [vmem:[#allocation130_spill] sm:$0xff] }
 0x2de   : > { %v6082_v13 = vpop.permute.xlu1 %2376  ;;  %v6084_v2 = vpop.permute.xlu0 %2407  ;;  %v6975_v54 = vrot.slane %v5910_v26, 1  ;;  %v3011_v6 = vsel %vm1300_vm8, %v3008_v34, %v3010_v11  ;;  %v3067_v21 = vmul.f32 %v6076_v29, %v4429_v46  ;;  %v1819_v41 = vadd.f32 %v5712_v43, %v1789_v56  ;;  %v6978_v43 = vld [vmem:[#allocation128_spill] sm:$0xff]  ;;  %v6979_v56 = vld [vmem:[#allocation135_spill] sm:$0xff] }
 0x2df   : > { %v1751_v50 = vadd.f32 %v6976_v55, %v1714_v36  ;;  %v1790_v49 = vadd.f32 %v6977_v14, %v1753_v59  ;;  %v3045_v10 = vrot.slane %v3033_v19, 4  ;;  %v3047_v35 = vrot.slane %v3034_v62, 4 }
 0x2e0   : > { %v6098_v20 = vsel %vm544_vm5, %v6975_v54, %v2228_v5  ;;  %3014 = vrot.lane.b32.xlu1 %v3007_v44, %s4258_s19  ;;  %3016 = vrot.lane.b32.xlu0 %v3009_v45, %s4258_s19  ;;  %v3042_v44 = vsel %vm1300_vm8, %v3040_v16, %v3041_v27  ;;  %v3068_v34 = vmul.f32 %v6076_v29, %v4433_v48  ;;  %v3077_v62 = vrot.slane %v3067_v21, 4 }
 0x2e1   : > { %v6117_v45 = vmul.f32 %v6093_v15, %v4429_v46  ;;  %v1817_v36 = vadd.f32 %v5688_v30, %v1787_v51  ;;  %v1788_v11 = vadd.f32 %v6978_v43, %v1751_v50  ;;  %v1856_v19 = vadd.f32 %v6979_v56, %v1819_v41  ;;  %v6981_v56 = vld [vmem:[#allocation138_spill] sm:$0xff] }
 0x2e2   : > { %v6108_v26 = vpop.permute.xlu1 %2409  ;;  %v6110_v5 = vpop.permute.xlu0 %2411  ;;  %v3044_v61 = vsel %vm1300_vm8, %v3041_v27, %v3043_v25  ;;  %v6127_v16 = vmul.f32 %v6093_v15, %v4433_v48  ;;  %v3069_v59 = vmul.f32 %v6076_v29, %v4440_v52  ;;  %v6133_v30 = vmul.f32 %v6076_v29, %v4443_v53  ;;  %v6980_v27 = vld [vmem:[#allocation131_spill] sm:$0xff] }
 0x2e3   : > { %v1820_v42 = vadd.f32 %v5715_v40, %v1790_v49  ;;  %v1854_v51 = vadd.f32 %v6980_v27, %v1817_v36  ;;  %v1893_v54 = vadd.f32 %v5402_v23, %v1856_v19  ;;  %v3048_v50 = vsel %vm1300_vm8, %v3045_v10, %v3047_v35  ;;  %v6982_v49 = vld [vmem:[#allocation139_spill] sm:$0xff] }
 0x2e4   : > { %3018 = vrot.lane.b32.xlu1 %v3011_v6, %s4258_s19  ;;  %3049 = vrot.lane.b32.xlu0 %v3042_v44, %s4259_s21  ;;  %v3046_v6 = vsel %vm1300_vm8, %v3043_v25, %v3045_v10  ;;  %v3078_v41 = vrot.slane %v3068_v34, 4  ;;  %v2472_v14 = vrot.slane %v6117_v45, 2  ;;  %v3103_v44 = vstv %s6087_s9  ;;  %v6983_v34 = vld [vmem:[#allocation134_spill] sm:$0xff] }
 0x2e5   : > { %v1818_v43 = vadd.f32 %v5697_v22, %v1788_v11  ;;  %v1857_v40 = vadd.f32 %v6981_v56, %v1820_v42  ;;  %v1891_v36 = vadd.f32 %v6982_v49, %v1854_v51  ;;  %v1930_v23 = vadd.f32 %v5458_v18, %v1893_v54 }
 0x2e6   : > { %v6139_v21 = vpop.permute.xlu1 %2413  ;;  %v6141_v55 = vpop.permute.xlu0 %2444  ;;  %v2473_v25 = vrot.slane %v6127_v16, 2  ;;  %v3080_v10 = vrot.slane %v3069_v59, 4  ;;  %v3082_v35 = vrot.slane %v6133_v30, 4  ;;  %v6158_v22 = vmul.f32 %v6093_v15, %v4440_v52 }
 0x2e7   : > { %v1855_v45 = vadd.f32 %v6983_v34, %v1818_v43  ;;  %v1894_v11 = vadd.f32 %v5428_v38, %v1857_v40  ;;  %v1928_v18 = vadd.f32 %v5430_v31, %v1891_v36  ;;  %v1967_v19 = vadd.f32 %v5499_v7, %v1930_v23  ;;  %v6987_v34 = vld [vmem:[#allocation141_spill] sm:$0xff] }
 0x2e8   : > { %3051 = vrot.lane.b32.xlu1 %v3044_v61, %s4259_s21  ;;  %3053 = vrot.lane.b32.xlu0 %v3046_v6, %s4259_s21  ;;  %v3079_v16 = vsel %vm1300_vm8, %v3077_v62, %v3078_v41  ;;  %v3071_v59 = vmul.f32 %v6076_v29, %v4451_v58  ;;  %v3104_v30 = vmul.f32 %v3103_v44, %v4429_v46  ;;  %v6667_v54 = vrot.slane %v6158_v22, 2 }
 0x2e9   : > { %v3105_v27 = vmul.f32 %v3103_v44, %v4433_v48  ;;  %v1892_v51 = vadd.f32 %v5400_v3, %v1855_v45  ;;  %v1931_v38 = vadd.f32 %v5478_v1, %v1894_v11  ;;  %v1965_v31 = vadd.f32 %v5480_v39, %v1928_v18  ;;  %v6984_v3 = vld [vmem:[#allocation140_spill] sm:$0xff] }
 0x2ea   : > { %v6164_v61 = vpop.permute.xlu1 %2446  ;;  %v6166_v42 = vpop.permute.xlu0 %2448  ;;  %v2004_v7 = vadd.f32 %v5546_v8, %v1967_v19  ;;  %v3081_v62 = vsel %vm1300_vm8, %v3078_v41, %v3080_v10  ;;  %v3083_v29 = vsel %vm1300_vm8, %v3080_v10, %v3082_v35  ;;  %v3106_v6 = vmul.f32 %v3103_v44, %v4440_v52  ;;  %v6985_v8 = vld [vmem:[#allocation142_spill] sm:$0xff]  ;;  %v6988_v11 = vld [vmem:[#allocation132_spill] sm:$0xff] }
 0x2eb   : > { %v1929_v1 = vadd.f32 %v6984_v3, %v1892_v51  ;;  %v1968_v39 = vadd.f32 %v5519_v28, %v1931_v38  ;;  %v2002_v43 = vadd.f32 %v6985_v8, %v1965_v31  ;;  %v3084_v49 = vrot.slane %v3071_v59, 4  ;;  %v6989_v19 = vld [vmem:[#allocation8_spill] sm:$0xff]  ;;  %v6990_v38 = vld [vmem:[#allocation7_spill] sm:$0xff] }
 0x2ec   : > { %3055 = vrot.lane.b32.xlu1 %v3048_v50, %s4259_s21  ;;  %3086 = vrot.lane.b32.xlu0 %v3079_v16, %s4260_s23  ;;  %v6986_v50 = vld [vmem:[#allocation10_spill] sm:$0xff]  ;;  %v3114_v36 = vrot.slane %v3104_v30, 4  ;;  %v3115_v23 = vrot.slane %v3105_v27, 4  ;;  %v3107_v10 = vmul.f32 %v3103_v44, %v4443_v53  ;;  %v3140_v28 = vstv %s6150_s17 }
 0x2ed   : > { %v2041_v56 = vadd.f32 %v6986_v50, %v2004_v7  ;;  %v1966_v45 = vadd.f32 %v6987_v34, %v1929_v1  ;;  %v2005_v18 = vadd.f32 %v6988_v11, %v1968_v39  ;;  %v2039_v16 = vadd.f32 %v6989_v19, %v2002_v43  ;;  %v6992_v50 = vld [vmem:[#allocation9_spill] sm:$0xff]  ;;  %v6994_v11 = vld [vmem:[#allocation136_spill] sm:$0xff] }
 0x2ee   : > { %v6189_v40 = vpop.permute.xlu1 %2450  ;;  %v6191_v41 = vpop.permute.xlu0 %2510  ;;  %v6199_v51 = vsel %vm796_vm6, %v2472_v14, %v2473_v25  ;;  %v6206_v59 = vsel %vm796_vm6, %v2473_v25, %v6667_v54  ;;  %v6210_v30 = vmul.f32 %v6093_v15, %v4443_v53  ;;  %v3117_v27 = vrot.slane %v3106_v6, 4  ;;  %v6991_v14 = vld [vmem:[#allocation133_spill] sm:$0xff] }
 0x2ef   : > { %v2003_v31 = vadd.f32 %v6990_v38, %v1966_v45  ;;  %v2051_v7 = vadd.f32 %v5766_v17, %v2041_v56  ;;  %v2042_v3 = vadd.f32 %v6991_v14, %v2005_v18  ;;  %v3085_v25 = vsel %vm1300_vm8, %v3082_v35, %v3084_v49  ;;  %v6993_v56 = vld [vmem:[#allocation11_spill] sm:$0xff]  ;;  %v7009_v45 = vld [vmem:[#allocation24_spill] sm:$0xff] }
 0x2f0   : > { %3088 = vrot.lane.b32.xlu1 %v3081_v62, %s4260_s23  ;;  %3090 = vrot.lane.b32.xlu0 %v3083_v29, %s4260_s23  ;;  %v3108_v62 = vmul.f32 %v3103_v44, %v4451_v58  ;;  %v3119_v39 = vrot.slane %v3107_v10, 4  ;;  %v3141_v8 = vmul.f32 %v3140_v28, %v4429_v46  ;;  %v3142_v6 = vmul.f32 %v3140_v28, %v4433_v48 }
 0x2f1   : > { %v2049_v43 = vadd.f32 %v5738_v9, %v2039_v16  ;;  %v2040_v17 = vadd.f32 %v6992_v50, %v2003_v31  ;;  %v2077_v34 = vadd.f32 %v6993_v56, %v2051_v7  ;;  %v3116_v44 = vsel %vm1300_vm8, %v3114_v36, %v3115_v23  ;;  %v6996_v56 = vld [vmem:[#allocation12_spill] sm:$0xff] }
 0x2f2   : > { %v6216_v29 = vpop.permute.xlu1 %2512  ;;  %v6218_v1 = vpop.permute.xlu0 %2514  ;;  %v3118_v35 = vsel %vm1300_vm8, %v3115_v23, %v3117_v27  ;;  %v3143_v49 = vmul.f32 %v3140_v28, %v4440_v52  ;;  %v3177_v10 = vstv %s6183_s18  ;;  %v2052_v9 = vadd.f32 %v5810_v63, %v2042_v3  ;;  %v6997_v63 = vld [vmem:[#allocation13_spill] sm:$0xff] }
 0x2f3   : > { %v2075_v18 = vadd.f32 %v6994_v11, %v2049_v43  ;;  %v2103_v19 = vadd.f32 %v5679_v12, %v2077_v34  ;;  %v3121_v36 = vrot.slane %v3108_v62, 4  ;;  %v3120_v31 = vsel %vm1300_vm8, %v3117_v27, %v3119_v39  ;;  %v6998_v43 = vld [vmem:[#allocation19_spill] sm:$0xff] }
 0x2f4   : > { %3092 = vrot.lane.b32.xlu1 %v3085_v25, %s4260_s23  ;;  %3123 = vrot.lane.b32.xlu0 %v3116_v44, %s4261_s25  ;;  %v3151_v7 = vrot.slane %v3141_v8, 4  ;;  %v3152_v23 = vrot.slane %v3142_v6, 4  ;;  %v3144_v14 = vmul.f32 %v3140_v28, %v4443_v53  ;;  %v6995_v25 = vld [vmem:[#allocation18_spill] sm:$0xff]  ;;  %v2078_v44 = vadd.f32 %v6996_v56, %v2052_v9  ;;  %v6999_v6 = vld [vmem:[#allocation137_spill] sm:$0xff]  ;;  %v7000_v34 = vld [vmem:[#allocation15_spill] sm:$0xff] }
 0x2f5   : > { %v2050_v50 = vadd.f32 %v6995_v25, %v2040_v17  ;;  %v2101_v3 = vadd.f32 %v6997_v63, %v2075_v18  ;;  %v2129_v11 = vadd.f32 %v6998_v43, %v2103_v19  ;;  %v6250_v12 = vmul.f32 %v6093_v15, %v4451_v58  ;;  %v7001_v18 = vld [vmem:[#allocation16_spill] sm:$0xff]  ;;  %v7002_v19 = vld [vmem:[#allocation22_spill] sm:$0xff] }
 0x2f6   : > { %v6238_v16 = vpop.permute.xlu1 %2516  ;;  %v6240_v38 = vpop.permute.xlu0 %2547  ;;  %v3154_v27 = vrot.slane %v3143_v49, 4  ;;  %v3145_v62 = vmul.f32 %v3140_v28, %v4451_v58  ;;  %v3178_v8 = vmul.f32 %v3177_v10, %v4429_v46  ;;  %v2104_v9 = vadd.f32 %v7000_v34, %v2078_v44  ;;  %v7004_v43 = vld [vmem:[#allocation14_spill] sm:$0xff]  ;;  %v7006_v34 = vld [vmem:[#allocation21_spill] sm:$0xff] }
 0x2f7   : > { %v2076_v17 = vadd.f32 %v6999_v6, %v2050_v50  ;;  %v2127_v25 = vadd.f32 %v7001_v18, %v2101_v3  ;;  %v2155_v56 = vadd.f32 %v7002_v19, %v2129_v11  ;;  %v3153_v49 = vsel %vm1300_vm8, %v3151_v7, %v3152_v23  ;;  %v7005_v6 = vld [vmem:[#allocation20_spill] sm:$0xff]  ;;  %v7007_v18 = vld [vmem:[#allocation26_spill] sm:$0xff] }
 0x2f8   : > { %3125 = vrot.lane.b32.xlu1 %v3118_v35, %s4261_s25  ;;  %3127 = vrot.lane.b32.xlu0 %v3120_v31, %s4261_s25  ;;  %v3122_v35 = vsel %vm1300_vm8, %v3119_v39, %v3121_v36  ;;  %v3156_v28 = vrot.slane %v3144_v14, 4  ;;  %v3179_v31 = vmul.f32 %v3177_v10, %v4433_v48  ;;  %v2130_v44 = vadd.f32 %v7005_v6, %v2104_v9  ;;  %v7008_v14 = vld [vmem:[#allocation17_spill] sm:$0xff]  ;;  %v7011_v9 = vld [vmem:[#allocation30_spill] sm:$0xff] }
 0x2f9   : > { %v2102_v50 = vadd.f32 %v7004_v43, %v2076_v17  ;;  %v2153_v3 = vadd.f32 %v7006_v34, %v2127_v25  ;;  %v2181_v11 = vadd.f32 %v7007_v18, %v2155_v56  ;;  %v3155_v19 = vsel %vm1300_vm8, %v3152_v23, %v3154_v27  ;;  %v7010_v17 = vld [vmem:[#allocation25_spill] sm:$0xff] }
 0x2fa   : > { %v6260_v15 = vpop.permute.xlu1 %2549  ;;  %v6262_v63 = vpop.permute.xlu0 %2551  ;;  %v3158_v39 = vrot.slane %v3145_v62, 4  ;;  %v3188_v36 = vrot.slane %v3178_v8, 4  ;;  %v3243_v7 = vstv %s6233_s20  ;;  %v3180_v23 = vmul.f32 %v3177_v10, %v4440_v52  ;;  %v7014_v34 = vld [vmem:[#allocation29_spill] sm:$0xff] }
 0x2fb   : > { %7003 = vst [vmem:[#allocation40_spill] sm:$0xff] %v6260_v15  ;;  %v2128_v54 = vadd.f32 %v7008_v14, %v2102_v50  ;;  %v2156_v15 = vadd.f32 %v7009_v45, %v2130_v44  ;;  %v2179_v43 = vadd.f32 %v7010_v17, %v2153_v3  ;;  %v2207_v6 = vadd.f32 %v7011_v9, %v2181_v11  ;;  %v7013_v50 = vld [vmem:[#allocation28_spill] sm:$0xff] }
 0x2fc   : > { %3129 = vrot.lane.b32.xlu1 %v3122_v35, %s4261_s25  ;;  %3160 = vrot.lane.b32.xlu0 %v3153_v49, %s4262_s28  ;;  %v3157_v35 = vsel %vm1300_vm8, %v3154_v27, %v3156_v28  ;;  %v3181_v62 = vmul.f32 %v3177_v10, %v4443_v53  ;;  %v3182_v8 = vmul.f32 %v3177_v10, %v4451_v58  ;;  %v7012_v49 = vld [vmem:[#allocation23_spill] sm:$0xff]  ;;  %v3189_v18 = vrot.slane %v3179_v31, 4 }
 0x2fd   : > { %v2154_v45 = vadd.f32 %v7012_v49, %v2128_v54  ;;  %v2182_v44 = vadd.f32 %v7013_v50, %v2156_v15  ;;  %v2205_v3 = vadd.f32 %v7014_v34, %v2179_v43  ;;  %v7015_v11 = vrot.slane %v6210_v30, 2  ;;  %v7017_v15 = vld [vmem:[#allocation27_spill] sm:$0xff] }
 0x2fe   : > { %v6281_v25 = vpop.permute.xlu1 %2553  ;;  %v6283_v56 = vpop.permute.xlu0 %2584  ;;  %v7016_v14 = vrot.slane %v6158_v22, 2  ;;  %v2479_v27 = vrot.slane %v6250_v12, 2  ;;  %v3244_v54 = vmul.f32 %v3243_v7, %v4429_v46  ;;  %v3245_v10 = vmul.f32 %v3243_v7, %v4433_v48 }
 0x2ff   : > { %v2180_v43 = vadd.f32 %v7017_v15, %v2154_v45  ;;  %v2236_v31 = vadd.f32 %v6013_v60, %v2207_v6  ;;  %v2208_v9 = vadd.f32 %v5892_v32, %v2182_v44  ;;  %v3159_v22 = vsel %vm1300_vm8, %v3156_v28, %v3158_v39 }
 0x300   : > { %v6297_v17 = vsel %vm796_vm6, %v7016_v14, %v7015_v11  ;;  %3162 = vrot.lane.b32.xlu1 %v3155_v19, %s4262_s28  ;;  %3164 = vrot.lane.b32.xlu0 %v3157_v35, %s4262_s28  ;;  %v3191_v34 = vrot.slane %v3180_v23, 4  ;;  %v3193_v19 = vrot.slane %v3181_v62, 4  ;;  %v3195_v11 = vrot.slane %v3182_v8, 4  ;;  %v7018_v14 = vld [vmem:[#allocation31_spill] sm:$0xff] }
 0x301   : > { %v3246_v35 = vmul.f32 %v3243_v7, %v4440_v52  ;;  %v2234_v45 = vadd.f32 %v5905_v4, %v2205_v3  ;;  %v2206_v60 = vadd.f32 %v7018_v14, %v2180_v43  ;;  %v2273_v32 = vadd.f32 %v5920_v57, %v2236_v31  ;;  %v7019_v31 = vld [vmem:[#allocation32_spill] sm:$0xff] }
 0x302   : > { %v6308_v49 = vpop.permute.xlu1 %2586  ;;  %v6310_v50 = vpop.permute.xlu0 %2588  ;;  %v3190_v28 = vsel %vm1300_vm8, %v3188_v36, %v3189_v18  ;;  %v3254_v39 = vrot.slane %v3244_v54, 5  ;;  %v3255_v6 = vrot.slane %v3245_v10, 5  ;;  %v6322_v23 = vmul.f32 %v3243_v7, %v4443_v53 }
 0x303   : > { %v3248_v62 = vmul.f32 %v3243_v7, %v4451_v58  ;;  %v2237_v8 = vadd.f32 %v6098_v20, %v2208_v9  ;;  %v2271_v4 = vadd.f32 %v5894_v37, %v2234_v45  ;;  %v2310_v44 = vadd.f32 %v5967_v47, %v2273_v32  ;;  %v7023_v45 = vld [vmem:[#allocation45_spill] sm:$0xff] }
 0x304   : > { %3166 = vrot.lane.b32.xlu1 %v3159_v22, %s4262_s28  ;;  %3197 = vrot.lane.b32.xlu0 %v3190_v28, %s4263_s3  ;;  %v3280_v57 = vstv %s6279_s22  ;;  %v3192_v15 = vsel %vm1300_vm8, %v3189_v18, %v3191_v34  ;;  %v3194_v54 = vsel %vm1300_vm8, %v3191_v34, %v3193_v19  ;;  %v3196_v10 = vsel %vm1300_vm8, %v3193_v19, %v3195_v11  ;;  %v7020_v34 = vld [vmem:[#allocation33_spill] sm:$0xff]  ;;  %v7021_v19 = vld [vmem:[#allocation35_spill] sm:$0xff] }
 0x305   : > { %v3257_v43 = vrot.slane %v3246_v35, 5  ;;  %v2235_v7 = vadd.f32 %v5955_v0, %v2206_v60  ;;  %v2274_v20 = vadd.f32 %v5940_v24, %v2237_v8  ;;  %v2308_v37 = vadd.f32 %v7019_v31, %v2271_v4  ;;  %v7022_v35 = vld [vmem:[#allocation37_spill] sm:$0xff]  ;;  %v7024_v8 = vld [vmem:[#allocation34_spill] sm:$0xff] }
 0x306   : > { %v6329_v3 = vpop.permute.xlu1 %2590  ;;  %v6331_v36 = vpop.permute.xlu0 %2621  ;;  %v2347_v47 = vadd.f32 %v6017_v33, %v2310_v44  ;;  %v3256_v18 = vsel %vm283_vm2, %v3254_v39, %v3255_v6  ;;  %v3259_v9 = vrot.slane %v6322_v23, 5  ;;  %v3261_v22 = vrot.slane %v3248_v62, 5  ;;  %v7025_v44 = vld [vmem:[#allocation38_spill] sm:$0xff] }
 0x307   : > { %v3281_v0 = vmul.f32 %v3280_v57, %v4429_v46  ;;  %v2272_v24 = vadd.f32 %v7020_v34, %v2235_v7  ;;  %v2311_v11 = vadd.f32 %v7021_v19, %v2274_v20  ;;  %v2345_v33 = vadd.f32 %v7022_v35, %v2308_v37  ;;  %v7027_v34 = vld [vmem:[#allocation36_spill] sm:$0xff] }
 0x308   : > { %3199 = vrot.lane.b32.xlu1 %v3192_v15, %s4263_s3  ;;  %3201 = vrot.lane.b32.xlu0 %v3194_v54, %s4263_s3  ;;  %v2384_v14 = vadd.f32 %v7023_v45, %v2347_v47  ;;  %v3258_v28 = vsel %vm283_vm2, %v3255_v6, %v3257_v43  ;;  %v3282_v39 = vmul.f32 %v3280_v57, %v4433_v48  ;;  %v6359_v62 = vstv %s6313_s24  ;;  %v7026_v54 = vld [vmem:[#allocation39_spill] sm:$0xff] }
 0x309   : > { %v3283_v23 = vmul.f32 %v3280_v57, %v4440_v52  ;;  %v2309_v4 = vadd.f32 %v7024_v8, %v2272_v24  ;;  %v2348_v15 = vadd.f32 %v7025_v44, %v2311_v11  ;;  %v2382_v7 = vadd.f32 %v7026_v54, %v2345_v33  ;;  %v7028_v33 = vld [vmem:[#allocation41_spill] sm:$0xff] }
 0x30a   : > { %v6351_v60 = vpop.permute.xlu1 %2623  ;;  %v6353_v32 = vpop.permute.xlu0 %2625  ;;  %v2421_v20 = vadd.f32 %v6110_v5, %v2384_v14  ;;  %v3260_v6 = vsel %vm283_vm2, %v3257_v43, %v3259_v9  ;;  %v3291_v31 = vrot.slane %v3281_v0, 5  ;;  %v3284_v37 = vmul.f32 %v3280_v57, %v4443_v53 }
 0x30b   : > { %v3285_v47 = vmul.f32 %v3280_v57, %v4451_v58  ;;  %v2346_v24 = vadd.f32 %v7027_v34, %v2309_v4  ;;  %v2385_v19 = vadd.f32 %v6082_v13, %v2348_v15  ;;  %v2419_v11 = vadd.f32 %v6084_v2, %v2382_v7 }
 0x30c   : > { %3203 = vrot.lane.b32.xlu1 %v3196_v10, %s4263_s3  ;;  %3263 = vrot.lane.b32.xlu0 %v3256_v18, %s4258_s19  ;;  %v2458_v5 = vadd.f32 %v6166_v42, %v2421_v20  ;;  %v3292_v18 = vrot.slane %v3282_v39, 5  ;;  %v3294_v43 = vrot.slane %v3283_v23, 5  ;;  %v3318_v0 = vmul.f32 %v6359_v62, %v4429_v46 }
 0x30d   : > { %v3319_v57 = vmul.f32 %v6359_v62, %v4433_v48  ;;  %v2383_v13 = vadd.f32 %v7028_v33, %v2346_v24  ;;  %v2422_v2 = vadd.f32 %v6139_v21, %v2385_v19  ;;  %v2456_v42 = vadd.f32 %v6141_v55, %v2419_v11 }
 0x30e   : > { %v6374_v35 = vpop.permute.xlu1 %2627  ;;  %v6376_v10 = vpop.permute.xlu0 %2658  ;;  %v6388_v45 = vstv %s6340_s26  ;;  %v7029_v14 = vrot.slane %v6210_v30, 2  ;;  %v3262_v23 = vsel %vm283_vm2, %v3259_v9, %v3261_v22  ;;  %v3296_v8 = vrot.slane %v3284_v37, 5 }
 0x30f   : > { %v6400_v21 = vmul.f32 %v6359_v62, %v4440_v52  ;;  %v2420_v55 = vadd.f32 %v6108_v26, %v2383_v13  ;;  %v2459_v4 = vadd.f32 %v6189_v40, %v2422_v2  ;;  %v2487_v12 = vadd.f32 %v6297_v17, %v2458_v5 }
 0x310   : > { %v2480_v39 = vsel %vm796_vm6, %v7029_v14, %v2479_v27  ;;  %3265 = vrot.lane.b32.xlu1 %v3258_v28, %s4258_s19  ;;  %3267 = vrot.lane.b32.xlu0 %v3260_v6, %s4258_s19  ;;  %v3298_v30 = vrot.slane %v3285_v47, 5  ;;  %v3293_v28 = vsel %vm283_vm2, %v3291_v31, %v3292_v18  ;;  %v3328_v15 = vrot.slane %v3318_v0, 5 }
 0x311   : > { %v3329_v54 = vrot.slane %v3319_v57, 5  ;;  %v6410_v9 = vmul.f32 %v6388_v45, %v4429_v46  ;;  %v2457_v22 = vadd.f32 %v6164_v61, %v2420_v55  ;;  %v2485_v26 = vadd.f32 %v6199_v51, %v2456_v42 }
 0x312   : > { %v6405_v44 = vpop.permute.xlu1 %2660  ;;  %v2663_v27 = vpop.permute.xlu0 %2662  ;;  %v2524_v40 = vadd.f32 %v6218_v1, %v2487_v12  ;;  %v3295_v17 = vsel %vm283_vm2, %v3292_v18, %v3294_v43  ;;  %v3297_v7 = vsel %vm283_vm2, %v3294_v43, %v3296_v8  ;;  %v6421_v20 = vmul.f32 %v6388_v45, %v4433_v48 }
 0x313   : > { %v3331_v6 = vrot.slane %v6400_v21, 5  ;;  %v6426_v61 = vmul.f32 %v6359_v62, %v4443_v53  ;;  %v2522_v51 = vadd.f32 %v6191_v41, %v2485_v26  ;;  %v2488_v1 = vadd.f32 %v2480_v39, %v2459_v4  ;;  %v7030_v21 = vld [vmem:[#allocation40_spill] sm:$0xff] }
 0x314   : > { %3269 = vrot.lane.b32.xlu1 %v3262_v23, %s4258_s19  ;;  %3300 = vrot.lane.b32.xlu0 %v3293_v28, %s4259_s21  ;;  %v2561_v31 = vadd.f32 %v6262_v63, %v2524_v40  ;;  %v3299_v37 = vsel %vm283_vm2, %v3296_v8, %v3298_v30  ;;  %v3330_v24 = vsel %vm283_vm2, %v3328_v15, %v3329_v54  ;;  %v2723_v19 = vrot.slane %v6410_v9, 3 }
 0x315   : > { %v6435_v11 = vmul.f32 %v6388_v45, %v4440_v52  ;;  %v3354_v5 = vstv %s6382_s27  ;;  %v2486_v18 = vadd.f32 %v6206_v59, %v2457_v22  ;;  %v2525_v41 = vadd.f32 %v6238_v16, %v2488_v1 }
 0x316   : > { %v2665_v47 = vpop.permute.xlu1 %2664  ;;  %v2696_v34 = vpop.permute.xlu0 %2695  ;;  %v2559_v43 = vadd.f32 %v6240_v38, %v2522_v51  ;;  %v2598_v63 = vadd.f32 %v6310_v50, %v2561_v31  ;;  %v2724_v0 = vrot.slane %v6421_v20, 3  ;;  %v3332_v57 = vsel %vm283_vm2, %v3329_v54, %v3331_v6 }
 0x317   : > { %v3333_v33 = vrot.slane %v6426_v61, 5  ;;  %v2716_v59 = vmul.f32 %v6388_v45, %v4443_v53  ;;  %v2523_v16 = vadd.f32 %v6216_v29, %v2486_v18  ;;  %v2562_v38 = vadd.f32 %v6281_v25, %v2525_v41 }
 0x318   : > { %3302 = vrot.lane.b32.xlu1 %v3295_v17, %s4259_s21  ;;  %3304 = vrot.lane.b32.xlu0 %v3297_v7, %s4259_s21  ;;  %v2596_v50 = vadd.f32 %v6283_v56, %v2559_v43  ;;  %v2635_v13 = vadd.f32 %v6353_v32, %v2598_v63  ;;  %v2726_v14 = vrot.slane %v6435_v11, 3  ;;  %v3322_v39 = vmul.f32 %v6359_v62, %v4451_v58 }
 0x319   : > { %v3355_v23 = vmul.f32 %v3354_v5, %v4429_v46  ;;  %v3356_v8 = vmul.f32 %v3354_v5, %v4433_v48  ;;  %v2560_v55 = vadd.f32 %v7030_v21, %v2523_v16  ;;  %v2599_v29 = vadd.f32 %v6329_v3, %v2562_v38 }
 0x31a   : > { %v2698_v2 = vpop.permute.xlu1 %2697  ;;  %v2700_v42 = vpop.permute.xlu0 %2699  ;;  %v2633_v25 = vadd.f32 %v6331_v36, %v2596_v50  ;;  %v2672_v56 = vadd.f32 %v2663_v27, %v2635_v13  ;;  %v2728_v32 = vrot.slane %v2716_v59, 3  ;;  %v2717_v4 = vmul.f32 %v6388_v45, %v4451_v58 }
 0x31b   : > { %v3357_v62 = vmul.f32 %v3354_v5, %v4440_v52  ;;  %v6469_v12 = vmul.f32 %v3354_v5, %v4443_v53  ;;  %v2597_v30 = vadd.f32 %v6308_v49, %v2560_v55  ;;  %v2636_v3 = vadd.f32 %v6374_v35, %v2599_v29 }
 0x31c   : > { %3306 = vrot.lane.b32.xlu1 %v3299_v37, %s4259_s21  ;;  %3337 = vrot.lane.b32.xlu0 %v3330_v24, %s4260_s23  ;;  %v2670_v36 = vadd.f32 %v6376_v10, %v2633_v25  ;;  %v2709_v27 = vadd.f32 %v2700_v42, %v2672_v56  ;;  %v3334_v54 = vsel %vm283_vm2, %v3331_v6, %v3333_v33  ;;  %v3335_v9 = vrot.slane %v3322_v39, 5 }
 0x31d   : > { %v3365_v22 = vrot.slane %v3355_v23, 5  ;;  %v3366_v45 = vrot.slane %v3356_v8, 5  ;;  %v2634_v26 = vadd.f32 %v6351_v60, %v2597_v30  ;;  %v2673_v40 = vadd.f32 %v2665_v47, %v2636_v3 }
 0x31e   : > { %v2702_v28 = vpop.permute.xlu1 %2701  ;;  %v2762_v15 = vpop.permute.xlu0 %2761  ;;  %v2707_v17 = vadd.f32 %v2696_v34, %v2670_v36  ;;  %v3391_v7 = vstv %s6442_s30  ;;  %v2729_v49 = vsel %vm1048_vm7, %v2726_v14, %v2728_v32  ;;  %v2730_v35 = vrot.slane %v2717_v4, 3 }
 0x31f   : > { %v3368_v10 = vrot.slane %v3357_v62, 5  ;;  %v3370_v20 = vrot.slane %v6469_v12, 5  ;;  %v2671_v6 = vadd.f32 %v6405_v44, %v2634_v26  ;;  %v2710_v61 = vadd.f32 %v2702_v28, %v2673_v40 }
 0x320   : > { %3339 = vrot.lane.b32.xlu1 %v3332_v57, %s4260_s23  ;;  %3341 = vrot.lane.b32.xlu0 %v3334_v54, %s4260_s23  ;;  %v2738_v51 = vadd.f32 %v2729_v49, %v2709_v27  ;;  %v3359_v1 = vmul.f32 %v3354_v5, %v4451_v58  ;;  %v2725_v60 = vsel %vm1048_vm7, %v2723_v19, %v2724_v0  ;;  %v3494_v27 = vstv %s3969_s5 }
 0x321   : > { %v3336_v47 = vsel %vm283_vm2, %v3333_v33, %v3335_v9  ;;  %v3367_v34 = vsel %vm283_vm2, %v3365_v22, %v3366_v45  ;;  %v3392_v24 = vmul.f32 %v3391_v7, %v4429_v46  ;;  %v2708_v11 = vadd.f32 %v2698_v2, %v2671_v6 }
 0x322   : > { %v2764_v31 = vpop.permute.xlu1 %2763  ;;  %v2766_v37 = vpop.permute.xlu0 %2765  ;;  %v2736_v18 = vadd.f32 %v2725_v60, %v2707_v17  ;;  %v3393_v43 = vmul.f32 %v3391_v7, %v4433_v48  ;;  %v2727_v44 = vsel %vm1048_vm7, %v2724_v0, %v2726_v14  ;;  %v2731_v19 = vsel %vm1048_vm7, %v2728_v32, %v2730_v35 }
 0x323   : > { %v2775_v41 = vadd.f32 %v2766_v37, %v2738_v51  ;;  %v3369_v5 = vsel %vm283_vm2, %v3366_v45, %v3368_v10  ;;  %v2739_v57 = vadd.f32 %v2731_v19, %v2710_v61  ;;  %v3371_v33 = vsel %vm283_vm2, %v3368_v10, %v3370_v20 }
 0x324   : > { %3343 = vrot.lane.b32.xlu1 %v3336_v47, %s4260_s23  ;;  %3374 = vrot.lane.b32.xlu0 %v3367_v34, %s4261_s25  ;;  %v2773_v63 = vadd.f32 %v2762_v15, %v2736_v18  ;;  %v3372_v59 = vrot.slane %v3359_v1, 5  ;;  %v3402_v50 = vrot.slane %v3392_v24, 5  ;;  %v3394_v13 = vmul.f32 %v3391_v7, %v4440_v52 }
 0x325   : > { %v3395_v0 = vmul.f32 %v3391_v7, %v4443_v53  ;;  %v3428_v2 = vstv %s6475_s4  ;;  %v2737_v42 = vadd.f32 %v2727_v44, %v2708_v11  ;;  %v3403_v23 = vrot.slane %v3393_v43, 5 }
 0x326   : > { %v2768_v16 = vpop.permute.xlu1 %2767  ;;  %v2799_v38 = vpop.permute.xlu0 %2798  ;;  %v3396_v21 = vmul.f32 %v3391_v7, %v4451_v58  ;;  %v3405_v25 = vrot.slane %v3394_v13, 5  ;;  %v3429_v32 = vmul.f32 %v3428_v2, %v4429_v46  ;;  %v3430_v4 = vmul.f32 %v3428_v2, %v4433_v48 }
 0x327   : > { %v2776_v14 = vadd.f32 %v2768_v16, %v2739_v57  ;;  %v2810_v39 = vadd.f32 %v2799_v38, %v2773_v63  ;;  %v2774_v8 = vadd.f32 %v2764_v31, %v2737_v42  ;;  %v3407_v56 = vrot.slane %v3395_v0, 5 }
 0x328   : > { %3376 = vrot.lane.b32.xlu1 %v3369_v5, %s4261_s25  ;;  %3378 = vrot.lane.b32.xlu0 %v3371_v33, %s4261_s25  ;;  %v3373_v30 = vsel %vm283_vm2, %v3370_v20, %v3372_v59  ;;  %v3404_v3 = vsel %vm283_vm2, %v3402_v50, %v3403_v23  ;;  %v3409_v36 = vrot.slane %v3396_v21, 5  ;;  %v3406_v54 = vsel %vm283_vm2, %v3403_v23, %v3405_v25 }
 0x329   : > { %v3408_v9 = vsel %vm283_vm2, %v3405_v25, %v3407_v56  ;;  %v3439_v22 = vrot.slane %v3429_v32, 5  ;;  %v3440_v45 = vrot.slane %v3430_v4, 5  ;;  %v3431_v17 = vmul.f32 %v3428_v2, %v4440_v52 }
 0x32a   : > { %v2801_v55 = vpop.permute.xlu1 %2800  ;;  %v2803_v29 = vpop.permute.xlu0 %2802  ;;  %v3432_v7 = vmul.f32 %v3428_v2, %v4443_v53  ;;  %v3410_v49 = vsel %vm283_vm2, %v3407_v56, %v3409_v36  ;;  %v3433_v6 = vmul.f32 %v3428_v2, %v4451_v58  ;;  %v3495_v61 = vmul.f32 %v3494_v27, %v4429_v46 }
 0x32b   : > { %v2811_v62 = vadd.f32 %v2801_v55, %v2774_v8  ;;  %v2812_v12 = vadd.f32 %v2803_v29, %v2775_v41  ;;  %v3441_v20 = vsel %vm283_vm2, %v3439_v22, %v3440_v45  ;;  %v3496_v51 = vmul.f32 %v3494_v27, %v4433_v48 }
 0x32c   : > { %3380 = vrot.lane.b32.xlu1 %v3373_v30, %s4261_s25  ;;  %3411 = vrot.lane.b32.xlu0 %v3404_v3, %s4262_s28  ;;  %v3442_v31 = vrot.slane %v3431_v17, 5  ;;  %v3444_v37 = vrot.slane %v3432_v7, 5  ;;  %v3497_v47 = vmul.f32 %v3494_v27, %v4440_v52  ;;  %v3446_v11 = vrot.slane %v3433_v6, 5 }
 0x32d   : > { %v3505_v18 = vrot.slane %v3495_v61, 6  ;;  %v3506_v41 = vrot.slane %v3496_v51, 6  ;;  %v3498_v43 = vmul.f32 %v3494_v27, %v4443_v53  ;;  %v3531_v57 = vstv %s3970_s6 }
 0x32e   : > { %v2805_v28 = vpop.permute.xlu1 %2804  ;;  %v2836_v15 = vpop.permute.xlu0 %2835  ;;  %v3443_v5 = vsel %vm283_vm2, %v3440_v45, %v3442_v31  ;;  %v3445_v63 = vsel %vm283_vm2, %v3442_v31, %v3444_v37  ;;  %v3508_v33 = vrot.slane %v3497_v47, 6  ;;  %v3499_v59 = vmul.f32 %v3494_v27, %v4451_v58 }
 0x32f   : > { %v2813_v26 = vadd.f32 %v2805_v28, %v2776_v14  ;;  %v2847_v40 = vadd.f32 %v2836_v15, %v2810_v39  ;;  %v3447_v50 = vsel %vm283_vm2, %v3444_v37, %v3446_v11  ;;  %v3507_v13 = vsel %vm1803_vm9, %v3505_v18, %v3506_v41 }
 0x330   : > { %3413 = vrot.lane.b32.xlu1 %v3406_v54, %s4262_s28  ;;  %3415 = vrot.lane.b32.xlu0 %v3408_v9, %s4262_s28  ;;  %v3510_v0 = vrot.slane %v3498_v43, 6  ;;  %v3532_v14 = vmul.f32 %v3531_v57, %v4429_v46  ;;  %v3533_v39 = vmul.f32 %v3531_v57, %v4433_v48  ;;  %v3509_v23 = vsel %vm1803_vm9, %v3506_v41, %v3508_v33 }
 0x331   : > { %v3512_v8 = vrot.slane %v3499_v59, 6  ;;  %v3534_v25 = vmul.f32 %v3531_v57, %v4440_v52  ;;  %v3535_v56 = vmul.f32 %v3531_v57, %v4443_v53  ;;  %v3568_v32 = vstv %s3971_s7 }
 0x332   : > { %v2838_v35 = vpop.permute.xlu1 %2837  ;;  %v2840_v10 = vpop.permute.xlu0 %2839  ;;  %v3511_v29 = vsel %vm1803_vm9, %v3508_v33, %v3510_v0  ;;  %v3543_v30 = vrot.slane %v3533_v39, 6  ;;  %v3536_v3 = vmul.f32 %v3531_v57, %v4451_v58  ;;  %v2963_v36 = vstv %s3954_s8 }
 0x333   : > { %v2848_v1 = vadd.f32 %v2838_v35, %v2811_v62  ;;  %v2849_v60 = vadd.f32 %v2840_v10, %v2812_v12  ;;  %v3542_v12 = vrot.slane %v3532_v14, 6  ;;  %v3513_v15 = vsel %vm1803_vm9, %v3510_v0, %v3512_v8 }
 0x334   : > { %3417 = vrot.lane.b32.xlu1 %v3410_v49, %s4262_s28  ;;  %3448 = vrot.lane.b32.xlu0 %v3441_v20, %s4263_s3  ;;  %v3545_v54 = vrot.slane %v3534_v25, 6  ;;  %v3547_v9 = vrot.slane %v3535_v56, 6  ;;  %v3569_v22 = vmul.f32 %v3568_v32, %v4429_v46  ;;  %v3570_v17 = vmul.f32 %v3568_v32, %v4433_v48 }
 0x335   : > { %v2964_v7 = vmul.f32 %v2963_v36, %v4429_v46  ;;  %v2965_v49 = vmul.f32 %v2963_v36, %v4433_v48  ;;  %v3549_v35 = vrot.slane %v3536_v3, 6  ;;  %v3571_v10 = vmul.f32 %v3568_v32, %v4440_v52 }
 0x336   : > { %v2842_v34 = vpop.permute.xlu1 %2841  ;;  %v2873_v24 = vpop.permute.xlu0 %2872  ;;  %v3546_v61 = vsel %vm1803_vm9, %v3543_v30, %v3545_v54  ;;  %v3548_v51 = vsel %vm1803_vm9, %v3545_v54, %v3547_v9  ;;  %v3580_v47 = vrot.slane %v3570_v17, 6  ;;  %v2966_v18 = vmul.f32 %v2963_v36, %v4440_v52 }
 0x337   : > { %v2850_v44 = vadd.f32 %v2842_v34, %v2813_v26  ;;  %v2884_v19 = vadd.f32 %v2873_v24, %v2847_v40  ;;  %v3544_v40 = vsel %vm1803_vm9, %v3542_v12, %v3543_v30  ;;  %v3605_v34 = vstv %s6538_s10 }
 0x338   : > { %3450 = vrot.lane.b32.xlu1 %v3443_v5, %s4263_s3  ;;  %3452 = vrot.lane.b32.xlu0 %v3445_v63, %s4263_s3  ;;  %v2974_v24 = vrot.slane %v2964_v7, 4  ;;  %v2975_v11 = vrot.slane %v2965_v49, 4  ;;  %v2967_v41 = vmul.f32 %v2963_v36, %v4443_v53  ;;  %v3582_v43 = vrot.slane %v3571_v10, 6 }
 0x339   : > { %v3550_v63 = vsel %vm1803_vm9, %v3547_v9, %v3549_v35  ;;  %v3606_v33 = vmul.f32 %v3605_v34, %v4429_v46  ;;  %v2977_v0 = vrot.slane %v2966_v18, 4  ;;  %v3608_v25 = vmul.f32 %v3605_v34, %v4440_v52 }
 0x33a   : > { %v2875_v16 = vpop.permute.xlu1 %2874  ;;  %v2877_v38 = vpop.permute.xlu0 %2876  ;;  %v3583_v39 = vsel %vm1803_vm9, %v3580_v47, %v3582_v43  ;;  %v3609_v12 = vmul.f32 %v3605_v34, %v4443_v53 }
 0x33b   : > { %v2885_v2 = vadd.f32 %v2875_v16, %v2848_v1  ;;  %v2886_v42 = vadd.f32 %v2877_v38, %v2849_v60  ;;  %v3579_v1 = vrot.slane %v3569_v22, 6  ;;  %v3572_v60 = vmul.f32 %v3568_v32, %v4443_v53 }
 0x33c   : > { %3454 = vrot.lane.b32.xlu1 %v3447_v50, %s4263_s3  ;;  %3514 = vrot.lane.b32.xlu0 %v3507_v13, %s4258_s19  ;;  %v3607_v50 = vmul.f32 %v3605_v34, %v4433_v48  ;;  %v2976_v13 = vsel %vm1300_vm8, %v2974_v24, %v2975_v11  ;;  %v2978_v30 = vsel %vm1300_vm8, %v2975_v11, %v2977_v0  ;;  %v3619_v22 = vrot.slane %v3608_v25, 6 }
 0x33d   : > { %v3584_v57 = vrot.slane %v3572_v60, 6  ;;  %v3581_v38 = vsel %vm1803_vm9, %v3579_v1, %v3580_v47  ;;  %v3621_v35 = vrot.slane %v3609_v12, 6 }
 0x33e   : > { %v2879_v21 = vpop.permute.xlu1 %2878  ;;  %v2910_v55 = vpop.permute.xlu0 %2909 }
 0x33f   : > { %v2887_v4 = vadd.f32 %v2879_v21, %v2850_v44  ;;  %v2921_v62 = vadd.f32 %v2910_v55, %v2884_v19  ;;  %v3573_v44 = vmul.f32 %v3568_v32, %v4451_v58  ;;  %v3585_v55 = vsel %vm1803_vm9, %v3582_v43, %v3584_v57 }
 0x340   : > { %3516 = vrot.lane.b32.xlu1 %v3509_v23, %s4258_s19  ;;  %3518 = vrot.lane.b32.xlu0 %v3511_v29, %s4258_s19  ;;  %v3616_v29 = vrot.slane %v3606_v33, 6  ;;  %v3622_v11 = vsel %vm1803_vm9, %v3619_v22, %v3621_v35 }
 0x341   : > { %v3586_v23 = vrot.slane %v3573_v44, 6 }
 0x342   : > { %v2912_v27 = vpop.permute.xlu1 %2911  ;;  %v2914_v28 = vpop.permute.xlu0 %2913 }
 0x343   : > { %v2922_v45 = vadd.f32 %v2912_v27, %v2885_v2  ;;  %v2923_v26 = vadd.f32 %v2914_v28, %v2886_v42  ;;  %v2979_v2 = vrot.slane %v2967_v41, 4  ;;  %v2968_v42 = vmul.f32 %v2963_v36, %v4451_v58 }
 0x344   : > { %3520 = vrot.lane.b32.xlu1 %v3513_v15, %s4258_s19  ;;  %3551 = vrot.lane.b32.xlu0 %v3544_v40, %s4259_s21  ;;  %s6555_s19 = sld [smem:[#allocation4 + $0x60]]  ;;  %v3587_v15 = vsel %vm1803_vm9, %v3584_v57, %v3586_v23 }
 0x345   : > { %v2980_v3 = vsel %vm1300_vm8, %v2977_v0, %v2979_v2  ;;  %v2981_v36 = vrot.slane %v2968_v42, 4 }
 0x346   : > { %v2916_v20 = vpop.permute.xlu1 %2915  ;;  %v2947_v6 = vpop.permute.xlu0 %2946 }
 0x347   : > { %v2924_v31 = vadd.f32 %v2916_v20, %v2887_v4  ;;  %v2958_v37 = vadd.f32 %v2947_v6, %v2921_v62  ;;  %v3617_v62 = vrot.slane %v3607_v50, 6  ;;  %v2982_v10 = vsel %vm1300_vm8, %v2979_v2, %v2981_v36 }
 0x348   : > { %3553 = vrot.lane.b32.xlu1 %v3546_v61, %s4259_s21  ;;  %3555 = vrot.lane.b32.xlu0 %v3548_v51, %s4259_s21 }
 0x349   : > { %v2987_v14 = vadd.f32 %v2976_v13, %v2958_v37  ;;  %v3618_v49 = vsel %vm1803_vm9, %v3616_v29, %v3617_v62  ;;  %v3620_v24 = vsel %vm1803_vm9, %v3617_v62, %v3619_v22 }
 0x34a   : > { %v2949_v19 = vpop.permute.xlu1 %2948  ;;  %v2951_v5 = vpop.permute.xlu0 %2950  ;;  %v3642_v56 = vstv %s6555_s19 }
 0x34b   : > { %v2959_v59 = vadd.f32 %v2949_v19, %v2922_v45  ;;  %v2960_v16 = vadd.f32 %v2951_v5, %v2923_v26  ;;  %v3610_v45 = vmul.f32 %v3605_v34, %v4451_v58  ;;  %v3643_v26 = vmul.f32 %v3642_v56, %v4429_v46 }
 0x34c   : > { %3557 = vrot.lane.b32.xlu1 %v3550_v63, %s4259_s21  ;;  %3588 = vrot.lane.b32.xlu0 %v3581_v38, %s4260_s23  ;;  %s6580_s21 = sld [smem:[#allocation4 + $0x61]]  ;;  %v3644_v40 = vmul.f32 %v3642_v56, %v4433_v48  ;;  %v3645_v6 = vmul.f32 %v3642_v56, %v4440_v52  ;;  %v3646_v37 = vmul.f32 %v3642_v56, %v4443_v53 }
 0x34d   : > { %v2988_v27 = vadd.f32 %v2978_v30, %v2959_v59  ;;  %v2989_v28 = vadd.f32 %v2980_v3, %v2960_v16  ;;  %v3623_v1 = vrot.slane %v3610_v45, 6  ;;  %v3653_v60 = vrot.slane %v3643_v26, 6 }
 0x34e   : > { %v2953_v8 = vpop.permute.xlu1 %2952  ;;  %v3013_v21 = vpop.permute.xlu0 %3012  ;;  %v3656_v41 = vrot.slane %v3645_v6, 6  ;;  %v3658_v63 = vrot.slane %v3646_v37, 6  ;;  %v3647_v57 = vmul.f32 %v3642_v56, %v4451_v58 }
 0x34f   : > { %v2961_v32 = vadd.f32 %v2953_v8, %v2924_v31  ;;  %v3024_v4 = vadd.f32 %v3013_v21, %v2987_v14  ;;  %v3654_v31 = vrot.slane %v3644_v40, 6  ;;  %v3624_v19 = vsel %vm1803_vm9, %v3621_v35, %v3623_v1 }
 0x350   : > { %3590 = vrot.lane.b32.xlu1 %v3583_v39, %s4260_s23  ;;  %3592 = vrot.lane.b32.xlu0 %v3585_v55, %s4260_s23  ;;  %v3659_v2 = vsel %vm1803_vm9, %v3656_v41, %v3658_v63  ;;  %v3660_v42 = vrot.slane %v3647_v57, 6 }
 0x351   : > { %v2990_v20 = vadd.f32 %v2982_v10, %v2961_v32  ;;  %v3655_v5 = vsel %vm1803_vm9, %v3653_v60, %v3654_v31  ;;  %v3657_v50 = vsel %vm1803_vm9, %v3654_v31, %v3656_v41 }
 0x352   : > { %v3015_v54 = vpop.permute.xlu1 %3014  ;;  %v3017_v9 = vpop.permute.xlu0 %3016  ;;  %v3679_v18 = vstv %s6580_s21  ;;  %v3661_v56 = vsel %vm1803_vm9, %v3658_v63, %v3660_v42 }
 0x353   : > { %v3025_v17 = vadd.f32 %v3015_v54, %v2988_v27  ;;  %v3026_v7 = vadd.f32 %v3017_v9, %v2989_v28  ;;  %v3680_v16 = vmul.f32 %v3679_v18, %v4429_v46  ;;  %v3681_v38 = vmul.f32 %v3679_v18, %v4433_v48 }
 0x354   : > { %3594 = vrot.lane.b32.xlu1 %v3587_v15, %s4260_s23  ;;  %3625 = vrot.lane.b32.xlu0 %v3618_v49, %s4261_s25  ;;  %v3682_v14 = vmul.f32 %v3679_v18, %v4440_v52  ;;  %v3683_v39 = vmul.f32 %v3679_v18, %v4443_v53  ;;  %v3684_v3 = vmul.f32 %v3679_v18, %v4451_v58  ;;  %s3961_s23 = sld [smem:[#allocation4 + $0x54]] }
 0x355   : > { %v3690_v21 = vrot.slane %v3680_v16, 6  ;;  %v3691_v55 = vrot.slane %v3681_v38, 6 }
 0x356   : > { %v3019_v61 = vpop.permute.xlu1 %3018  ;;  %v3050_v51 = vpop.permute.xlu0 %3049  ;;  %v3693_v32 = vrot.slane %v3682_v14, 6  ;;  %v3697_v22 = vrot.slane %v3684_v3, 6 }
 0x357   : > { %v3027_v47 = vadd.f32 %v3019_v61, %v2990_v20  ;;  %v3061_v34 = vadd.f32 %v3050_v51, %v3024_v4  ;;  %v3695_v4 = vrot.slane %v3683_v39, 6  ;;  %v3692_v30 = vsel %vm1803_vm9, %v3690_v21, %v3691_v55 }
 0x358   : > { %3627 = vrot.lane.b32.xlu1 %v3620_v24, %s4261_s25  ;;  %3629 = vrot.lane.b32.xlu0 %v3622_v11, %s4261_s25  ;;  %v3694_v28 = vsel %vm1803_vm9, %v3691_v55, %v3693_v32 }
 0x359   : > { %v3696_v9 = vsel %vm1803_vm9, %v3693_v32, %v3695_v4 }
 0x35a   : > { %v3052_v43 = vpop.permute.xlu1 %3051  ;;  %v3054_v44 = vpop.permute.xlu0 %3053  ;;  %v3214_v6 = vstv %s3961_s23 }
 0x35b   : > { %v3062_v33 = vadd.f32 %v3052_v43, %v3025_v17  ;;  %v3063_v59 = vadd.f32 %v3054_v44, %v3026_v7  ;;  %v3698_v7 = vsel %vm1803_vm9, %v3695_v4, %v3697_v22  ;;  %v3215_v31 = vmul.f32 %v3214_v6, %v4429_v46 }
 0x35c   : > { %3631 = vrot.lane.b32.xlu1 %v3624_v19, %s4261_s25  ;;  %3662 = vrot.lane.b32.xlu0 %v3655_v5, %s4262_s28  ;;  %v3216_v37 = vmul.f32 %v3214_v6, %v4433_v48  ;;  %v3217_v43 = vmul.f32 %v3214_v6, %v4440_v52  ;;  %v3218_v44 = vmul.f32 %v3214_v6, %v4443_v53  ;;  %s3968_s25 = sld [smem:[#allocation4 + $0x5b]] }
 0x35d   : > { %v3225_v18 = vrot.slane %v3215_v31, 5  ;;  %v3219_v38 = vmul.f32 %v3214_v6, %v4451_v58 }
 0x35e   : > { %v3056_v13 = vpop.permute.xlu1 %3055  ;;  %v3087_v0 = vpop.permute.xlu0 %3086  ;;  %v3226_v41 = vrot.slane %v3216_v37, 5  ;;  %v3230_v16 = vrot.slane %v3218_v44, 5 }
 0x35f   : > { %v3064_v23 = vadd.f32 %v3056_v13, %v3027_v47  ;;  %v3098_v8 = vadd.f32 %v3087_v0, %v3061_v34 }
 0x360   : > { %3664 = vrot.lane.b32.xlu1 %v3657_v50, %s4262_s28  ;;  %3666 = vrot.lane.b32.xlu0 %v3659_v2, %s4262_s28 }
 0x362   : > { %v3089_v29 = vpop.permute.xlu1 %3088  ;;  %v3091_v25 = vpop.permute.xlu0 %3090 }
 0x363   : > { %v3099_v62 = vadd.f32 %v3089_v29, %v3062_v33  ;;  %v3100_v12 = vadd.f32 %v3091_v25, %v3063_v59  ;;  %v3227_v33 = vsel %vm283_vm2, %v3225_v18, %v3226_v41  ;;  %v3228_v59 = vrot.slane %v3217_v43, 5 }
 0x364   : > { %3668 = vrot.lane.b32.xlu1 %v3661_v56, %s4262_s28  ;;  %3699 = vrot.lane.b32.xlu0 %v3692_v30, %s4263_s3 }
 0x365   : > { %v3229_v14 = vsel %vm283_vm2, %v3226_v41, %v3228_v59  ;;  %v3231_v39 = vsel %vm283_vm2, %v3228_v59, %v3230_v16  ;;  %v3465_v41 = vstv %s3968_s25 }
 0x366   : > { %v3093_v36 = vpop.permute.xlu1 %3092  ;;  %v3124_v27 = vpop.permute.xlu0 %3123  ;;  %v3466_v44 = vmul.f32 %v3465_v41, %v4429_v46 }
 0x367   : > { %v3101_v15 = vadd.f32 %v3093_v36, %v3064_v23  ;;  %v3135_v54 = vadd.f32 %v3124_v27, %v3098_v8  ;;  %v3232_v23 = vrot.slane %v3219_v38, 5 }
 0x368   : > { %3701 = vrot.lane.b32.xlu1 %v3694_v28, %s4263_s3  ;;  %3703 = vrot.lane.b32.xlu0 %v3696_v9, %s4263_s3 }
 0x369   : > { %v3233_v32 = vsel %vm283_vm2, %v3230_v16, %v3232_v23 }
 0x36a   : > { %v3126_v45 = vpop.permute.xlu1 %3125  ;;  %v3128_v26 = vpop.permute.xlu0 %3127 }
 0x36b   : > { %v3136_v40 = vadd.f32 %v3126_v45, %v3099_v62  ;;  %v3137_v17 = vadd.f32 %v3128_v26, %v3100_v12 }
 0x36c   : > { %3705 = vrot.lane.b32.xlu1 %v3698_v7, %s4263_s3 }
 0x36e   : > { %v3130_v49 = vpop.permute.xlu1 %3129  ;;  %v3161_v35 = vpop.permute.xlu0 %3160 }
 0x36f   : > { %v3138_v10 = vadd.f32 %v3130_v49, %v3101_v15  ;;  %v3172_v20 = vadd.f32 %v3161_v35, %v3135_v54 }
 0x372   : > { %v3163_v61 = vpop.permute.xlu1 %3162  ;;  %v3165_v51 = vpop.permute.xlu0 %3164 }
 0x373   : > { %v3173_v1 = vadd.f32 %v3163_v61, %v3136_v40  ;;  %v3174_v60 = vadd.f32 %v3165_v51, %v3137_v17 }
 0x376   : > { %v3167_v47 = vpop.permute.xlu1 %3166  ;;  %v3198_v34 = vpop.permute.xlu0 %3197 }
 0x377   : > { %v3175_v24 = vadd.f32 %v3167_v47, %v3138_v10  ;;  %v3209_v11 = vadd.f32 %v3198_v34, %v3172_v20 }
 0x379   : > { %v3238_v50 = vadd.f32 %v3227_v33, %v3209_v11 }
 0x37a   : > { %v3200_v19 = vpop.permute.xlu1 %3199  ;;  %v3202_v5 = vpop.permute.xlu0 %3201 }
 0x37b   : > { %v3210_v63 = vadd.f32 %v3200_v19, %v3173_v1  ;;  %v3211_v57 = vadd.f32 %v3202_v5, %v3174_v60  ;;  %v3467_v19 = vmul.f32 %v3465_v41, %v4433_v48 }
 0x37d   : > { %v3239_v8 = vadd.f32 %v3229_v14, %v3210_v63  ;;  %v3240_v21 = vadd.f32 %v3231_v39, %v3211_v57 }
 0x37e   : > { %v3204_v13 = vpop.permute.xlu1 %3203  ;;  %v3264_v0 = vpop.permute.xlu0 %3263 }
 0x37f   : > { %v3212_v2 = vadd.f32 %v3204_v13, %v3175_v24  ;;  %v3275_v42 = vadd.f32 %v3264_v0, %v3238_v50  ;;  %v3476_v13 = vrot.slane %v3466_v44, 6  ;;  %v3477_v0 = vrot.slane %v3467_v19, 6 }
 0x381   : > { %v3241_v4 = vadd.f32 %v3233_v32, %v3212_v2  ;;  %v3468_v2 = vmul.f32 %v3465_v41, %v4440_v52 }
 0x382   : > { %v3266_v55 = vpop.permute.xlu1 %3265  ;;  %v3268_v29 = vpop.permute.xlu0 %3267 }
 0x383   : > { %v3276_v25 = vadd.f32 %v3266_v55, %v3239_v8  ;;  %v3277_v56 = vadd.f32 %v3268_v29, %v3240_v21 }
 0x386   : > { %v3270_v62 = vpop.permute.xlu1 %3269  ;;  %v3301_v12 = vpop.permute.xlu0 %3300 }
 0x387   : > { %v3278_v30 = vadd.f32 %v3270_v62, %v3241_v4  ;;  %v3312_v18 = vadd.f32 %v3301_v12, %v3275_v42  ;;  %v3469_v42 = vmul.f32 %v3465_v41, %v4443_v53  ;;  %v3470_v4 = vmul.f32 %v3465_v41, %v4451_v58 }
 0x389   : > { %v3481_v32 = vrot.slane %v3469_v42, 6 }
 0x38a   : > { %v3303_v3 = vpop.permute.xlu1 %3302  ;;  %v3305_v36 = vpop.permute.xlu0 %3304 }
 0x38b   : > { %v3313_v57 = vadd.f32 %v3303_v3, %v3276_v25  ;;  %v3314_v33 = vadd.f32 %v3305_v36, %v3277_v56  ;;  %v3478_v25 = vsel %vm1803_vm9, %v3476_v13, %v3477_v0  ;;  %v3479_v56 = vrot.slane %v3468_v2, 6 }
 0x38e   : > { %v3307_v27 = vpop.permute.xlu1 %3306  ;;  %v3338_v28 = vpop.permute.xlu0 %3337 }
 0x38f   : > { %v3349_v43 = vadd.f32 %v3338_v28, %v3312_v18  ;;  %v3315_v23 = vadd.f32 %v3307_v27, %v3278_v30  ;;  %v3480_v27 = vsel %vm1803_vm9, %v3477_v0, %v3479_v56 }
 0x392   : > { %v3340_v15 = vpop.permute.xlu1 %3339  ;;  %v3342_v54 = vpop.permute.xlu0 %3341 }
 0x393   : > { %v3350_v16 = vadd.f32 %v3340_v15, %v3313_v57  ;;  %v3351_v38 = vadd.f32 %v3342_v54, %v3314_v33  ;;  %v3482_v15 = vsel %vm1803_vm9, %v3479_v56, %v3481_v32  ;;  %v3483_v54 = vrot.slane %v3470_v4, 6 }
 0x396   : > { %v3344_v9 = vpop.permute.xlu1 %3343  ;;  %v3375_v22 = vpop.permute.xlu0 %3374 }
 0x397   : > { %v3386_v59 = vadd.f32 %v3375_v22, %v3349_v43  ;;  %v3352_v21 = vadd.f32 %v3344_v9, %v3315_v23 }
 0x39a   : > { %v3377_v45 = vpop.permute.xlu1 %3376  ;;  %v3379_v26 = vpop.permute.xlu0 %3378 }
 0x39b   : > { %v3387_v46 = vadd.f32 %v3377_v45, %v3350_v16  ;;  %v3388_v8 = vadd.f32 %v3379_v26, %v3351_v38 }
 0x39e   : > { %v3381_v40 = vpop.permute.xlu1 %3380  ;;  %v3412_v17 = vpop.permute.xlu0 %3411 }
 0x39f   : > { %v3423_v50 = vadd.f32 %v3412_v17, %v3386_v59  ;;  %v3389_v52 = vadd.f32 %v3381_v40, %v3352_v21  ;;  %v3484_v40 = vsel %vm1803_vm9, %v3481_v32, %v3483_v54 }
 0x3a2   : > { %v3414_v7 = vpop.permute.xlu1 %3413  ;;  %v3416_v49 = vpop.permute.xlu0 %3415 }
 0x3a3   : > { %v3424_v55 = vadd.f32 %v3414_v7, %v3387_v46  ;;  %v3425_v29 = vadd.f32 %v3416_v49, %v3388_v8 }
 0x3a6   : > { %v3418_v35 = vpop.permute.xlu1 %3417  ;;  %v3449_v10 = vpop.permute.xlu0 %3448 }
 0x3a7   : > { %v3460_v48 = vadd.f32 %v3449_v10, %v3423_v50  ;;  %v3426_v28 = vadd.f32 %v3418_v35, %v3389_v52 }
 0x3a9   : > { %v3489_v36 = vadd.f32 %v3478_v25, %v3460_v48 }
 0x3aa   : > { %v3451_v20 = vpop.permute.xlu1 %3450  ;;  %v3453_v6 = vpop.permute.xlu0 %3452 }
 0x3ab   : > { %v3461_v3 = vadd.f32 %v3451_v20, %v3424_v55  ;;  %v3462_v53 = vadd.f32 %v3453_v6, %v3425_v29 }
 0x3ad   : > { %v3490_v26 = vadd.f32 %v3480_v27, %v3461_v3  ;;  %v3491_v17 = vadd.f32 %v3482_v15, %v3462_v53 }
 0x3ae   : > { %v3455_v61 = vpop.permute.xlu1 %3454  ;;  %v3515_v51 = vpop.permute.xlu0 %3514 }
 0x3af   : > { %v3526_v30 = vadd.f32 %v3515_v51, %v3489_v36  ;;  %v3463_v45 = vadd.f32 %v3455_v61, %v3426_v28 }
 0x3b1   : > { %v3492_v35 = vadd.f32 %v3484_v40, %v3463_v45 }
 0x3b2   : > { %v3517_v1 = vpop.permute.xlu1 %3516  ;;  %v3519_v60 = vpop.permute.xlu0 %3518 }
 0x3b3   : > { %v3527_v58 = vadd.f32 %v3517_v1, %v3490_v26  ;;  %v3528_v49 = vadd.f32 %v3519_v60, %v3491_v17 }
 0x3b6   : > { %v6630_v31 = vpop.permute.xlu1 %3520  ;;  %v3552_v37 = vpop.permute.xlu0 %3551 }
 0x3b7   : > { %v3563_v7 = vadd.f32 %v3552_v37, %v3526_v30  ;;  %v3529_v43 = vadd.f32 %v6630_v31, %v3492_v35 }
 0x3ba   : > { %v3554_v47 = vpop.permute.xlu1 %3553  ;;  %v3556_v34 = vpop.permute.xlu0 %3555 }
 0x3bb   : > { %v3564_v51 = vadd.f32 %v3554_v47, %v3527_v58  ;;  %v3565_v18 = vadd.f32 %v3556_v34, %v3528_v49 }
 0x3be   : > { %v6632_v24 = vpop.permute.xlu1 %3557  ;;  %v3589_v11 = vpop.permute.xlu0 %3588 }
 0x3bf   : > { %v3600_v10 = vadd.f32 %v3589_v11, %v3563_v7  ;;  %v3566_v37 = vadd.f32 %v6632_v24, %v3529_v43 }
 0x3c2   : > { %v3591_v5 = vpop.permute.xlu1 %3590  ;;  %v3593_v63 = vpop.permute.xlu0 %3592 }
 0x3c3   : > { %v3601_v44 = vadd.f32 %v3591_v5, %v3564_v51  ;;  %v3602_v19 = vadd.f32 %v3593_v63, %v3565_v18 }
 0x3c6   : > { %v3595_v14 = vpop.permute.xlu1 %3594  ;;  %v3626_v39 = vpop.permute.xlu0 %3625 }
 0x3c7   : > { %v3637_v41 = vadd.f32 %v3626_v39, %v3600_v10  ;;  %v3603_v59 = vadd.f32 %v3595_v14, %v3566_v37 }
 0x3ca   : > { %v3628_v62 = vpop.permute.xlu1 %3627  ;;  %v3630_v12 = vpop.permute.xlu0 %3629 }
 0x3cb   : > { %v3638_v1 = vadd.f32 %v3628_v62, %v3601_v44  ;;  %v3639_v60 = vadd.f32 %v3630_v12, %v3602_v19 }
 0x3ce   : > { %v3632_v9 = vpop.permute.xlu1 %3631  ;;  %v3663_v22 = vpop.permute.xlu0 %3662 }
 0x3cf   : > { %v3674_v57 = vadd.f32 %v3663_v22, %v3637_v41  ;;  %v3640_v34 = vadd.f32 %v3632_v9, %v3603_v59 }
 0x3d2   : > { %v3665_v20 = vpop.permute.xlu1 %3664  ;;  %v3667_v6 = vpop.permute.xlu0 %3666 }
 0x3d3   : > { %v3675_v16 = vadd.f32 %v3665_v20, %v3638_v1  ;;  %v3676_v38 = vadd.f32 %v3667_v6, %v3639_v60 }
 0x3d6   : > { %v3669_v61 = vpop.permute.xlu1 %3668  ;;  %v3700_v33 = vpop.permute.xlu0 %3699 }
 0x3d7   : > { %v3711_v11 = vadd.f32 %v3700_v33, %v3674_v57  ;;  %v3677_v5 = vadd.f32 %v3669_v61, %v3640_v34 }
 0x3d9   : > { %v3715_v50 = vsub.f32 0.0, %v3711_v11 }
 0x3da   : > { %v3702_v13 = vpop.permute.xlu1 %3701  ;;  %v3704_v47 = vpop.permute.xlu0 %3703 }
 0x3db   : > { %v3719_v0 = vmul.f32 1.442695, %v3715_v50  ;;  %v3712_v2 = vadd.f32 %v3702_v13, %v3675_v16  ;;  %v3713_v31 = vadd.f32 %v3704_v47, %v3676_v38 }
 0x3dd   : > { %4109 = vpow2.f32 %v3719_v0  ;;  %v3716_v63 = vsub.f32 0.0, %v3712_v2  ;;  %v3717_v42 = vsub.f32 0.0, %v3713_v31 }
 0x3de   : > { %v3706_v39 = vpop.permute.xlu1 %3705 }
 0x3df   : > { %v3721_v23 = vmul.f32 1.442695, %v3716_v63  ;;  %v3723_v24 = vmul.f32 1.442695, %v3717_v42  ;;  %v3714_v46 = vadd.f32 %v3706_v39, %v3677_v5 }
 0x3e1   : > { %4111 = vpow2.f32 %v3721_v23  ;;  %v3718_v8 = vsub.f32 0.0, %v3714_v46 }
 0x3e2   : > { %4113 = vpow2.f32 %v3723_v24 }
 0x3e3   : > { %v3725_v14 = vmul.f32 1.442695, %v3718_v8 }
 0x3e5   : > { %4115 = vpow2.f32 %v3725_v14 }
 0x3e7   : > { %v4110_v48 = vpop.eup %4109 }
 0x3e8   : > { %v3727_v21 = vadd.f32 1.0, %v4110_v48 }
 0x3ea   : > { %4117 = vrcp.f32 %v3727_v21 }
 0x3eb   : > { %v4112_v55 = vpop.eup %4111 }
 0x3ec   : > { %v4114_v29 = vpop.eup %4113  ;;  %v3728_v25 = vadd.f32 1.0, %v4112_v55 }
 0x3ed   : > { %v3729_v56 = vadd.f32 1.0, %v4114_v29 }
 0x3ee   : > { %4119 = vrcp.f32 %v3728_v25 }
 0x3ef   : > { %v4116_v32 = vpop.eup %4115  ;;  %4121 = vrcp.f32 %v3729_v56 }
 0x3f0   : > { %v3730_v4 = vadd.f32 1.0, %v4116_v32 }
 0x3f2   : > { %4123 = vrcp.f32 %v3730_v4 }
 0x3f4   : > { %v4118_v62 = vpop.eup %4117 }
 0x3f5   : > { %3740 = vst.msk [vmem:[%s4341_s29] sm:$0xff] %vm3739_vm10, %v4118_v62 }
 0x3f8   : > { %v4120_v12 = vpop.eup %4119 }
 0x3f9   : > { %v4122_v52 = vpop.eup %4121  ;;  %3741 = vst.msk [vmem:[%s4341_s29 + $0x8] sm:$0xff] %vm3739_vm10, %v4120_v12 }
 0x3fa   : > { %3742 = vst.msk [vmem:[%s4341_s29 + $0x10] sm:$0xff] %vm3739_vm10, %v4122_v52 }
 0x3fc   : > { %v4124_v3 = vpop.eup %4123 }
 0x3fd   : > { %3743 = vst.msk [vmem:[%s4341_s29 + $0x18] sm:$0xff] %vm3739_vm10, %v4124_v3 }
 0x3fe PF: > { %s13_s13 = sadd.s32 1, %s4218_s13   ;;  %s7031_s9 = smov %s4210_s11 }
 0x3ff   : > { %p10_p8 = scmp.ge.s32.totalorder %s13_s13, 6   ;;  %s7032_s10 = smov %s4214_s12 }
 0x400   : > { %s7033_s11 = smov %s7036_s15  ;;  %s7034_s12 = smov %s7040_s16 }
 0x401   :  { %12 = sbr.rel (!%p10_p8) target bundleno = 3 (0x3), region = 94 }
 0x408   :  { %3765 = vsyncpa [#allocation5], 1 }
 0x409   :  { %3767 = vsyncpa [#allocation5 + $0x1], 1 }

</bundles_post_ra>
